<compile_context>
chip_gen: v7x
topology: tpu7x:2x2x1
jax: 0.10.0
libtpu: 0.0.40
codegen_flags: <defaults>
</compile_context>

<pallas_src>
import numpy as np
import jax
import jax.numpy as jnp
from jax.experimental import pallas as pl
from jax.experimental.pallas import tpu as pltpu

EPS = 1e-5


# ----------------------------------------------------------------------------- helpers
def _erf(x):
    # Abramowitz & Stegun 7.1.26 (max abs err ~1.5e-7); PyTorch nn.GELU() is exact-erf.
    p = 0.3275911
    a1, a2, a3, a4, a5 = 0.254829592, -0.284496736, 1.421413741, -1.453152027, 1.061405429
    s = jnp.where(x < 0.0, -1.0, 1.0)
    ax = jnp.abs(x)
    t = 1.0 / (1.0 + p * ax)
    poly = ((((a5 * t + a4) * t + a3) * t + a2) * t + a1) * t
    return s * (1.0 - poly * jnp.exp(-ax * ax))


def _gelu(x):
    return 0.5 * x * (1.0 + _erf(x * 0.7071067811865476))


def _groupnorm(v, gamma_col, beta_col):
    # GroupNorm(1, ch) over one (ch, H*W) sample.  Two-pass (mean-subtracted) variance to
    # avoid the E[x^2]-E[x]^2 cancellation flagged in review; rsqrt runs on the EUP.
    n = float(v.shape[0] * v.shape[1])
    m = jnp.sum(v) / n
    d = v - m
    var = jnp.sum(d * d) / n
    return d * jax.lax.rsqrt(var + EPS) * gamma_col + beta_col


# ----------------------------------------------------------------------------- kernel
def _make_fused_kernel(H, W, C, HID, P, margin, bf16_matmul):
    HW = H * W
    HWP = HW + 2 * margin
    PC = P * C
    f32 = jnp.float32

    def mm(a, b):
        # bf16 MXU inputs with f32 accumulation only when enabled (realistic widths on
        # v6e/v7x); elementwise / GroupNorm path stays f32 everywhere.
        if bf16_matmul:
            a = a.astype(jnp.bfloat16)
            b = b.astype(jnp.bfloat16)
        return jnp.dot(a, b, preferred_element_type=f32)

    def kernel(emb_ref, x_ref, wcond_ref, cpar_ref, wds_ref, hmask_ref,
               w1_ref, hpar_ref, wr2_ref, dpar_ref,
               out_ref, s_lo_ref, s_hi_ref, col1_ref, col2_ref):
        # ---- zero ONLY the halo margin bands (interiors are always overwritten) ------
        s_lo_ref[:, 0:margin] = jnp.zeros((PC, margin), f32)
        s_lo_ref[:, margin + HW:HWP] = jnp.zeros((PC, margin), f32)
        s_hi_ref[:, 0:margin] = jnp.zeros((HID, margin), f32)
        s_hi_ref[:, margin + HW:HWP] = jnp.zeros((HID, margin), f32)

        # packed input (P samples stacked on the sublane/channel axis) into the halo buf
        s_lo_ref[:, margin:margin + HW] = x_ref[...].reshape(PC, HW)

        # hoisted mask rows + broadcasts (reused by every tap / sample; JAX does not CSE
        # broadcast_in_dim, so these must not live inside the unrolled loops)
        hrow = [hmask_ref[d:d + 1, :] for d in range(7)]
        mask_pc = {d: jnp.broadcast_to(hrow[d], (PC, HW)) for d in (0, 1, 2, 4, 5, 6)}

        # ---- depthwise 7x7: 49 lane-dense VPU FMAs, per-dy partial accumulators -------
        row_accs = []
        for dy in range(-3, 4):
            acc = None
            for dx in range(-3, 4):
                t = (dy + 3) * 7 + (dx + 3)
                start = margin + dy * W + dx
                tap = s_lo_ref[:, start:start + HW]          # (PC, HW) shifted window
                if dx != 0:
                    tap = tap * mask_pc[dx + 3]
                term = wds_ref[:, t:t + 1] * tap
                acc = term if acc is None else acc + term
            row_accs.append(acc)
        ds_acc = (((row_accs[0] + row_accs[1]) + (row_accs[2] + row_accs[3]))
                  + ((row_accs[4] + row_accs[5]) + row_accs[6]))

        # masks for the 3x3 stages (dx in {-1,+1}), hoisted once for all dy and samples
        mask_c = {d: jnp.broadcast_to(hrow[d], (C, HW)) for d in (2, 4)}
        mask_h = {d: jnp.broadcast_to(hrow[d], (HID, HW)) for d in (2, 4)}

        g = _gelu(emb_ref[...])                              # (P, 1, 2T)

        # ---- per-sample: conditioning, GN1, two im2col matmuls, output ----------------
        for s in range(P):
            rs = s * C
            # Linear(GELU(emb)): broadcast-multiply + lane reduce (no serial matvec chain)
            cond = jnp.sum(wcond_ref[...] * g[s], axis=1, keepdims=True)      # (C, 1)
            h = (ds_acc[rs:rs + C, :] + cpar_ref[:, 1:2]      # + ds_conv bias
                 + cond + cpar_ref[:, 0:1])                   # + (t_b + l_b)
            h = _groupnorm(h, cpar_ref[:, 2:3], cpar_ref[:, 3:4])
            s_lo_ref[rs:rs + C, margin:margin + HW] = h       # margins stay zero

            # 3x3 conv C -> HID as ONE im2col matmul (K = 9*C)
            for t in range(9):
                dy, dx = t // 3 - 1, t % 3 - 1
                start = margin + dy * W + dx
                tap = s_lo_ref[rs:rs + C, start:start + HW]
                if dx != 0:
                    tap = tap * mask_c[dx + 3]
                col1_ref[t * C:(t + 1) * C, :] = tap
            h2 = mm(w1_ref[...], col1_ref[...]) + hpar_ref[:, 0:1]
            h2 = _gelu(h2)
            h2 = _groupnorm(h2, hpar_ref[:, 1:2], hpar_ref[:, 2:3])
            s_hi_ref[:, margin:margin + HW] = h2

            # 3x3 conv HID -> DO with the 1x1 residual FOLDED IN: one K = 9*HID+C matmul
            for t in range(9):
                dy, dx = t // 3 - 1, t % 3 - 1
                start = margin + dy * W + dx
                tap = s_hi_ref[:, start:start + HW]
                if dx != 0:
                    tap = tap * mask_h[dx + 3]
                col2_ref[t * HID:(t + 1) * HID, :] = tap
            col2_ref[9 * HID:9 * HID + C, :] = x_ref[s]       # residual input channels
            out_ref[s] = mm(wr2_ref[...], col2_ref[...]) + dpar_ref[...]

    return kernel


# ----------------------------------------------------------------------------- wrapper
def convnext_block(x, time_emb, label_emb, p, *, samples_per_step=None, bf16_matmul=None):
    B, C, H, W = x.shape
    HID = p["c1_b"].shape[0]
    DO = p["c2_b"].shape[0]
    HW = H * W
    f32 = jnp.float32

    # Samples packed per grid step: fills the f32 sublanes when C < 8 and halves the
    # per-step overhead on single-TC v5e/v6e.  The auto rule keeps >= 2 grid steps so both
    # v7x TensorCores stay busy at tiny batch; packing kicks in automatically at B >= 4.
    if samples_per_step is None:
        samples_per_step = 2 if (B % 2 == 0 and B >= 4) else 1
    P = samples_per_step if (samples_per_step > 0 and B % samples_per_step == 0) else 1

    if bf16_matmul is None:
        bf16_matmul = (C >= 64 and HID >= 64)   # only at realistic widths (v6e/v7x MXU)

    margin = 128                         # lane-tile aligned halo, >= 3*W + 3
    assert margin >= 3 * W + 3, "spatial width too large for the fixed halo margin"
    HWP = HW + 2 * margin
    T2 = 2 * time_emb.shape[1]

    # ---- host-side layout plumbing: everything 2-D, lane-dense, no (1,1) tails --------
    x_flat = x.reshape(B, C, HW).astype(f32)
    emb = jnp.concatenate([time_emb, label_emb], axis=1).reshape(B, 1, T2)
    wcond = jnp.concatenate([p["t_w"], p["l_w"]], axis=1).astype(f32)          # (C, 2T)
    cpar = jnp.stack([p["t_b"] + p["l_b"], p["ds_b"], p["gn1_w"], p["gn1_b"]],
                     axis=1).astype(f32)                                       # (C, 4)
    wds = jnp.tile(p["ds_w"].reshape(C, 49).astype(f32), (P, 1))               # (P*C, 49)
    w1 = p["c1_w"].transpose(0, 2, 3, 1).reshape(HID, 9 * C).astype(f32)       # (HID, 9C)
    hpar = jnp.stack([p["c1_b"], p["gn2_w"], p["gn2_b"]], axis=1).astype(f32)  # (HID, 3)
    w2 = p["c2_w"].transpose(0, 2, 3, 1).reshape(DO, 9 * HID).astype(f32)      # (DO, 9HID)
    # Residual path: Conv2d(dim, dim_out, 1) when dim != dim_out, Identity otherwise.
    if "res_w" in p:
        rw = p["res_w"][:, :, 0, 0].astype(f32)
        rb = p["res_b"].astype(f32)
    else:
        assert C == DO, "identity residual requires dim == dim_out"
        rw = jnp.eye(DO, dtype=f32)
        rb = jnp.zeros((DO,), f32)
    wr2 = jnp.concatenate([w2, rw], axis=1)                                    # (DO, 9HID+C)
    dpar = (p["c2_b"].astype(f32) + rb).reshape(DO, 1)                         # (DO, 1)

    # per-dx column validity of the flattened W axis (dx in [-3, 3]); host constant
    col = np.arange(HW) % W
    hmask = jnp.asarray(np.stack(
        [((col + d - 3 >= 0) & (col + d - 3 < W)).astype(np.float32) for d in range(7)],
        axis=0))                                                               # (7, HW)

    full = lambda a: pl.BlockSpec(a.shape, lambda b: (0,) * a.ndim)
    emb_spec = pl.BlockSpec((P, 1, T2), lambda b: (b, 0, 0))
    x_spec = pl.BlockSpec((P, C, HW), lambda b: (b, 0, 0))

    kernel = _make_fused_kernel(H, W, C, HID, P, margin, bf16_matmul)
    out = pl.pallas_call(
        kernel,
        grid=(B // P,),
        in_specs=[emb_spec, x_spec, full(wcond), full(cpar), full(wds), full(hmask),
                  full(w1), full(hpar), full(wr2), full(dpar)],
        out_specs=pl.BlockSpec((P, DO, HW), lambda b: (b, 0, 0)),
        out_shape=jax.ShapeDtypeStruct((B, DO, HW), f32),
        scratch_shapes=[pltpu.VMEM((P * C, HWP), f32),        # halo buf: x, then GN1 out
                        pltpu.VMEM((HID, HWP), f32),          # halo buf: conv1 output
                        pltpu.VMEM((9 * C, HW), f32),         # im2col for conv1
                        pltpu.VMEM((9 * HID + C, HW), f32)],  # im2col(+residual) for conv2
        compiler_params=pltpu.CompilerParams(
            dimension_semantics=("parallel",),
            vmem_limit_bytes=32 * 1024 * 1024),               # explicit budget (v7x: 64MiB)
    )(emb, x_flat, wcond, cpar, wds, hmask, w1, hpar, wr2, dpar)
    return out.reshape(B, DO, H, W)


# ----------------------------------------------------------------------------- reference
def ref_forward(x, te, le, p):
    dn = ("NCHW", "OIHW", "NCHW")
    prec = jax.lax.Precision.HIGHEST
    gelu = lambda v: jax.nn.gelu(v, approximate=False)
    C = x.shape[1]

    h = jax.lax.conv_general_dilated(x, p["ds_w"], (1, 1), [(3, 3), (3, 3)],
                                     dimension_numbers=dn, feature_group_count=C,
                                     precision=prec)
    h = h + p["ds_b"][None, :, None, None]
    ct = gelu(te) @ p["t_w"].T + p["t_b"]
    cl = gelu(le) @ p["l_w"].T + p["l_b"]
    h = h + ct[:, :, None, None] + cl[:, :, None, None]

    def gn(v, g, b):
        m = v.mean(axis=(1, 2, 3), keepdims=True)
        var = ((v - m) ** 2).mean(axis=(1, 2, 3), keepdims=True)
        return (v - m) / jnp.sqrt(var + EPS) * g[None, :, None, None] + b[None, :, None, None]

    h = gn(h, p["gn1_w"], p["gn1_b"])
    h = jax.lax.conv_general_dilated(h, p["c1_w"], (1, 1), [(1, 1), (1, 1)],
                                     dimension_numbers=dn, precision=prec)
    h = h + p["c1_b"][None, :, None, None]
    h = gelu(h)
    h = gn(h, p["gn2_w"], p["gn2_b"])
    h = jax.lax.conv_general_dilated(h, p["c2_w"], (1, 1), [(1, 1), (1, 1)],
                                     dimension_numbers=dn, precision=prec)
    h = h + p["c2_b"][None, :, None, None]
    res = jax.lax.conv_general_dilated(x, p["res_w"], (1, 1), [(0, 0), (0, 0)],
                                       dimension_numbers=dn, precision=prec)
    res = res + p["res_b"][None, :, None, None]
    return h + res


# ----------------------------------------------------------------------------- params
def init_params(key, dim, dim_out, mult, time_emb_dim):
    hid = dim_out * mult
    ks = jax.random.split(key, 16)
    rnd = lambda k, shape, s: (s * jax.random.normal(k, shape)).astype(jnp.float32)
    return {
        "t_w": rnd(ks[0], (dim, time_emb_dim), 0.3),
        "t_b": rnd(ks[1], (dim,), 0.1),
        "l_w": rnd(ks[2], (dim, time_emb_dim), 0.3),
        "l_b": rnd(ks[3], (dim,), 0.1),
        "ds_w": rnd(ks[4], (dim, 1, 7, 7), 0.15),            # Conv2d(dim, dim, 7, groups=dim)
        "ds_b": rnd(ks[5], (dim,), 0.1),
        "gn1_w": 1.0 + rnd(ks[6], (dim,), 0.1),               # GroupNorm(1, dim)
        "gn1_b": rnd(ks[7], (dim,), 0.1),
        "c1_w": rnd(ks[8], (hid, dim, 3, 3), 0.2),             # Conv2d(dim, dim_out*mult, 3)
        "c1_b": rnd(ks[9], (hid,), 0.1),
        "gn2_w": 1.0 + rnd(ks[10], (hid,), 0.1),               # GroupNorm(1, hid)
        "gn2_b": rnd(ks[11], (hid,), 0.1),
        "c2_w": rnd(ks[12], (dim_out, hid, 3, 3), 0.15),       # Conv2d(hid, dim_out, 3)
        "c2_b": rnd(ks[13], (dim_out,), 0.1),
        "res_w": rnd(ks[14], (dim_out, dim, 1, 1), 0.3),       # Conv2d(dim, dim_out, 1)
        "res_b": rnd(ks[15], (dim_out,), 0.1),
    }


if __name__ == "__main__":
    B, dim, dim_out, mult, T, H, W = 2, 4, 8, 2, 8, 16, 16
    key = jax.random.PRNGKey(0)
    kx, kt, kl, kp = jax.random.split(key, 4)
    x = jax.random.normal(kx, (B, dim, H, W), dtype=jnp.float32)
    time_emb = jax.random.normal(kt, (B, T), dtype=jnp.float32)
    label_emb = jax.random.normal(kl, (B, T), dtype=jnp.float32)
    params = init_params(kp, dim, dim_out, mult, T)

    ref = jax.block_until_ready(ref_forward(x, time_emb, label_emb, params))

    # Exercise both the 1-sample-per-step path (v7x 2-TC friendly grid at tiny batch) and
    # the packed 2-samples-per-step path (full sublane occupancy, fewer grid steps).
    for pack in (1, 2):
        fn = jax.jit(lambda xx, tt, ll, _p=pack: convnext_block(
            xx, tt, ll, params, samples_per_step=_p))
        out = jax.block_until_ready(fn(x, time_emb, label_emb))
        assert out.shape == (B, dim_out, H, W)
        if not np.allclose(np.asarray(out), np.asarray(ref), rtol=1e-3, atol=1e-3):
            raise AssertionError(
                f"pack={pack}: mismatch vs reference, "
                f"max abs err={float(jnp.max(jnp.abs(out - ref)))}")
    print("KERNEL_OK")
</pallas_src>

<mosaic_0001>
module attributes {stable_mosaic.version = 11 : i64} {
  func.func @kernel(%arg0: i32, %arg1: memref<1x1x16xf32, #tpu.memory_space<vmem>>, %arg2: memref<1x4x256xf32, #tpu.memory_space<vmem>>, %arg3: memref<4x16xf32, #tpu.memory_space<vmem>>, %arg4: memref<4x4xf32, #tpu.memory_space<vmem>>, %arg5: memref<4x49xf32, #tpu.memory_space<vmem>>, %arg6: memref<7x256xf32, #tpu.memory_space<vmem>>, %arg7: memref<16x36xf32, #tpu.memory_space<vmem>>, %arg8: memref<16x3xf32, #tpu.memory_space<vmem>>, %arg9: memref<8x148xf32, #tpu.memory_space<vmem>>, %arg10: memref<8x1xf32, #tpu.memory_space<vmem>>, %arg11: memref<1x8x256xf32, #tpu.memory_space<vmem>>, %arg12: memref<4x512xf32, #tpu.memory_space<vmem>>, %arg13: memref<16x512xf32, #tpu.memory_space<vmem>>, %arg14: memref<36x256xf32, #tpu.memory_space<vmem>>, %arg15: memref<148x256xf32, #tpu.memory_space<vmem>>) attributes {dimension_semantics = [#tpu.dimension_semantics<parallel>], iteration_bounds = array<i64: 2>, scalar_prefetch = 0 : i64, scratch_operands = 4 : i64, tpu.core_type = #tpu.core_type<tc>, window_params = [{transform_indices = @transform_0, window_bounds = array<i64: 1, 1, 16>}, {transform_indices = @transform_1, window_bounds = array<i64: 1, 4, 256>}, {pipeline_mode = #tpu.pipeline_mode<synchronous>, transform_indices = @transform_2, window_bounds = array<i64: 4, 16>}, {pipeline_mode = #tpu.pipeline_mode<synchronous>, transform_indices = @transform_3, window_bounds = array<i64: 4, 4>}, {pipeline_mode = #tpu.pipeline_mode<synchronous>, transform_indices = @transform_4, window_bounds = array<i64: 4, 49>}, {pipeline_mode = #tpu.pipeline_mode<synchronous>, transform_indices = @transform_5, window_bounds = array<i64: 7, 256>}, {pipeline_mode = #tpu.pipeline_mode<synchronous>, transform_indices = @transform_6, window_bounds = array<i64: 16, 36>}, {pipeline_mode = #tpu.pipeline_mode<synchronous>, transform_indices = @transform_7, window_bounds = array<i64: 16, 3>}, {pipeline_mode = #tpu.pipeline_mode<synchronous>, transform_indices = @transform_8, window_bounds = array<i64: 8, 148>}, {pipeline_mode = #tpu.pipeline_mode<synchronous>, transform_indices = @transform_9, window_bounds = array<i64: 8, 1>}, {transform_indices = @transform_10, window_bounds = array<i64: 1, 8, 256>}]} {
    %cst = arith.constant 0.000000e+00 : f32
    %0 = vector.broadcast %cst : f32 to vector<4x128xf32>
    %c0 = arith.constant 0 : index
    %c0_0 = arith.constant 0 : index
    %1 = vector.load %arg12[%c0, %c0_0] : memref<4x512xf32, #tpu.memory_space<vmem>>, vector<4x128xf32>
    tpu.vector_store %arg12[%c0, %c0_0], %0 {strides = array<i32>} : memref<4x512xf32, #tpu.memory_space<vmem>>, vector<4x128xf32>,
    %cst_1 = arith.constant 0.000000e+00 : f32
    %2 = vector.broadcast %cst_1 : f32 to vector<4x128xf32>
    %c0_2 = arith.constant 0 : index
    %c384 = arith.constant 384 : index
    %3 = vector.load %arg12[%c0_2, %c384] : memref<4x512xf32, #tpu.memory_space<vmem>>, vector<4x128xf32>
    tpu.vector_store %arg12[%c0_2, %c384], %2 {strides = array<i32>} : memref<4x512xf32, #tpu.memory_space<vmem>>, vector<4x128xf32>,
    %cst_3 = arith.constant 0.000000e+00 : f32
    %4 = vector.broadcast %cst_3 : f32 to vector<16x128xf32>
    %c0_4 = arith.constant 0 : index
    %c0_5 = arith.constant 0 : index
    %5 = vector.load %arg13[%c0_4, %c0_5] : memref<16x512xf32, #tpu.memory_space<vmem>>, vector<16x128xf32>
    tpu.vector_store %arg13[%c0_4, %c0_5], %4 {strides = array<i32>} : memref<16x512xf32, #tpu.memory_space<vmem>>, vector<16x128xf32>,
    %cst_6 = arith.constant 0.000000e+00 : f32
    %6 = vector.broadcast %cst_6 : f32 to vector<16x128xf32>
    %c0_7 = arith.constant 0 : index
    %c384_8 = arith.constant 384 : index
    %7 = vector.load %arg13[%c0_7, %c384_8] : memref<16x512xf32, #tpu.memory_space<vmem>>, vector<16x128xf32>
    tpu.vector_store %arg13[%c0_7, %c384_8], %6 {strides = array<i32>} : memref<16x512xf32, #tpu.memory_space<vmem>>, vector<16x128xf32>,
    %c0_9 = arith.constant 0 : index
    %c0_10 = arith.constant 0 : index
    %c0_11 = arith.constant 0 : index
    %8 = vector.load %arg2[%c0_9, %c0_10, %c0_11] : memref<1x4x256xf32, #tpu.memory_space<vmem>>, vector<1x4x256xf32>
    %9 = vector.shape_cast %8 : vector<1x4x256xf32> to vector<4x256xf32>
    %c0_12 = arith.constant 0 : index
    %c128 = arith.constant 128 : index
    %10 = vector.load %arg12[%c0_12, %c128] : memref<4x512xf32, #tpu.memory_space<vmem>>, vector<4x256xf32>
    tpu.vector_store %arg12[%c0_12, %c128], %9 {strides = array<i32>} : memref<4x512xf32, #tpu.memory_space<vmem>>, vector<4x256xf32>,
    %c0_13 = arith.constant 0 : index
    %c0_14 = arith.constant 0 : index
    %11 = vector.load %arg6[%c0_13, %c0_14] : memref<7x256xf32, #tpu.memory_space<vmem>>, vector<1x256xf32>
    %c1 = arith.constant 1 : index
    %c0_15 = arith.constant 0 : index
    %12 = vector.load %arg6[%c1, %c0_15] : memref<7x256xf32, #tpu.memory_space<vmem>>, vector<1x256xf32>
    %c2 = arith.constant 2 : index
    %c0_16 = arith.constant 0 : index
    %13 = vector.load %arg6[%c2, %c0_16] : memref<7x256xf32, #tpu.memory_space<vmem>>, vector<1x256xf32>
    %c4 = arith.constant 4 : index
    %c0_17 = arith.constant 0 : index
    %14 = vector.load %arg6[%c4, %c0_17] : memref<7x256xf32, #tpu.memory_space<vmem>>, vector<1x256xf32>
    %c5 = arith.constant 5 : index
    %c0_18 = arith.constant 0 : index
    %15 = vector.load %arg6[%c5, %c0_18] : memref<7x256xf32, #tpu.memory_space<vmem>>, vector<1x256xf32>
    %c6 = arith.constant 6 : index
    %c0_19 = arith.constant 0 : index
    %16 = vector.load %arg6[%c6, %c0_19] : memref<7x256xf32, #tpu.memory_space<vmem>>, vector<1x256xf32>
    %17 = vector.shape_cast %11 : vector<1x256xf32> to vector<1x256xf32>
    %18 = vector.broadcast %17 : vector<1x256xf32> to vector<4x256xf32>
    %19 = vector.shape_cast %12 : vector<1x256xf32> to vector<1x256xf32>
    %20 = vector.broadcast %19 : vector<1x256xf32> to vector<4x256xf32>
    %21 = vector.shape_cast %13 : vector<1x256xf32> to vector<1x256xf32>
    %22 = vector.broadcast %21 : vector<1x256xf32> to vector<4x256xf32>
    %23 = vector.shape_cast %14 : vector<1x256xf32> to vector<1x256xf32>
    %24 = vector.broadcast %23 : vector<1x256xf32> to vector<4x256xf32>
    %25 = vector.shape_cast %15 : vector<1x256xf32> to vector<1x256xf32>
    %26 = vector.broadcast %25 : vector<1x256xf32> to vector<4x256xf32>
    %27 = vector.shape_cast %16 : vector<1x256xf32> to vector<1x256xf32>
    %28 = vector.broadcast %27 : vector<1x256xf32> to vector<4x256xf32>
    %c0_20 = arith.constant 0 : index
    %c77 = arith.constant 77 : index
    %29 = vector.load %arg12[%c0_20, %c77] : memref<4x512xf32, #tpu.memory_space<vmem>>, vector<4x256xf32>
    %30 = arith.mulf %29, %18 : vector<4x256xf32>
    %c0_21 = arith.constant 0 : index
    %c0_22 = arith.constant 0 : index
    %31 = vector.load %arg5[%c0_21, %c0_22] : memref<4x49xf32, #tpu.memory_space<vmem>>, vector<4x1xf32>
    %32 = vector.broadcast %31 : vector<4x1xf32> to vector<4x256xf32>
    %33 = arith.mulf %32, %30 : vector<4x256xf32>
    %c0_23 = arith.constant 0 : index
    %c78 = arith.constant 78 : index
    %34 = vector.load %arg12[%c0_23, %c78] : memref<4x512xf32, #tpu.memory_space<vmem>>, vector<4x256xf32>
    %35 = arith.mulf %34, %20 : vector<4x256xf32>
    %c0_24 = arith.constant 0 : index
    %c1_25 = arith.constant 1 : index
    %36 = vector.load %arg5[%c0_24, %c1_25] : memref<4x49xf32, #tpu.memory_space<vmem>>, vector<4x1xf32>
    %37 = vector.broadcast %36 : vector<4x1xf32> to vector<4x256xf32>
    %38 = arith.mulf %37, %35 : vector<4x256xf32>
    %39 = arith.addf %33, %38 : vector<4x256xf32>
    %c0_26 = arith.constant 0 : index
    %c79 = arith.constant 79 : index
    %40 = vector.load %arg12[%c0_26, %c79] : memref<4x512xf32, #tpu.memory_space<vmem>>, vector<4x256xf32>
    %41 = arith.mulf %40, %22 : vector<4x256xf32>
    %c0_27 = arith.constant 0 : index
    %c2_28 = arith.constant 2 : index
    %42 = vector.load %arg5[%c0_27, %c2_28] : memref<4x49xf32, #tpu.memory_space<vmem>>, vector<4x1xf32>
    %43 = vector.broadcast %42 : vector<4x1xf32> to vector<4x256xf32>
    %44 = arith.mulf %43, %41 : vector<4x256xf32>
    %45 = arith.addf %39, %44 : vector<4x256xf32>
    %c0_29 = arith.constant 0 : index
    %c80 = arith.constant 80 : index
    %46 = vector.load %arg12[%c0_29, %c80] : memref<4x512xf32, #tpu.memory_space<vmem>>, vector<4x256xf32>
    %c0_30 = arith.constant 0 : index
    %c3 = arith.constant 3 : index
    %47 = vector.load %arg5[%c0_30, %c3] : memref<4x49xf32, #tpu.memory_space<vmem>>, vector<4x1xf32>
    %48 = vector.broadcast %47 : vector<4x1xf32> to vector<4x256xf32>
    %49 = arith.mulf %48, %46 : vector<4x256xf32>
    %50 = arith.addf %45, %49 : vector<4x256xf32>
    %c0_31 = arith.constant 0 : index
    %c81 = arith.constant 81 : index
    %51 = vector.load %arg12[%c0_31, %c81] : memref<4x512xf32, #tpu.memory_space<vmem>>, vector<4x256xf32>
    %52 = arith.mulf %51, %24 : vector<4x256xf32>
    %c0_32 = arith.constant 0 : index
    %c4_33 = arith.constant 4 : index
    %53 = vector.load %arg5[%c0_32, %c4_33] : memref<4x49xf32, #tpu.memory_space<vmem>>, vector<4x1xf32>
    %54 = vector.broadcast %53 : vector<4x1xf32> to vector<4x256xf32>
    %55 = arith.mulf %54, %52 : vector<4x256xf32>
    %56 = arith.addf %50, %55 : vector<4x256xf32>
    %c0_34 = arith.constant 0 : index
    %c82 = arith.constant 82 : index
    %57 = vector.load %arg12[%c0_34, %c82] : memref<4x512xf32, #tpu.memory_space<vmem>>, vector<4x256xf32>
    %58 = arith.mulf %57, %26 : vector<4x256xf32>
    %c0_35 = arith.constant 0 : index
    %c5_36 = arith.constant 5 : index
    %59 = vector.load %arg5[%c0_35, %c5_36] : memref<4x49xf32, #tpu.memory_space<vmem>>, vector<4x1xf32>
    %60 = vector.broadcast %59 : vector<4x1xf32> to vector<4x256xf32>
    %61 = arith.mulf %60, %58 : vector<4x256xf32>
    %62 = arith.addf %56, %61 : vector<4x256xf32>
    %c0_37 = arith.constant 0 : index
    %c83 = arith.constant 83 : index
    %63 = vector.load %arg12[%c0_37, %c83] : memref<4x512xf32, #tpu.memory_space<vmem>>, vector<4x256xf32>
    %64 = arith.mulf %63, %28 : vector<4x256xf32>
    %c0_38 = arith.constant 0 : index
    %c6_39 = arith.constant 6 : index
    %65 = vector.load %arg5[%c0_38, %c6_39] : memref<4x49xf32, #tpu.memory_space<vmem>>, vector<4x1xf32>
    %66 = vector.broadcast %65 : vector<4x1xf32> to vector<4x256xf32>
    %67 = arith.mulf %66, %64 : vector<4x256xf32>
    %68 = arith.addf %62, %67 : vector<4x256xf32>
    %c0_40 = arith.constant 0 : index
    %c93 = arith.constant 93 : index
    %69 = vector.load %arg12[%c0_40, %c93] : memref<4x512xf32, #tpu.memory_space<vmem>>, vector<4x256xf32>
    %70 = arith.mulf %69, %18 : vector<4x256xf32>
    %c0_41 = arith.constant 0 : index
    %c7 = arith.constant 7 : index
    %71 = vector.load %arg5[%c0_41, %c7] : memref<4x49xf32, #tpu.memory_space<vmem>>, vector<4x1xf32>
    %72 = vector.broadcast %71 : vector<4x1xf32> to vector<4x256xf32>
    %73 = arith.mulf %72, %70 : vector<4x256xf32>
    %c0_42 = arith.constant 0 : index
    %c94 = arith.constant 94 : index
    %74 = vector.load %arg12[%c0_42, %c94] : memref<4x512xf32, #tpu.memory_space<vmem>>, vector<4x256xf32>
    %75 = arith.mulf %74, %20 : vector<4x256xf32>
    %c0_43 = arith.constant 0 : index
    %c8 = arith.constant 8 : index
    %76 = vector.load %arg5[%c0_43, %c8] : memref<4x49xf32, #tpu.memory_space<vmem>>, vector<4x1xf32>
    %77 = vector.broadcast %76 : vector<4x1xf32> to vector<4x256xf32>
    %78 = arith.mulf %77, %75 : vector<4x256xf32>
    %79 = arith.addf %73, %78 : vector<4x256xf32>
    %c0_44 = arith.constant 0 : index
    %c95 = arith.constant 95 : index
    %80 = vector.load %arg12[%c0_44, %c95] : memref<4x512xf32, #tpu.memory_space<vmem>>, vector<4x256xf32>
    %81 = arith.mulf %80, %22 : vector<4x256xf32>
    %c0_45 = arith.constant 0 : index
    %c9 = arith.constant 9 : index
    %82 = vector.load %arg5[%c0_45, %c9] : memref<4x49xf32, #tpu.memory_space<vmem>>, vector<4x1xf32>
    %83 = vector.broadcast %82 : vector<4x1xf32> to vector<4x256xf32>
    %84 = arith.mulf %83, %81 : vector<4x256xf32>
    %85 = arith.addf %79, %84 : vector<4x256xf32>
    %c0_46 = arith.constant 0 : index
    %c96 = arith.constant 96 : index
    %86 = vector.load %arg12[%c0_46, %c96] : memref<4x512xf32, #tpu.memory_space<vmem>>, vector<4x256xf32>
    %c0_47 = arith.constant 0 : index
    %c10 = arith.constant 10 : index
    %87 = vector.load %arg5[%c0_47, %c10] : memref<4x49xf32, #tpu.memory_space<vmem>>, vector<4x1xf32>
    %88 = vector.broadcast %87 : vector<4x1xf32> to vector<4x256xf32>
    %89 = arith.mulf %88, %86 : vector<4x256xf32>
    %90 = arith.addf %85, %89 : vector<4x256xf32>
    %c0_48 = arith.constant 0 : index
    %c97 = arith.constant 97 : index
    %91 = vector.load %arg12[%c0_48, %c97] : memref<4x512xf32, #tpu.memory_space<vmem>>, vector<4x256xf32>
    %92 = arith.mulf %91, %24 : vector<4x256xf32>
    %c0_49 = arith.constant 0 : index
    %c11 = arith.constant 11 : index
    %93 = vector.load %arg5[%c0_49, %c11] : memref<4x49xf32, #tpu.memory_space<vmem>>, vector<4x1xf32>
    %94 = vector.broadcast %93 : vector<4x1xf32> to vector<4x256xf32>
    %95 = arith.mulf %94, %92 : vector<4x256xf32>
    %96 = arith.addf %90, %95 : vector<4x256xf32>
    %c0_50 = arith.constant 0 : index
    %c98 = arith.constant 98 : index
    %97 = vector.load %arg12[%c0_50, %c98] : memref<4x512xf32, #tpu.memory_space<vmem>>, vector<4x256xf32>
    %98 = arith.mulf %97, %26 : vector<4x256xf32>
    %c0_51 = arith.constant 0 : index
    %c12 = arith.constant 12 : index
    %99 = vector.load %arg5[%c0_51, %c12] : memref<4x49xf32, #tpu.memory_space<vmem>>, vector<4x1xf32>
    %100 = vector.broadcast %99 : vector<4x1xf32> to vector<4x256xf32>
    %101 = arith.mulf %100, %98 : vector<4x256xf32>
    %102 = arith.addf %96, %101 : vector<4x256xf32>
    %c0_52 = arith.constant 0 : index
    %c99 = arith.constant 99 : index
    %103 = vector.load %arg12[%c0_52, %c99] : memref<4x512xf32, #tpu.memory_space<vmem>>, vector<4x256xf32>
    %104 = arith.mulf %103, %28 : vector<4x256xf32>
    %c0_53 = arith.constant 0 : index
    %c13 = arith.constant 13 : index
    %105 = vector.load %arg5[%c0_53, %c13] : memref<4x49xf32, #tpu.memory_space<vmem>>, vector<4x1xf32>
    %106 = vector.broadcast %105 : vector<4x1xf32> to vector<4x256xf32>
    %107 = arith.mulf %106, %104 : vector<4x256xf32>
    %108 = arith.addf %102, %107 : vector<4x256xf32>
    %c0_54 = arith.constant 0 : index
    %c109 = arith.constant 109 : index
    %109 = vector.load %arg12[%c0_54, %c109] : memref<4x512xf32, #tpu.memory_space<vmem>>, vector<4x256xf32>
    %110 = arith.mulf %109, %18 : vector<4x256xf32>
    %c0_55 = arith.constant 0 : index
    %c14 = arith.constant 14 : index
    %111 = vector.load %arg5[%c0_55, %c14] : memref<4x49xf32, #tpu.memory_space<vmem>>, vector<4x1xf32>
    %112 = vector.broadcast %111 : vector<4x1xf32> to vector<4x256xf32>
    %113 = arith.mulf %112, %110 : vector<4x256xf32>
    %c0_56 = arith.constant 0 : index
    %c110 = arith.constant 110 : index
    %114 = vector.load %arg12[%c0_56, %c110] : memref<4x512xf32, #tpu.memory_space<vmem>>, vector<4x256xf32>
    %115 = arith.mulf %114, %20 : vector<4x256xf32>
    %c0_57 = arith.constant 0 : index
    %c15 = arith.constant 15 : index
    %116 = vector.load %arg5[%c0_57, %c15] : memref<4x49xf32, #tpu.memory_space<vmem>>, vector<4x1xf32>
    %117 = vector.broadcast %116 : vector<4x1xf32> to vector<4x256xf32>
    %118 = arith.mulf %117, %115 : vector<4x256xf32>
    %119 = arith.addf %113, %118 : vector<4x256xf32>
    %c0_58 = arith.constant 0 : index
    %c111 = arith.constant 111 : index
    %120 = vector.load %arg12[%c0_58, %c111] : memref<4x512xf32, #tpu.memory_space<vmem>>, vector<4x256xf32>
    %121 = arith.mulf %120, %22 : vector<4x256xf32>
    %c0_59 = arith.constant 0 : index
    %c16 = arith.constant 16 : index
    %122 = vector.load %arg5[%c0_59, %c16] : memref<4x49xf32, #tpu.memory_space<vmem>>, vector<4x1xf32>
    %123 = vector.broadcast %122 : vector<4x1xf32> to vector<4x256xf32>
    %124 = arith.mulf %123, %121 : vector<4x256xf32>
    %125 = arith.addf %119, %124 : vector<4x256xf32>
    %c0_60 = arith.constant 0 : index
    %c112 = arith.constant 112 : index
    %126 = vector.load %arg12[%c0_60, %c112] : memref<4x512xf32, #tpu.memory_space<vmem>>, vector<4x256xf32>
    %c0_61 = arith.constant 0 : index
    %c17 = arith.constant 17 : index
    %127 = vector.load %arg5[%c0_61, %c17] : memref<4x49xf32, #tpu.memory_space<vmem>>, vector<4x1xf32>
    %128 = vector.broadcast %127 : vector<4x1xf32> to vector<4x256xf32>
    %129 = arith.mulf %128, %126 : vector<4x256xf32>
    %130 = arith.addf %125, %129 : vector<4x256xf32>
    %c0_62 = arith.constant 0 : index
    %c113 = arith.constant 113 : index
    %131 = vector.load %arg12[%c0_62, %c113] : memref<4x512xf32, #tpu.memory_space<vmem>>, vector<4x256xf32>
    %132 = arith.mulf %131, %24 : vector<4x256xf32>
    %c0_63 = arith.constant 0 : index
    %c18 = arith.constant 18 : index
    %133 = vector.load %arg5[%c0_63, %c18] : memref<4x49xf32, #tpu.memory_space<vmem>>, vector<4x1xf32>
    %134 = vector.broadcast %133 : vector<4x1xf32> to vector<4x256xf32>
    %135 = arith.mulf %134, %132 : vector<4x256xf32>
    %136 = arith.addf %130, %135 : vector<4x256xf32>
    %c0_64 = arith.constant 0 : index
    %c114 = arith.constant 114 : index
    %137 = vector.load %arg12[%c0_64, %c114] : memref<4x512xf32, #tpu.memory_space<vmem>>, vector<4x256xf32>
    %138 = arith.mulf %137, %26 : vector<4x256xf32>
    %c0_65 = arith.constant 0 : index
    %c19 = arith.constant 19 : index
    %139 = vector.load %arg5[%c0_65, %c19] : memref<4x49xf32, #tpu.memory_space<vmem>>, vector<4x1xf32>
    %140 = vector.broadcast %139 : vector<4x1xf32> to vector<4x256xf32>
    %141 = arith.mulf %140, %138 : vector<4x256xf32>
    %142 = arith.addf %136, %141 : vector<4x256xf32>
    %c0_66 = arith.constant 0 : index
    %c115 = arith.constant 115 : index
    %143 = vector.load %arg12[%c0_66, %c115] : memref<4x512xf32, #tpu.memory_space<vmem>>, vector<4x256xf32>
    %144 = arith.mulf %143, %28 : vector<4x256xf32>
    %c0_67 = arith.constant 0 : index
    %c20 = arith.constant 20 : index
    %145 = vector.load %arg5[%c0_67, %c20] : memref<4x49xf32, #tpu.memory_space<vmem>>, vector<4x1xf32>
    %146 = vector.broadcast %145 : vector<4x1xf32> to vector<4x256xf32>
    %147 = arith.mulf %146, %144 : vector<4x256xf32>
    %148 = arith.addf %142, %147 : vector<4x256xf32>
    %c0_68 = arith.constant 0 : index
    %c125 = arith.constant 125 : index
    %149 = vector.load %arg12[%c0_68, %c125] : memref<4x512xf32, #tpu.memory_space<vmem>>, vector<4x256xf32>
    %150 = arith.mulf %149, %18 : vector<4x256xf32>
    %c0_69 = arith.constant 0 : index
    %c21 = arith.constant 21 : index
    %151 = vector.load %arg5[%c0_69, %c21] : memref<4x49xf32, #tpu.memory_space<vmem>>, vector<4x1xf32>
    %152 = vector.broadcast %151 : vector<4x1xf32> to vector<4x256xf32>
    %153 = arith.mulf %152, %150 : vector<4x256xf32>
    %c0_70 = arith.constant 0 : index
    %c126 = arith.constant 126 : index
    %154 = vector.load %arg12[%c0_70, %c126] : memref<4x512xf32, #tpu.memory_space<vmem>>, vector<4x256xf32>
    %155 = arith.mulf %154, %20 : vector<4x256xf32>
    %c0_71 = arith.constant 0 : index
    %c22 = arith.constant 22 : index
    %156 = vector.load %arg5[%c0_71, %c22] : memref<4x49xf32, #tpu.memory_space<vmem>>, vector<4x1xf32>
    %157 = vector.broadcast %156 : vector<4x1xf32> to vector<4x256xf32>
    %158 = arith.mulf %157, %155 : vector<4x256xf32>
    %159 = arith.addf %153, %158 : vector<4x256xf32>
    %c0_72 = arith.constant 0 : index
    %c127 = arith.constant 127 : index
    %160 = vector.load %arg12[%c0_72, %c127] : memref<4x512xf32, #tpu.memory_space<vmem>>, vector<4x256xf32>
    %161 = arith.mulf %160, %22 : vector<4x256xf32>
    %c0_73 = arith.constant 0 : index
    %c23 = arith.constant 23 : index
    %162 = vector.load %arg5[%c0_73, %c23] : memref<4x49xf32, #tpu.memory_space<vmem>>, vector<4x1xf32>
    %163 = vector.broadcast %162 : vector<4x1xf32> to vector<4x256xf32>
    %164 = arith.mulf %163, %161 : vector<4x256xf32>
    %165 = arith.addf %159, %164 : vector<4x256xf32>
    %c0_74 = arith.constant 0 : index
    %c128_75 = arith.constant 128 : index
    %166 = vector.load %arg12[%c0_74, %c128_75] : memref<4x512xf32, #tpu.memory_space<vmem>>, vector<4x256xf32>
    %c0_76 = arith.constant 0 : index
    %c24 = arith.constant 24 : index
    %167 = vector.load %arg5[%c0_76, %c24] : memref<4x49xf32, #tpu.memory_space<vmem>>, vector<4x1xf32>
    %168 = vector.broadcast %167 : vector<4x1xf32> to vector<4x256xf32>
    %169 = arith.mulf %168, %166 : vector<4x256xf32>
    %170 = arith.addf %165, %169 : vector<4x256xf32>
    %c0_77 = arith.constant 0 : index
    %c129 = arith.constant 129 : index
    %171 = vector.load %arg12[%c0_77, %c129] : memref<4x512xf32, #tpu.memory_space<vmem>>, vector<4x256xf32>
    %172 = arith.mulf %171, %24 : vector<4x256xf32>
    %c0_78 = arith.constant 0 : index
    %c25 = arith.constant 25 : index
    %173 = vector.load %arg5[%c0_78, %c25] : memref<4x49xf32, #tpu.memory_space<vmem>>, vector<4x1xf32>
    %174 = vector.broadcast %173 : vector<4x1xf32> to vector<4x256xf32>
    %175 = arith.mulf %174, %172 : vector<4x256xf32>
    %176 = arith.addf %170, %175 : vector<4x256xf32>
    %c0_79 = arith.constant 0 : index
    %c130 = arith.constant 130 : index
    %177 = vector.load %arg12[%c0_79, %c130] : memref<4x512xf32, #tpu.memory_space<vmem>>, vector<4x256xf32>
    %178 = arith.mulf %177, %26 : vector<4x256xf32>
    %c0_80 = arith.constant 0 : index
    %c26 = arith.constant 26 : index
    %179 = vector.load %arg5[%c0_80, %c26] : memref<4x49xf32, #tpu.memory_space<vmem>>, vector<4x1xf32>
    %180 = vector.broadcast %179 : vector<4x1xf32> to vector<4x256xf32>
    %181 = arith.mulf %180, %178 : vector<4x256xf32>
    %182 = arith.addf %176, %181 : vector<4x256xf32>
    %c0_81 = arith.constant 0 : index
    %c131 = arith.constant 131 : index
    %183 = vector.load %arg12[%c0_81, %c131] : memref<4x512xf32, #tpu.memory_space<vmem>>, vector<4x256xf32>
    %184 = arith.mulf %183, %28 : vector<4x256xf32>
    %c0_82 = arith.constant 0 : index
    %c27 = arith.constant 27 : index
    %185 = vector.load %arg5[%c0_82, %c27] : memref<4x49xf32, #tpu.memory_space<vmem>>, vector<4x1xf32>
    %186 = vector.broadcast %185 : vector<4x1xf32> to vector<4x256xf32>
    %187 = arith.mulf %186, %184 : vector<4x256xf32>
    %188 = arith.addf %182, %187 : vector<4x256xf32>
    %c0_83 = arith.constant 0 : index
    %c141 = arith.constant 141 : index
    %189 = vector.load %arg12[%c0_83, %c141] : memref<4x512xf32, #tpu.memory_space<vmem>>, vector<4x256xf32>
    %190 = arith.mulf %189, %18 : vector<4x256xf32>
    %c0_84 = arith.constant 0 : index
    %c28 = arith.constant 28 : index
    %191 = vector.load %arg5[%c0_84, %c28] : memref<4x49xf32, #tpu.memory_space<vmem>>, vector<4x1xf32>
    %192 = vector.broadcast %191 : vector<4x1xf32> to vector<4x256xf32>
    %193 = arith.mulf %192, %190 : vector<4x256xf32>
    %c0_85 = arith.constant 0 : index
    %c142 = arith.constant 142 : index
    %194 = vector.load %arg12[%c0_85, %c142] : memref<4x512xf32, #tpu.memory_space<vmem>>, vector<4x256xf32>
    %195 = arith.mulf %194, %20 : vector<4x256xf32>
    %c0_86 = arith.constant 0 : index
    %c29 = arith.constant 29 : index
    %196 = vector.load %arg5[%c0_86, %c29] : memref<4x49xf32, #tpu.memory_space<vmem>>, vector<4x1xf32>
    %197 = vector.broadcast %196 : vector<4x1xf32> to vector<4x256xf32>
    %198 = arith.mulf %197, %195 : vector<4x256xf32>
    %199 = arith.addf %193, %198 : vector<4x256xf32>
    %c0_87 = arith.constant 0 : index
    %c143 = arith.constant 143 : index
    %200 = vector.load %arg12[%c0_87, %c143] : memref<4x512xf32, #tpu.memory_space<vmem>>, vector<4x256xf32>
    %201 = arith.mulf %200, %22 : vector<4x256xf32>
    %c0_88 = arith.constant 0 : index
    %c30 = arith.constant 30 : index
    %202 = vector.load %arg5[%c0_88, %c30] : memref<4x49xf32, #tpu.memory_space<vmem>>, vector<4x1xf32>
    %203 = vector.broadcast %202 : vector<4x1xf32> to vector<4x256xf32>
    %204 = arith.mulf %203, %201 : vector<4x256xf32>
    %205 = arith.addf %199, %204 : vector<4x256xf32>
    %c0_89 = arith.constant 0 : index
    %c144 = arith.constant 144 : index
    %206 = vector.load %arg12[%c0_89, %c144] : memref<4x512xf32, #tpu.memory_space<vmem>>, vector<4x256xf32>
    %c0_90 = arith.constant 0 : index
    %c31 = arith.constant 31 : index
    %207 = vector.load %arg5[%c0_90, %c31] : memref<4x49xf32, #tpu.memory_space<vmem>>, vector<4x1xf32>
    %208 = vector.broadcast %207 : vector<4x1xf32> to vector<4x256xf32>
    %209 = arith.mulf %208, %206 : vector<4x256xf32>
    %210 = arith.addf %205, %209 : vector<4x256xf32>
    %c0_91 = arith.constant 0 : index
    %c145 = arith.constant 145 : index
    %211 = vector.load %arg12[%c0_91, %c145] : memref<4x512xf32, #tpu.memory_space<vmem>>, vector<4x256xf32>
    %212 = arith.mulf %211, %24 : vector<4x256xf32>
    %c0_92 = arith.constant 0 : index
    %c32 = arith.constant 32 : index
    %213 = vector.load %arg5[%c0_92, %c32] : memref<4x49xf32, #tpu.memory_space<vmem>>, vector<4x1xf32>
    %214 = vector.broadcast %213 : vector<4x1xf32> to vector<4x256xf32>
    %215 = arith.mulf %214, %212 : vector<4x256xf32>
    %216 = arith.addf %210, %215 : vector<4x256xf32>
    %c0_93 = arith.constant 0 : index
    %c146 = arith.constant 146 : index
    %217 = vector.load %arg12[%c0_93, %c146] : memref<4x512xf32, #tpu.memory_space<vmem>>, vector<4x256xf32>
    %218 = arith.mulf %217, %26 : vector<4x256xf32>
    %c0_94 = arith.constant 0 : index
    %c33 = arith.constant 33 : index
    %219 = vector.load %arg5[%c0_94, %c33] : memref<4x49xf32, #tpu.memory_space<vmem>>, vector<4x1xf32>
    %220 = vector.broadcast %219 : vector<4x1xf32> to vector<4x256xf32>
    %221 = arith.mulf %220, %218 : vector<4x256xf32>
    %222 = arith.addf %216, %221 : vector<4x256xf32>
    %c0_95 = arith.constant 0 : index
    %c147 = arith.constant 147 : index
    %223 = vector.load %arg12[%c0_95, %c147] : memref<4x512xf32, #tpu.memory_space<vmem>>, vector<4x256xf32>
    %224 = arith.mulf %223, %28 : vector<4x256xf32>
    %c0_96 = arith.constant 0 : index
    %c34 = arith.constant 34 : index
    %225 = vector.load %arg5[%c0_96, %c34] : memref<4x49xf32, #tpu.memory_space<vmem>>, vector<4x1xf32>
    %226 = vector.broadcast %225 : vector<4x1xf32> to vector<4x256xf32>
    %227 = arith.mulf %226, %224 : vector<4x256xf32>
    %228 = arith.addf %222, %227 : vector<4x256xf32>
    %c0_97 = arith.constant 0 : index
    %c157 = arith.constant 157 : index
    %229 = vector.load %arg12[%c0_97, %c157] : memref<4x512xf32, #tpu.memory_space<vmem>>, vector<4x256xf32>
    %230 = arith.mulf %229, %18 : vector<4x256xf32>
    %c0_98 = arith.constant 0 : index
    %c35 = arith.constant 35 : index
    %231 = vector.load %arg5[%c0_98, %c35] : memref<4x49xf32, #tpu.memory_space<vmem>>, vector<4x1xf32>
    %232 = vector.broadcast %231 : vector<4x1xf32> to vector<4x256xf32>
    %233 = arith.mulf %232, %230 : vector<4x256xf32>
    %c0_99 = arith.constant 0 : index
    %c158 = arith.constant 158 : index
    %234 = vector.load %arg12[%c0_99, %c158] : memref<4x512xf32, #tpu.memory_space<vmem>>, vector<4x256xf32>
    %235 = arith.mulf %234, %20 : vector<4x256xf32>
    %c0_100 = arith.constant 0 : index
    %c36 = arith.constant 36 : index
    %236 = vector.load %arg5[%c0_100, %c36] : memref<4x49xf32, #tpu.memory_space<vmem>>, vector<4x1xf32>
    %237 = vector.broadcast %236 : vector<4x1xf32> to vector<4x256xf32>
    %238 = arith.mulf %237, %235 : vector<4x256xf32>
    %239 = arith.addf %233, %238 : vector<4x256xf32>
    %c0_101 = arith.constant 0 : index
    %c159 = arith.constant 159 : index
    %240 = vector.load %arg12[%c0_101, %c159] : memref<4x512xf32, #tpu.memory_space<vmem>>, vector<4x256xf32>
    %241 = arith.mulf %240, %22 : vector<4x256xf32>
    %c0_102 = arith.constant 0 : index
    %c37 = arith.constant 37 : index
    %242 = vector.load %arg5[%c0_102, %c37] : memref<4x49xf32, #tpu.memory_space<vmem>>, vector<4x1xf32>
    %243 = vector.broadcast %242 : vector<4x1xf32> to vector<4x256xf32>
    %244 = arith.mulf %243, %241 : vector<4x256xf32>
    %245 = arith.addf %239, %244 : vector<4x256xf32>
    %c0_103 = arith.constant 0 : index
    %c160 = arith.constant 160 : index
    %246 = vector.load %arg12[%c0_103, %c160] : memref<4x512xf32, #tpu.memory_space<vmem>>, vector<4x256xf32>
    %c0_104 = arith.constant 0 : index
    %c38 = arith.constant 38 : index
    %247 = vector.load %arg5[%c0_104, %c38] : memref<4x49xf32, #tpu.memory_space<vmem>>, vector<4x1xf32>
    %248 = vector.broadcast %247 : vector<4x1xf32> to vector<4x256xf32>
    %249 = arith.mulf %248, %246 : vector<4x256xf32>
    %250 = arith.addf %245, %249 : vector<4x256xf32>
    %c0_105 = arith.constant 0 : index
    %c161 = arith.constant 161 : index
    %251 = vector.load %arg12[%c0_105, %c161] : memref<4x512xf32, #tpu.memory_space<vmem>>, vector<4x256xf32>
    %252 = arith.mulf %251, %24 : vector<4x256xf32>
    %c0_106 = arith.constant 0 : index
    %c39 = arith.constant 39 : index
    %253 = vector.load %arg5[%c0_106, %c39] : memref<4x49xf32, #tpu.memory_space<vmem>>, vector<4x1xf32>
    %254 = vector.broadcast %253 : vector<4x1xf32> to vector<4x256xf32>
    %255 = arith.mulf %254, %252 : vector<4x256xf32>
    %256 = arith.addf %250, %255 : vector<4x256xf32>
    %c0_107 = arith.constant 0 : index
    %c162 = arith.constant 162 : index
    %257 = vector.load %arg12[%c0_107, %c162] : memref<4x512xf32, #tpu.memory_space<vmem>>, vector<4x256xf32>
    %258 = arith.mulf %257, %26 : vector<4x256xf32>
    %c0_108 = arith.constant 0 : index
    %c40 = arith.constant 40 : index
    %259 = vector.load %arg5[%c0_108, %c40] : memref<4x49xf32, #tpu.memory_space<vmem>>, vector<4x1xf32>
    %260 = vector.broadcast %259 : vector<4x1xf32> to vector<4x256xf32>
    %261 = arith.mulf %260, %258 : vector<4x256xf32>
    %262 = arith.addf %256, %261 : vector<4x256xf32>
    %c0_109 = arith.constant 0 : index
    %c163 = arith.constant 163 : index
    %263 = vector.load %arg12[%c0_109, %c163] : memref<4x512xf32, #tpu.memory_space<vmem>>, vector<4x256xf32>
    %264 = arith.mulf %263, %28 : vector<4x256xf32>
    %c0_110 = arith.constant 0 : index
    %c41 = arith.constant 41 : index
    %265 = vector.load %arg5[%c0_110, %c41] : memref<4x49xf32, #tpu.memory_space<vmem>>, vector<4x1xf32>
    %266 = vector.broadcast %265 : vector<4x1xf32> to vector<4x256xf32>
    %267 = arith.mulf %266, %264 : vector<4x256xf32>
    %268 = arith.addf %262, %267 : vector<4x256xf32>
    %c0_111 = arith.constant 0 : index
    %c173 = arith.constant 173 : index
    %269 = vector.load %arg12[%c0_111, %c173] : memref<4x512xf32, #tpu.memory_space<vmem>>, vector<4x256xf32>
    %270 = arith.mulf %269, %18 : vector<4x256xf32>
    %c0_112 = arith.constant 0 : index
    %c42 = arith.constant 42 : index
    %271 = vector.load %arg5[%c0_112, %c42] : memref<4x49xf32, #tpu.memory_space<vmem>>, vector<4x1xf32>
    %272 = vector.broadcast %271 : vector<4x1xf32> to vector<4x256xf32>
    %273 = arith.mulf %272, %270 : vector<4x256xf32>
    %c0_113 = arith.constant 0 : index
    %c174 = arith.constant 174 : index
    %274 = vector.load %arg12[%c0_113, %c174] : memref<4x512xf32, #tpu.memory_space<vmem>>, vector<4x256xf32>
    %275 = arith.mulf %274, %20 : vector<4x256xf32>
    %c0_114 = arith.constant 0 : index
    %c43 = arith.constant 43 : index
    %276 = vector.load %arg5[%c0_114, %c43] : memref<4x49xf32, #tpu.memory_space<vmem>>, vector<4x1xf32>
    %277 = vector.broadcast %276 : vector<4x1xf32> to vector<4x256xf32>
    %278 = arith.mulf %277, %275 : vector<4x256xf32>
    %279 = arith.addf %273, %278 : vector<4x256xf32>
    %c0_115 = arith.constant 0 : index
    %c175 = arith.constant 175 : index
    %280 = vector.load %arg12[%c0_115, %c175] : memref<4x512xf32, #tpu.memory_space<vmem>>, vector<4x256xf32>
    %281 = arith.mulf %280, %22 : vector<4x256xf32>
    %c0_116 = arith.constant 0 : index
    %c44 = arith.constant 44 : index
    %282 = vector.load %arg5[%c0_116, %c44] : memref<4x49xf32, #tpu.memory_space<vmem>>, vector<4x1xf32>
    %283 = vector.broadcast %282 : vector<4x1xf32> to vector<4x256xf32>
    %284 = arith.mulf %283, %281 : vector<4x256xf32>
    %285 = arith.addf %279, %284 : vector<4x256xf32>
    %c0_117 = arith.constant 0 : index
    %c176 = arith.constant 176 : index
    %286 = vector.load %arg12[%c0_117, %c176] : memref<4x512xf32, #tpu.memory_space<vmem>>, vector<4x256xf32>
    %c0_118 = arith.constant 0 : index
    %c45 = arith.constant 45 : index
    %287 = vector.load %arg5[%c0_118, %c45] : memref<4x49xf32, #tpu.memory_space<vmem>>, vector<4x1xf32>
    %288 = vector.broadcast %287 : vector<4x1xf32> to vector<4x256xf32>
    %289 = arith.mulf %288, %286 : vector<4x256xf32>
    %290 = arith.addf %285, %289 : vector<4x256xf32>
    %c0_119 = arith.constant 0 : index
    %c177 = arith.constant 177 : index
    %291 = vector.load %arg12[%c0_119, %c177] : memref<4x512xf32, #tpu.memory_space<vmem>>, vector<4x256xf32>
    %292 = arith.mulf %291, %24 : vector<4x256xf32>
    %c0_120 = arith.constant 0 : index
    %c46 = arith.constant 46 : index
    %293 = vector.load %arg5[%c0_120, %c46] : memref<4x49xf32, #tpu.memory_space<vmem>>, vector<4x1xf32>
    %294 = vector.broadcast %293 : vector<4x1xf32> to vector<4x256xf32>
    %295 = arith.mulf %294, %292 : vector<4x256xf32>
    %296 = arith.addf %290, %295 : vector<4x256xf32>
    %c0_121 = arith.constant 0 : index
    %c178 = arith.constant 178 : index
    %297 = vector.load %arg12[%c0_121, %c178] : memref<4x512xf32, #tpu.memory_space<vmem>>, vector<4x256xf32>
    %298 = arith.mulf %297, %26 : vector<4x256xf32>
    %c0_122 = arith.constant 0 : index
    %c47 = arith.constant 47 : index
    %299 = vector.load %arg5[%c0_122, %c47] : memref<4x49xf32, #tpu.memory_space<vmem>>, vector<4x1xf32>
    %300 = vector.broadcast %299 : vector<4x1xf32> to vector<4x256xf32>
    %301 = arith.mulf %300, %298 : vector<4x256xf32>
    %302 = arith.addf %296, %301 : vector<4x256xf32>
    %c0_123 = arith.constant 0 : index
    %c179 = arith.constant 179 : index
    %303 = vector.load %arg12[%c0_123, %c179] : memref<4x512xf32, #tpu.memory_space<vmem>>, vector<4x256xf32>
    %304 = arith.mulf %303, %28 : vector<4x256xf32>
    %c0_124 = arith.constant 0 : index
    %c48 = arith.constant 48 : index
    %305 = vector.load %arg5[%c0_124, %c48] : memref<4x49xf32, #tpu.memory_space<vmem>>, vector<4x1xf32>
    %306 = vector.broadcast %305 : vector<4x1xf32> to vector<4x256xf32>
    %307 = arith.mulf %306, %304 : vector<4x256xf32>
    %308 = arith.addf %302, %307 : vector<4x256xf32>
    %309 = arith.addf %68, %108 : vector<4x256xf32>
    %310 = arith.addf %148, %188 : vector<4x256xf32>
    %311 = arith.addf %309, %310 : vector<4x256xf32>
    %312 = arith.addf %228, %268 : vector<4x256xf32>
    %313 = arith.addf %312, %308 : vector<4x256xf32>
    %314 = arith.addf %311, %313 : vector<4x256xf32>
    %315 = vector.shape_cast %13 : vector<1x256xf32> to vector<1x256xf32>
    %316 = vector.broadcast %315 : vector<1x256xf32> to vector<4x256xf32>
    %317 = vector.shape_cast %14 : vector<1x256xf32> to vector<1x256xf32>
    %318 = vector.broadcast %317 : vector<1x256xf32> to vector<4x256xf32>
    %319 = vector.shape_cast %13 : vector<1x256xf32> to vector<1x256xf32>
    %320 = vector.broadcast %319 : vector<1x256xf32> to vector<16x256xf32>
    %321 = vector.shape_cast %14 : vector<1x256xf32> to vector<1x256xf32>
    %322 = vector.broadcast %321 : vector<1x256xf32> to vector<16x256xf32>
    %c0_125 = arith.constant 0 : index
    %c0_126 = arith.constant 0 : index
    %c0_127 = arith.constant 0 : index
    %323 = vector.load %arg1[%c0_125, %c0_126, %c0_127] : memref<1x1x16xf32, #tpu.memory_space<vmem>>, vector<1x1x16xf32>
    %cst_128 = arith.constant 5.000000e-01 : f32
    %324 = vector.broadcast %cst_128 : f32 to vector<1x1x16xf32>
    %325 = arith.mulf %324, %323 : vector<1x1x16xf32>
    %cst_129 = arith.constant 0.707106769 : f32
    %326 = vector.broadcast %cst_129 : f32 to vector<1x1x16xf32>
    %327 = arith.mulf %323, %326 : vector<1x1x16xf32>
    %cst_130 = arith.constant 0.000000e+00 : f32
    %328 = vector.broadcast %cst_130 : f32 to vector<1x1x16xf32>
    %329 = arith.cmpf olt, %327, %328 : vector<1x1x16xf32>
    %cst_131 = arith.constant -1.000000e+00 : f32
    %cst_132 = arith.constant 1.000000e+00 : f32
    %330 = vector.broadcast %cst_131 : f32 to vector<1x1x16xf32>
    %331 = vector.broadcast %cst_132 : f32 to vector<1x1x16xf32>
    %332 = arith.select %329, %330, %331 : vector<1x1x16xi1>, vector<1x1x16xf32>
    %333 = math.absf %327 : vector<1x1x16xf32>
    %cst_133 = arith.constant 0.327591091 : f32
    %334 = vector.broadcast %cst_133 : f32 to vector<1x1x16xf32>
    %335 = arith.mulf %334, %333 : vector<1x1x16xf32>
    %cst_134 = arith.constant 1.000000e+00 : f32
    %336 = vector.broadcast %cst_134 : f32 to vector<1x1x16xf32>
    %337 = arith.addf %336, %335 : vector<1x1x16xf32>
    %cst_135 = arith.constant 1.000000e+00 : f32
    %338 = vector.broadcast %cst_135 : f32 to vector<1x1x16xf32>
    %339 = arith.divf %338, %337 : vector<1x1x16xf32>
    %cst_136 = arith.constant 1.06140542 : f32
    %340 = vector.broadcast %cst_136 : f32 to vector<1x1x16xf32>
    %341 = arith.mulf %340, %339 : vector<1x1x16xf32>
    %cst_137 = arith.constant -1.45315206 : f32
    %342 = vector.broadcast %cst_137 : f32 to vector<1x1x16xf32>
    %343 = arith.addf %341, %342 : vector<1x1x16xf32>
    %344 = arith.mulf %343, %339 : vector<1x1x16xf32>
    %cst_138 = arith.constant 1.42141378 : f32
    %345 = vector.broadcast %cst_138 : f32 to vector<1x1x16xf32>
    %346 = arith.addf %344, %345 : vector<1x1x16xf32>
    %347 = arith.mulf %346, %339 : vector<1x1x16xf32>
    %cst_139 = arith.constant -0.284496725 : f32
    %348 = vector.broadcast %cst_139 : f32 to vector<1x1x16xf32>
    %349 = arith.addf %347, %348 : vector<1x1x16xf32>
    %350 = arith.mulf %349, %339 : vector<1x1x16xf32>
    %cst_140 = arith.constant 0.254829586 : f32
    %351 = vector.broadcast %cst_140 : f32 to vector<1x1x16xf32>
    %352 = arith.addf %350, %351 : vector<1x1x16xf32>
    %353 = arith.mulf %352, %339 : vector<1x1x16xf32>
    %cst_141 = arith.constant 0.000000e+00 : f32
    %354 = vector.broadcast %cst_141 : f32 to vector<1x1x16xf32>
    %355 = arith.subf %354, %333 : vector<1x1x16xf32>
    %356 = arith.mulf %355, %333 : vector<1x1x16xf32>
    %357 = math.exp %356 : vector<1x1x16xf32>
    %358 = arith.mulf %353, %357 : vector<1x1x16xf32>
    %cst_142 = arith.constant 1.000000e+00 : f32
    %359 = vector.broadcast %cst_142 : f32 to vector<1x1x16xf32>
    %360 = arith.subf %359, %358 : vector<1x1x16xf32>
    %361 = arith.mulf %332, %360 : vector<1x1x16xf32>
    %cst_143 = arith.constant 1.000000e+00 : f32
    %362 = vector.broadcast %cst_143 : f32 to vector<1x1x16xf32>
    %363 = arith.addf %362, %361 : vector<1x1x16xf32>
    %364 = arith.mulf %325, %363 : vector<1x1x16xf32>
    %c0_144 = arith.constant 0 : index
    %c0_145 = arith.constant 0 : index
    %365 = vector.load %arg3[%c0_144, %c0_145] : memref<4x16xf32, #tpu.memory_space<vmem>>, vector<4x16xf32>
    %366 = vector.shape_cast %364 : vector<1x1x16xf32> to vector<1x16xf32>
    %367 = vector.broadcast %366 : vector<1x16xf32> to vector<4x16xf32>
    %368 = arith.mulf %365, %367 : vector<4x16xf32>
    %cst_146 = arith.constant dense<0.000000e+00> : vector<4xf32>
    %369 = vector.multi_reduction <add>, %368, %cst_146 [1] : vector<4x16xf32> to vector<4xf32>
    %370 = vector.shape_cast %369 : vector<4xf32> to vector<4x1xf32>
    %c0_147 = arith.constant 0 : index
    %c1_148 = arith.constant 1 : index
    %371 = vector.load %arg4[%c0_147, %c1_148] : memref<4x4xf32, #tpu.memory_space<vmem>>, vector<4x1xf32>
    %372 = vector.broadcast %371 : vector<4x1xf32> to vector<4x256xf32>
    %373 = arith.addf %314, %372 : vector<4x256xf32>
    %374 = vector.broadcast %370 : vector<4x1xf32> to vector<4x256xf32>
    %375 = arith.addf %373, %374 : vector<4x256xf32>
    %c0_149 = arith.constant 0 : index
    %c0_150 = arith.constant 0 : index
    %376 = vector.load %arg4[%c0_149, %c0_150] : memref<4x4xf32, #tpu.memory_space<vmem>>, vector<4x1xf32>
    %377 = vector.broadcast %376 : vector<4x1xf32> to vector<4x256xf32>
    %378 = arith.addf %375, %377 : vector<4x256xf32>
    %c0_151 = arith.constant 0 : index
    %c2_152 = arith.constant 2 : index
    %379 = vector.load %arg4[%c0_151, %c2_152] : memref<4x4xf32, #tpu.memory_space<vmem>>, vector<4x1xf32>
    %c0_153 = arith.constant 0 : index
    %c3_154 = arith.constant 3 : index
    %380 = vector.load %arg4[%c0_153, %c3_154] : memref<4x4xf32, #tpu.memory_space<vmem>>, vector<4x1xf32>
    %381 = vector.shape_cast %378 : vector<4x256xf32> to vector<1x4x256xf32>
    %cst_155 = arith.constant dense<0.000000e+00> : vector<1xf32>
    %382 = vector.multi_reduction <add>, %381, %cst_155 [1, 2] : vector<1x4x256xf32> to vector<1xf32>
    %383 = vector.shape_cast %382 : vector<1xf32> to vector<1x1x1xf32>
    %384 = vector.extract %383[0, 0, 0] : f32 from vector<1x1x1xf32>
    %cst_156 = arith.constant 1.024000e+03 : f32
    %385 = arith.divf %384, %cst_156 : f32
    %386 = vector.broadcast %385 : f32 to vector<4x256xf32>
    %387 = arith.subf %378, %386 : vector<4x256xf32>
    %388 = arith.mulf %387, %387 : vector<4x256xf32>
    %389 = vector.shape_cast %388 : vector<4x256xf32> to vector<1x4x256xf32>
    %cst_157 = arith.constant dense<0.000000e+00> : vector<1xf32>
    %390 = vector.multi_reduction <add>, %389, %cst_157 [1, 2] : vector<1x4x256xf32> to vector<1xf32>
    %391 = vector.shape_cast %390 : vector<1xf32> to vector<1x1x1xf32>
    %392 = vector.extract %391[0, 0, 0] : f32 from vector<1x1x1xf32>
    %cst_158 = arith.constant 1.024000e+03 : f32
    %393 = arith.divf %392, %cst_158 : f32
    %cst_159 = arith.constant 9.99999974E-6 : f32
    %394 = arith.addf %393, %cst_159 : f32
    %395 = math.rsqrt %394 : f32
    %396 = vector.broadcast %395 : f32 to vector<4x256xf32>
    %397 = arith.mulf %387, %396 : vector<4x256xf32>
    %398 = vector.broadcast %379 : vector<4x1xf32> to vector<4x256xf32>
    %399 = arith.mulf %397, %398 : vector<4x256xf32>
    %400 = vector.broadcast %380 : vector<4x1xf32> to vector<4x256xf32>
    %401 = arith.addf %399, %400 : vector<4x256xf32>
    %c0_160 = arith.constant 0 : index
    %c128_161 = arith.constant 128 : index
    %402 = vector.load %arg12[%c0_160, %c128_161] : memref<4x512xf32, #tpu.memory_space<vmem>>, vector<4x256xf32>
    tpu.vector_store %arg12[%c0_160, %c128_161], %401 {strides = array<i32>} : memref<4x512xf32, #tpu.memory_space<vmem>>, vector<4x256xf32>,
    %c0_162 = arith.constant 0 : index
    %c111_163 = arith.constant 111 : index
    %403 = vector.load %arg12[%c0_162, %c111_163] : memref<4x512xf32, #tpu.memory_space<vmem>>, vector<4x256xf32>
    %404 = arith.mulf %403, %316 : vector<4x256xf32>
    %c0_164 = arith.constant 0 : index
    %c0_165 = arith.constant 0 : index
    %405 = vector.load %arg14[%c0_164, %c0_165] : memref<36x256xf32, #tpu.memory_space<vmem>>, vector<4x256xf32>
    tpu.vector_store %arg14[%c0_164, %c0_165], %404 {strides = array<i32>} : memref<36x256xf32, #tpu.memory_space<vmem>>, vector<4x256xf32>,
    %c0_166 = arith.constant 0 : index
    %c112_167 = arith.constant 112 : index
    %406 = vector.load %arg12[%c0_166, %c112_167] : memref<4x512xf32, #tpu.memory_space<vmem>>, vector<4x256xf32>
    %c4_168 = arith.constant 4 : index
    %c0_169 = arith.constant 0 : index
    %407 = vector.load %arg14[%c4_168, %c0_169] : memref<36x256xf32, #tpu.memory_space<vmem>>, vector<4x256xf32>
    tpu.vector_store %arg14[%c4_168, %c0_169], %406 {strides = array<i32>} : memref<36x256xf32, #tpu.memory_space<vmem>>, vector<4x256xf32>,
    %c0_170 = arith.constant 0 : index
    %c113_171 = arith.constant 113 : index
    %408 = vector.load %arg12[%c0_170, %c113_171] : memref<4x512xf32, #tpu.memory_space<vmem>>, vector<4x256xf32>
    %409 = arith.mulf %408, %318 : vector<4x256xf32>
    %c8_172 = arith.constant 8 : index
    %c0_173 = arith.constant 0 : index
    %410 = vector.load %arg14[%c8_172, %c0_173] : memref<36x256xf32, #tpu.memory_space<vmem>>, vector<4x256xf32>
    tpu.vector_store %arg14[%c8_172, %c0_173], %409 {strides = array<i32>} : memref<36x256xf32, #tpu.memory_space<vmem>>, vector<4x256xf32>,
    %c0_174 = arith.constant 0 : index
    %c127_175 = arith.constant 127 : index
    %411 = vector.load %arg12[%c0_174, %c127_175] : memref<4x512xf32, #tpu.memory_space<vmem>>, vector<4x256xf32>
    %412 = arith.mulf %411, %316 : vector<4x256xf32>
    %c12_176 = arith.constant 12 : index
    %c0_177 = arith.constant 0 : index
    %413 = vector.load %arg14[%c12_176, %c0_177] : memref<36x256xf32, #tpu.memory_space<vmem>>, vector<4x256xf32>
    tpu.vector_store %arg14[%c12_176, %c0_177], %412 {strides = array<i32>} : memref<36x256xf32, #tpu.memory_space<vmem>>, vector<4x256xf32>,
    %c0_178 = arith.constant 0 : index
    %c128_179 = arith.constant 128 : index
    %414 = vector.load %arg12[%c0_178, %c128_179] : memref<4x512xf32, #tpu.memory_space<vmem>>, vector<4x256xf32>
    %c16_180 = arith.constant 16 : index
    %c0_181 = arith.constant 0 : index
    %415 = vector.load %arg14[%c16_180, %c0_181] : memref<36x256xf32, #tpu.memory_space<vmem>>, vector<4x256xf32>
    tpu.vector_store %arg14[%c16_180, %c0_181], %414 {strides = array<i32>} : memref<36x256xf32, #tpu.memory_space<vmem>>, vector<4x256xf32>,
    %c0_182 = arith.constant 0 : index
    %c129_183 = arith.constant 129 : index
    %416 = vector.load %arg12[%c0_182, %c129_183] : memref<4x512xf32, #tpu.memory_space<vmem>>, vector<4x256xf32>
    %417 = arith.mulf %416, %318 : vector<4x256xf32>
    %c20_184 = arith.constant 20 : index
    %c0_185 = arith.constant 0 : index
    %418 = vector.load %arg14[%c20_184, %c0_185] : memref<36x256xf32, #tpu.memory_space<vmem>>, vector<4x256xf32>
    tpu.vector_store %arg14[%c20_184, %c0_185], %417 {strides = array<i32>} : memref<36x256xf32, #tpu.memory_space<vmem>>, vector<4x256xf32>,
    %c0_186 = arith.constant 0 : index
    %c143_187 = arith.constant 143 : index
    %419 = vector.load %arg12[%c0_186, %c143_187] : memref<4x512xf32, #tpu.memory_space<vmem>>, vector<4x256xf32>
    %420 = arith.mulf %419, %316 : vector<4x256xf32>
    %c24_188 = arith.constant 24 : index
    %c0_189 = arith.constant 0 : index
    %421 = vector.load %arg14[%c24_188, %c0_189] : memref<36x256xf32, #tpu.memory_space<vmem>>, vector<4x256xf32>
    tpu.vector_store %arg14[%c24_188, %c0_189], %420 {strides = array<i32>} : memref<36x256xf32, #tpu.memory_space<vmem>>, vector<4x256xf32>,
    %c0_190 = arith.constant 0 : index
    %c144_191 = arith.constant 144 : index
    %422 = vector.load %arg12[%c0_190, %c144_191] : memref<4x512xf32, #tpu.memory_space<vmem>>, vector<4x256xf32>
    %c28_192 = arith.constant 28 : index
    %c0_193 = arith.constant 0 : index
    %423 = vector.load %arg14[%c28_192, %c0_193] : memref<36x256xf32, #tpu.memory_space<vmem>>, vector<4x256xf32>
    tpu.vector_store %arg14[%c28_192, %c0_193], %422 {strides = array<i32>} : memref<36x256xf32, #tpu.memory_space<vmem>>, vector<4x256xf32>,
    %c0_194 = arith.constant 0 : index
    %c145_195 = arith.constant 145 : index
    %424 = vector.load %arg12[%c0_194, %c145_195] : memref<4x512xf32, #tpu.memory_space<vmem>>, vector<4x256xf32>
    %425 = arith.mulf %424, %318 : vector<4x256xf32>
    %c32_196 = arith.constant 32 : index
    %c0_197 = arith.constant 0 : index
    %426 = vector.load %arg14[%c32_196, %c0_197] : memref<36x256xf32, #tpu.memory_space<vmem>>, vector<4x256xf32>
    tpu.vector_store %arg14[%c32_196, %c0_197], %425 {strides = array<i32>} : memref<36x256xf32, #tpu.memory_space<vmem>>, vector<4x256xf32>,
    %c0_198 = arith.constant 0 : index
    %c0_199 = arith.constant 0 : index
    %427 = vector.load %arg7[%c0_198, %c0_199] : memref<16x36xf32, #tpu.memory_space<vmem>>, vector<16x36xf32>
    %c0_200 = arith.constant 0 : index
    %c0_201 = arith.constant 0 : index
    %428 = vector.load %arg14[%c0_200, %c0_201] : memref<36x256xf32, #tpu.memory_space<vmem>>, vector<36x256xf32>
    %cst_202 = arith.constant dense<0.000000e+00> : vector<16x256xf32>
    %429 = tpu.matmul %427, %428, %cst_202 {dimension_numbers = #tpu.dot_dimension_numbers<[1], [0], [0], [1], [0, 0, 1, 1], [], []>} : vector<16x36xf32>, vector<36x256xf32>, vector<16x256xf32> -> vector<16x256xf32>
    %c0_203 = arith.constant 0 : index
    %c0_204 = arith.constant 0 : index
    %430 = vector.load %arg8[%c0_203, %c0_204] : memref<16x3xf32, #tpu.memory_space<vmem>>, vector<16x1xf32>
    %431 = vector.broadcast %430 : vector<16x1xf32> to vector<16x256xf32>
    %432 = arith.addf %429, %431 : vector<16x256xf32>
    %cst_205 = arith.constant 5.000000e-01 : f32
    %433 = vector.broadcast %cst_205 : f32 to vector<16x256xf32>
    %434 = arith.mulf %433, %432 : vector<16x256xf32>
    %cst_206 = arith.constant 0.707106769 : f32
    %435 = vector.broadcast %cst_206 : f32 to vector<16x256xf32>
    %436 = arith.mulf %432, %435 : vector<16x256xf32>
    %cst_207 = arith.constant 0.000000e+00 : f32
    %437 = vector.broadcast %cst_207 : f32 to vector<16x256xf32>
    %438 = arith.cmpf olt, %436, %437 : vector<16x256xf32>
    %cst_208 = arith.constant -1.000000e+00 : f32
    %cst_209 = arith.constant 1.000000e+00 : f32
    %439 = vector.broadcast %cst_208 : f32 to vector<16x256xf32>
    %440 = vector.broadcast %cst_209 : f32 to vector<16x256xf32>
    %441 = arith.select %438, %439, %440 : vector<16x256xi1>, vector<16x256xf32>
    %442 = math.absf %436 : vector<16x256xf32>
    %cst_210 = arith.constant 0.327591091 : f32
    %443 = vector.broadcast %cst_210 : f32 to vector<16x256xf32>
    %444 = arith.mulf %443, %442 : vector<16x256xf32>
    %cst_211 = arith.constant 1.000000e+00 : f32
    %445 = vector.broadcast %cst_211 : f32 to vector<16x256xf32>
    %446 = arith.addf %445, %444 : vector<16x256xf32>
    %cst_212 = arith.constant 1.000000e+00 : f32
    %447 = vector.broadcast %cst_212 : f32 to vector<16x256xf32>
    %448 = arith.divf %447, %446 : vector<16x256xf32>
    %cst_213 = arith.constant 1.06140542 : f32
    %449 = vector.broadcast %cst_213 : f32 to vector<16x256xf32>
    %450 = arith.mulf %449, %448 : vector<16x256xf32>
    %cst_214 = arith.constant -1.45315206 : f32
    %451 = vector.broadcast %cst_214 : f32 to vector<16x256xf32>
    %452 = arith.addf %450, %451 : vector<16x256xf32>
    %453 = arith.mulf %452, %448 : vector<16x256xf32>
    %cst_215 = arith.constant 1.42141378 : f32
    %454 = vector.broadcast %cst_215 : f32 to vector<16x256xf32>
    %455 = arith.addf %453, %454 : vector<16x256xf32>
    %456 = arith.mulf %455, %448 : vector<16x256xf32>
    %cst_216 = arith.constant -0.284496725 : f32
    %457 = vector.broadcast %cst_216 : f32 to vector<16x256xf32>
    %458 = arith.addf %456, %457 : vector<16x256xf32>
    %459 = arith.mulf %458, %448 : vector<16x256xf32>
    %cst_217 = arith.constant 0.254829586 : f32
    %460 = vector.broadcast %cst_217 : f32 to vector<16x256xf32>
    %461 = arith.addf %459, %460 : vector<16x256xf32>
    %462 = arith.mulf %461, %448 : vector<16x256xf32>
    %cst_218 = arith.constant 0.000000e+00 : f32
    %463 = vector.broadcast %cst_218 : f32 to vector<16x256xf32>
    %464 = arith.subf %463, %442 : vector<16x256xf32>
    %465 = arith.mulf %464, %442 : vector<16x256xf32>
    %466 = math.exp %465 : vector<16x256xf32>
    %467 = arith.mulf %462, %466 : vector<16x256xf32>
    %cst_219 = arith.constant 1.000000e+00 : f32
    %468 = vector.broadcast %cst_219 : f32 to vector<16x256xf32>
    %469 = arith.subf %468, %467 : vector<16x256xf32>
    %470 = arith.mulf %441, %469 : vector<16x256xf32>
    %cst_220 = arith.constant 1.000000e+00 : f32
    %471 = vector.broadcast %cst_220 : f32 to vector<16x256xf32>
    %472 = arith.addf %471, %470 : vector<16x256xf32>
    %473 = arith.mulf %434, %472 : vector<16x256xf32>
    %c0_221 = arith.constant 0 : index
    %c1_222 = arith.constant 1 : index
    %474 = vector.load %arg8[%c0_221, %c1_222] : memref<16x3xf32, #tpu.memory_space<vmem>>, vector<16x1xf32>
    %c0_223 = arith.constant 0 : index
    %c2_224 = arith.constant 2 : index
    %475 = vector.load %arg8[%c0_223, %c2_224] : memref<16x3xf32, #tpu.memory_space<vmem>>, vector<16x1xf32>
    %476 = vector.shape_cast %473 : vector<16x256xf32> to vector<1x16x256xf32>
    %cst_225 = arith.constant dense<0.000000e+00> : vector<1xf32>
    %477 = vector.multi_reduction <add>, %476, %cst_225 [1, 2] : vector<1x16x256xf32> to vector<1xf32>
    %478 = vector.shape_cast %477 : vector<1xf32> to vector<1x1x1xf32>
    %479 = vector.extract %478[0, 0, 0] : f32 from vector<1x1x1xf32>
    %cst_226 = arith.constant 4.096000e+03 : f32
    %480 = arith.divf %479, %cst_226 : f32
    %481 = vector.broadcast %480 : f32 to vector<16x256xf32>
    %482 = arith.subf %473, %481 : vector<16x256xf32>
    %483 = arith.mulf %482, %482 : vector<16x256xf32>
    %484 = vector.shape_cast %483 : vector<16x256xf32> to vector<1x16x256xf32>
    %cst_227 = arith.constant dense<0.000000e+00> : vector<1xf32>
    %485 = vector.multi_reduction <add>, %484, %cst_227 [1, 2] : vector<1x16x256xf32> to vector<1xf32>
    %486 = vector.shape_cast %485 : vector<1xf32> to vector<1x1x1xf32>
    %487 = vector.extract %486[0, 0, 0] : f32 from vector<1x1x1xf32>
    %cst_228 = arith.constant 4.096000e+03 : f32
    %488 = arith.divf %487, %cst_228 : f32
    %cst_229 = arith.constant 9.99999974E-6 : f32
    %489 = arith.addf %488, %cst_229 : f32
    %490 = math.rsqrt %489 : f32
    %491 = vector.broadcast %490 : f32 to vector<16x256xf32>
    %492 = arith.mulf %482, %491 : vector<16x256xf32>
    %493 = vector.broadcast %474 : vector<16x1xf32> to vector<16x256xf32>
    %494 = arith.mulf %492, %493 : vector<16x256xf32>
    %495 = vector.broadcast %475 : vector<16x1xf32> to vector<16x256xf32>
    %496 = arith.addf %494, %495 : vector<16x256xf32>
    %c0_230 = arith.constant 0 : index
    %c128_231 = arith.constant 128 : index
    %497 = vector.load %arg13[%c0_230, %c128_231] : memref<16x512xf32, #tpu.memory_space<vmem>>, vector<16x256xf32>
    tpu.vector_store %arg13[%c0_230, %c128_231], %496 {strides = array<i32>} : memref<16x512xf32, #tpu.memory_space<vmem>>, vector<16x256xf32>,
    %c0_232 = arith.constant 0 : index
    %c111_233 = arith.constant 111 : index
    %498 = vector.load %arg13[%c0_232, %c111_233] : memref<16x512xf32, #tpu.memory_space<vmem>>, vector<16x256xf32>
    %499 = arith.mulf %498, %320 : vector<16x256xf32>
    %c0_234 = arith.constant 0 : index
    %c0_235 = arith.constant 0 : index
    %500 = vector.load %arg15[%c0_234, %c0_235] : memref<148x256xf32, #tpu.memory_space<vmem>>, vector<16x256xf32>
    tpu.vector_store %arg15[%c0_234, %c0_235], %499 {strides = array<i32>} : memref<148x256xf32, #tpu.memory_space<vmem>>, vector<16x256xf32>,
    %c0_236 = arith.constant 0 : index
    %c112_237 = arith.constant 112 : index
    %501 = vector.load %arg13[%c0_236, %c112_237] : memref<16x512xf32, #tpu.memory_space<vmem>>, vector<16x256xf32>
    %c16_238 = arith.constant 16 : index
    %c0_239 = arith.constant 0 : index
    %502 = vector.load %arg15[%c16_238, %c0_239] : memref<148x256xf32, #tpu.memory_space<vmem>>, vector<16x256xf32>
    tpu.vector_store %arg15[%c16_238, %c0_239], %501 {strides = array<i32>} : memref<148x256xf32, #tpu.memory_space<vmem>>, vector<16x256xf32>,
    %c0_240 = arith.constant 0 : index
    %c113_241 = arith.constant 113 : index
    %503 = vector.load %arg13[%c0_240, %c113_241] : memref<16x512xf32, #tpu.memory_space<vmem>>, vector<16x256xf32>
    %504 = arith.mulf %503, %322 : vector<16x256xf32>
    %c32_242 = arith.constant 32 : index
    %c0_243 = arith.constant 0 : index
    %505 = vector.load %arg15[%c32_242, %c0_243] : memref<148x256xf32, #tpu.memory_space<vmem>>, vector<16x256xf32>
    tpu.vector_store %arg15[%c32_242, %c0_243], %504 {strides = array<i32>} : memref<148x256xf32, #tpu.memory_space<vmem>>, vector<16x256xf32>,
    %c0_244 = arith.constant 0 : index
    %c127_245 = arith.constant 127 : index
    %506 = vector.load %arg13[%c0_244, %c127_245] : memref<16x512xf32, #tpu.memory_space<vmem>>, vector<16x256xf32>
    %507 = arith.mulf %506, %320 : vector<16x256xf32>
    %c48_246 = arith.constant 48 : index
    %c0_247 = arith.constant 0 : index
    %508 = vector.load %arg15[%c48_246, %c0_247] : memref<148x256xf32, #tpu.memory_space<vmem>>, vector<16x256xf32>
    tpu.vector_store %arg15[%c48_246, %c0_247], %507 {strides = array<i32>} : memref<148x256xf32, #tpu.memory_space<vmem>>, vector<16x256xf32>,
    %c0_248 = arith.constant 0 : index
    %c128_249 = arith.constant 128 : index
    %509 = vector.load %arg13[%c0_248, %c128_249] : memref<16x512xf32, #tpu.memory_space<vmem>>, vector<16x256xf32>
    %c64 = arith.constant 64 : index
    %c0_250 = arith.constant 0 : index
    %510 = vector.load %arg15[%c64, %c0_250] : memref<148x256xf32, #tpu.memory_space<vmem>>, vector<16x256xf32>
    tpu.vector_store %arg15[%c64, %c0_250], %509 {strides = array<i32>} : memref<148x256xf32, #tpu.memory_space<vmem>>, vector<16x256xf32>,
    %c0_251 = arith.constant 0 : index
    %c129_252 = arith.constant 129 : index
    %511 = vector.load %arg13[%c0_251, %c129_252] : memref<16x512xf32, #tpu.memory_space<vmem>>, vector<16x256xf32>
    %512 = arith.mulf %511, %322 : vector<16x256xf32>
    %c80_253 = arith.constant 80 : index
    %c0_254 = arith.constant 0 : index
    %513 = vector.load %arg15[%c80_253, %c0_254] : memref<148x256xf32, #tpu.memory_space<vmem>>, vector<16x256xf32>
    tpu.vector_store %arg15[%c80_253, %c0_254], %512 {strides = array<i32>} : memref<148x256xf32, #tpu.memory_space<vmem>>, vector<16x256xf32>,
    %c0_255 = arith.constant 0 : index
    %c143_256 = arith.constant 143 : index
    %514 = vector.load %arg13[%c0_255, %c143_256] : memref<16x512xf32, #tpu.memory_space<vmem>>, vector<16x256xf32>
    %515 = arith.mulf %514, %320 : vector<16x256xf32>
    %c96_257 = arith.constant 96 : index
    %c0_258 = arith.constant 0 : index
    %516 = vector.load %arg15[%c96_257, %c0_258] : memref<148x256xf32, #tpu.memory_space<vmem>>, vector<16x256xf32>
    tpu.vector_store %arg15[%c96_257, %c0_258], %515 {strides = array<i32>} : memref<148x256xf32, #tpu.memory_space<vmem>>, vector<16x256xf32>,
    %c0_259 = arith.constant 0 : index
    %c144_260 = arith.constant 144 : index
    %517 = vector.load %arg13[%c0_259, %c144_260] : memref<16x512xf32, #tpu.memory_space<vmem>>, vector<16x256xf32>
    %c112_261 = arith.constant 112 : index
    %c0_262 = arith.constant 0 : index
    %518 = vector.load %arg15[%c112_261, %c0_262] : memref<148x256xf32, #tpu.memory_space<vmem>>, vector<16x256xf32>
    tpu.vector_store %arg15[%c112_261, %c0_262], %517 {strides = array<i32>} : memref<148x256xf32, #tpu.memory_space<vmem>>, vector<16x256xf32>,
    %c0_263 = arith.constant 0 : index
    %c145_264 = arith.constant 145 : index
    %519 = vector.load %arg13[%c0_263, %c145_264] : memref<16x512xf32, #tpu.memory_space<vmem>>, vector<16x256xf32>
    %520 = arith.mulf %519, %322 : vector<16x256xf32>
    %c128_265 = arith.constant 128 : index
    %c0_266 = arith.constant 0 : index
    %521 = vector.load %arg15[%c128_265, %c0_266] : memref<148x256xf32, #tpu.memory_space<vmem>>, vector<16x256xf32>
    tpu.vector_store %arg15[%c128_265, %c0_266], %520 {strides = array<i32>} : memref<148x256xf32, #tpu.memory_space<vmem>>, vector<16x256xf32>,
    %c0_267 = arith.constant 0 : index
    %c0_268 = arith.constant 0 : index
    %c0_269 = arith.constant 0 : index
    %522 = vector.load %arg2[%c0_267, %c0_268, %c0_269] : memref<1x4x256xf32, #tpu.memory_space<vmem>>, vector<1x4x256xf32>
    %523 = vector.shape_cast %522 : vector<1x4x256xf32> to vector<4x256xf32>
    %c144_270 = arith.constant 144 : index
    %c0_271 = arith.constant 0 : index
    %524 = vector.load %arg15[%c144_270, %c0_271] : memref<148x256xf32, #tpu.memory_space<vmem>>, vector<4x256xf32>
    tpu.vector_store %arg15[%c144_270, %c0_271], %523 {strides = array<i32>} : memref<148x256xf32, #tpu.memory_space<vmem>>, vector<4x256xf32>,
    %c0_272 = arith.constant 0 : index
    %c0_273 = arith.constant 0 : index
    %525 = vector.load %arg9[%c0_272, %c0_273] : memref<8x148xf32, #tpu.memory_space<vmem>>, vector<8x148xf32>
    %c0_274 = arith.constant 0 : index
    %c0_275 = arith.constant 0 : index
    %526 = vector.load %arg15[%c0_274, %c0_275] : memref<148x256xf32, #tpu.memory_space<vmem>>, vector<148x256xf32>
    %cst_276 = arith.constant dense<0.000000e+00> : vector<8x256xf32>
    %527 = tpu.matmul %525, %526, %cst_276 {dimension_numbers = #tpu.dot_dimension_numbers<[1], [0], [0], [1], [0, 0, 1, 1], [], []>} : vector<8x148xf32>, vector<148x256xf32>, vector<8x256xf32> -> vector<8x256xf32>
    %c0_277 = arith.constant 0 : index
    %c0_278 = arith.constant 0 : index
    %528 = vector.load %arg10[%c0_277, %c0_278] : memref<8x1xf32, #tpu.memory_space<vmem>>, vector<8x1xf32>
    %529 = vector.broadcast %528 : vector<8x1xf32> to vector<8x256xf32>
    %530 = arith.addf %527, %529 : vector<8x256xf32>
    %c0_279 = arith.constant 0 : index
    %c0_280 = arith.constant 0 : index
    %c0_281 = arith.constant 0 : index
    %531 = vector.load %arg11[%c0_279, %c0_280, %c0_281] : memref<1x8x256xf32, #tpu.memory_space<vmem>>, vector<1x8x256xf32>
    %532 = vector.shape_cast %531 : vector<1x8x256xf32> to vector<8x256xf32>
    %533 = vector.shape_cast %530 : vector<8x256xf32> to vector<1x8x256xf32>
    tpu.vector_store %arg11[%c0_279, %c0_280, %c0_281], %533 {strides = array<i32>} : memref<1x8x256xf32, #tpu.memory_space<vmem>>, vector<1x8x256xf32>,
    return
  }
  func.func @transform_0(%arg0: i32) -> (i32, i32, i32) {
    %c0_i32 = arith.constant 0 : i32
    %c0_i32_0 = arith.constant 0 : i32
    %c0_i32_1 = arith.constant 0 : i32
    return %arg0, %c0_i32, %c0_i32_0 : i32, i32, i32
  }
  func.func @transform_1(%arg0: i32) -> (i32, i32, i32) {
    %c0_i32 = arith.constant 0 : i32
    %c0_i32_0 = arith.constant 0 : i32
    %c0_i32_1 = arith.constant 0 : i32
    return %arg0, %c0_i32, %c0_i32_0 : i32, i32, i32
  }
  func.func @transform_2(%arg0: i32) -> (i32, i32) {
    %c0_i32 = arith.constant 0 : i32
    %c0_i32_0 = arith.constant 0 : i32
    %c0_i32_1 = arith.constant 0 : i32
    return %c0_i32, %c0_i32_0 : i32, i32
  }
  func.func @transform_3(%arg0: i32) -> (i32, i32) {
    %c0_i32 = arith.constant 0 : i32
    %c0_i32_0 = arith.constant 0 : i32
    %c0_i32_1 = arith.constant 0 : i32
    return %c0_i32, %c0_i32_0 : i32, i32
  }
  func.func @transform_4(%arg0: i32) -> (i32, i32) {
    %c0_i32 = arith.constant 0 : i32
    %c0_i32_0 = arith.constant 0 : i32
    %c0_i32_1 = arith.constant 0 : i32
    return %c0_i32, %c0_i32_0 : i32, i32
  }
  func.func @transform_5(%arg0: i32) -> (i32, i32) {
    %c0_i32 = arith.constant 0 : i32
    %c0_i32_0 = arith.constant 0 : i32
    %c0_i32_1 = arith.constant 0 : i32
    return %c0_i32, %c0_i32_0 : i32, i32
  }
  func.func @transform_6(%arg0: i32) -> (i32, i32) {
    %c0_i32 = arith.constant 0 : i32
    %c0_i32_0 = arith.constant 0 : i32
    %c0_i32_1 = arith.constant 0 : i32
    return %c0_i32, %c0_i32_0 : i32, i32
  }
  func.func @transform_7(%arg0: i32) -> (i32, i32) {
    %c0_i32 = arith.constant 0 : i32
    %c0_i32_0 = arith.constant 0 : i32
    %c0_i32_1 = arith.constant 0 : i32
    return %c0_i32, %c0_i32_0 : i32, i32
  }
  func.func @transform_8(%arg0: i32) -> (i32, i32) {
    %c0_i32 = arith.constant 0 : i32
    %c0_i32_0 = arith.constant 0 : i32
    %c0_i32_1 = arith.constant 0 : i32
    return %c0_i32, %c0_i32_0 : i32, i32
  }
  func.func @transform_9(%arg0: i32) -> (i32, i32) {
    %c0_i32 = arith.constant 0 : i32
    %c0_i32_0 = arith.constant 0 : i32
    %c0_i32_1 = arith.constant 0 : i32
    return %c0_i32, %c0_i32_0 : i32, i32
  }
  func.func @transform_10(%arg0: i32) -> (i32, i32, i32) {
    %c0_i32 = arith.constant 0 : i32
    %c0_i32_0 = arith.constant 0 : i32
    %c0_i32_1 = arith.constant 0 : i32
    return %arg0, %c0_i32, %c0_i32_0 : i32, i32, i32
  }
}

</mosaic_0001>

<bundles_post_ra>
// kernel: _lambda_.1
= control target key start
LH: loop header
LB: loop body
LE: loop exit
PB: predicated region body
PF: predicated region fallthrough
CT: control target
= control target key end

     0   :  { %s3651_s13 = smov 0   ;;  %s5856_s0 = inlined_call_operand.vmem [shape: f32[2,1,16], index: 0, kind: input, shape index: {}]   ;;  %s5857_s1 = inlined_call_operand.vmem [shape: f32[2,4,256], index: 1, kind: input, shape index: {}]   ;;  %s5858_s2 = inlined_call_operand.vmem [shape: f32[4,16], index: 2, kind: input, shape index: {}]   ;;  %s5859_s3 = inlined_call_operand.vmem [shape: f32[4,4], index: 3, kind: input, shape index: {}]   ;;  %s5860_s4 = inlined_call_operand.vmem [shape: f32[4,49], index: 4, kind: input, shape index: {}]   ;;  %s5861_s5 = inlined_call_operand.vmem [shape: f32[7,256], index: 5, kind: input, shape index: {}]   ;;  %s5862_s6 = inlined_call_operand.vmem [shape: f32[16,36], index: 6, kind: input, shape index: {}]   ;;  %s5863_s7 = inlined_call_operand.vmem [shape: f32[16,3], index: 7, kind: input, shape index: {}]   ;;  %s5864_s8 = inlined_call_operand.vmem [shape: f32[8,148], index: 8, kind: input, shape index: {}]   ;;  %s5865_s9 = inlined_call_operand.vmem [shape: f32[8,1], index: 9, kind: input, shape index: {}]   ;;  %s5866_s10 = inlined_call_operand.vmem [shape: f32[2,8,256], index: 10, kind: output, shape index: {}]  }
   0x1   :  { %6074 = sst [smem:[#allocation143_spill]] %s5857_s1 }
   0x2 LB: > { %s3200_s14 = sadd.s32 4294967295, %s3495_s13   ;;  %p3204_p0 = scmp.ge.s32.totalorder %s3495_s13, 1  ;;  %s3495_s13 = sphi %s3651_s13, %s20_s13  }
   0x3   : > { %p320_p1 = scmp.lt.s32.totalorder %s3495_s13, 3 }
   0x5   : > { %p321_p2 = pnand %p3204_p0, %p320_p1 }
   0x7   : > { %324 = sbr.rel (%p321_p2) target bundleno = 2564 (0xa04), region = 60 }
   0xe   : > { %v394_v0 = vlaneseq  ;;  %v3497_v1 = vmov 8   ;;  %v3498_v3 = vmov 7   ;;  %v382_v4 = vld [vmem:[%s5861_s5] ss:$8 sm:$0x3]  ;;  %s5871_s19 = smov 93  }
   0xf   : > { %3389 = vset.pattern.permute.xlu0 %v3497_v1  ;;  %3388 = vset.pattern.permute.xlu1 %v3498_v3  ;;  %v3209_v5 = vld [vmem:[%s5861_s5 + $0x1] ss:$8 sm:$0x3]  ;;  %s5867_s20 = smov 77   ;;  %s5883_s21 = smov 94   ;;  %v5933_v14 = vmov 0.0  }
  0x10   : > { %v395_v2 = vshrl.u32 %v394_v0, 7  ;;  %s5869_s22 = smov 78   ;;  %s5887_s23 = smov 110   ;;  %374 = vst [vmem:[#allocation2] sm:$0xf] %v5933_v14  ;;  %2424 = vmatprep.mubr.f32.mxu0 %v5933_v14  ;;  %v3542_v36 = vmov 14  }
  0x11   : > { %s5873_s24 = smov 109   ;;  %375 = vst [vmem:[#allocation2 + $0xc] sm:$0xf] %v5933_v14  ;;  %p361_p3 = scmp.lt.s32.totalorder %s3200_s14, 1  ;;  %v698_v32 = vld [vmem:[%s5860_s4] sm:$0xf] }
  0x12   : > { %v3665_v6 = vsub.s32 0, %v395_v2  ;;  %v3667_v7 = vsub.s32 1, %v395_v2  ;;  %s5889_s25 = smov 126   ;;  %s5875_s26 = smov 125   ;;  %v731_v33 = vld [vmem:[%s5860_s4] sm:$0xf] }
  0x13   : > { %v3210_v15 = vld [vmem:[%s5861_s5 + $0x2] ss:$8 sm:$0x3]  ;;  %s6500_s14 = smov (!%p361_p3, %s3200_s14), 1  ;;  %s5891_s30 = smov 14   ;;  %v3543_v37 = vmov 21  }
  0x14   : > { %v397_v8 = vrot.slane %v382_v4, %v3665_v6  ;;  %v401_v9 = vrot.slane %v382_v4, %v3667_v7  ;;  %v406_v10 = vrot.slane %v3209_v5, %v3665_v6  ;;  %v410_v11 = vrot.slane %v3209_v5, %v3667_v7  ;;  %s3223_s29 = sshll.u32 %s6500_s14, 3  ;;  %s5877_s11 = smov 13   ;;  %v3211_v20 = vld [vmem:[%s5861_s5 + $0x4] ss:$8 sm:$0x3] }
  0x15   : > { %v3697_v16 = vrot.slane %v3210_v15, %v3665_v6  ;;  %v3700_v17 = vrot.slane %v3210_v15, %v3667_v7  ;;  %s6077_s1 = sld [smem:[#allocation143_spill]]  ;;  %s5893_s17 = smov 30   ;;  %v3725_v21 = vrot.slane %v3211_v20, %v3665_v6  ;;  %v3728_v22 = vrot.slane %v3211_v20, %v3667_v7  ;;  %v3212_v24 = vld [vmem:[%s5861_s5 + $0x5] ss:$8 sm:$0x3] }
  0x16   : > { %v449_v12 = vcombine.low %v397_v8, %v401_v9  ;;  %v483_v13 = vcombine.low %v406_v10, %v410_v11  ;;  %s5879_s18 = smov 29   ;;  %s5897_s27 = smov 95   ;;  %v433_v25 = vrot.slane %v3212_v24, %v3665_v6  ;;  %v437_v26 = vrot.slane %v3212_v24, %v3667_v7  ;;  %v3213_v28 = vld [vmem:[%s5861_s5 + $0x6] ss:$8 sm:$0x3] }
  0x17   : > { %6075 = vst [vmem:[#allocation6_spill] sm:$0xff] %v3697_v16  ;;  %6076 = vst [vmem:[#allocation7_spill] sm:$0xff] %v3700_v17  ;;  %v519_v19 = vcombine.low %v3697_v16, %v3700_v17  ;;  %s5881_s28 = smov 79   ;;  %s5899_s12 = smov 111   ;;  %v581_v23 = vcombine.low %v3725_v21, %v3728_v22  ;;  %v442_v29 = vrot.slane %v3213_v28, %v3665_v6  ;;  %v932_v34 = vld [vmem:[%s5860_s4] sm:$0xf] }
  0x18   : > { %689 = vrot.lane.b32.xlu1 %v449_v12, %s5871_s19  ;;  %450 = vrot.lane.b32.xlu0 %v449_v12, %s5867_s20  ;;  %s5903_s19 = smov 15   ;;  %6078 = vst [vmem:[#allocation8_spill] sm:$0xff] %v3725_v21  ;;  %6079 = vst [vmem:[#allocation9_spill] sm:$0xff] %v3728_v22  ;;  %s5909_s20 = smov 81   ;;  %v617_v27 = vcombine.low %v433_v25, %v437_v26  ;;  %v446_v30 = vrot.slane %v3213_v28, %v3667_v7  ;;  %v1166_v35 = vld [vmem:[%s5860_s4] sm:$0xf] }
  0x19   : > { %s5907_s15 = smov 47   ;;  %v965_v38 = vld [vmem:[%s5860_s4] sm:$0xf]  ;;  %v3544_v40 = vmov 15   ;;  %v3545_v41 = vmov 29   ;;  %v3546_v44 = vmov 22  }
  0x1a   : > { %v653_v31 = vcombine.low %v442_v29, %v446_v30  ;;  %v1412_v39 = vld [vmem:[%s5860_s4] sm:$0xf]  ;;  %v5935_v45 = vmov 2   ;;  %v3548_v48 = vmov 28   ;;  %v3549_v49 = vmov 23  }
  0x1b   : > { %s3705_s16 = scalar_lea.vmem %s6077_s1, %s3223_s29  ;;  %s5901_s29 = smov 127   ;;  %v1199_v42 = vld [vmem:[%s5860_s4] sm:$0xf]  ;;  %v3550_v52 = vmov 35   ;;  %v3551_v53 = vmov 42   ;;  %v3552_v56 = vmov 36  }
  0x1c   : > { %722 = vrot.lane.b32.xlu1 %v483_v13, %s5883_s21  ;;  %484 = vrot.lane.b32.xlu0 %v483_v13, %s5869_s22  ;;  %v3708_v18 = vld [vmem:[%s3705_s16] sm:$0xff]  ;;  %s5905_s22 = smov 31   ;;  %s5913_s21 = smov 97   ;;  %v3553_v57 = vmov 10   ;;  %vm5952_vm0 = vcmask 629760   ;;  %v3554_v0 = vmov 9  }
  0x1d   : > { %381 = vst [vmem:[#allocation2 + $0x4] sm:$0xff] %v3708_v18  ;;  %v529_v43 = vld [vmem:[%s5860_s4] sm:$0xf]  ;;  %v3555_v3 = vmov 31   ;;  %vm5953_vm1 = vcmask 637952   ;;  %v3557_v20 = vmov 4   ;;  %s363_s1 = scalar_lea.vmem %s5856_s0, %s6500_s14 }
  0x1e   : > { %v1381_v46 = vld [vmem:[%s5860_s4] sm:$0xf]  ;;  %vm5972_vm2 = vcmask 769024   ;;  %vm5981_vm3 = vcmask 900096   ;;  %vm5984_vm4 = vcmask 1031168   ;;  %vm6008_vm5 = vcmask 113664  }
  0x1f   : > { %v1234_v47 = vld [vmem:[%s5860_s4] sm:$0xf]  ;;  %vm5955_vm6 = vcmask 760832   ;;  %vm6009_vm7 = vcmask 244736   ;;  %vm5960_vm8 = vcmask 646144   ;;  %vm5989_vm9 = vcmask 891904  }
  0x20   : > { %956 = vrot.lane.b32.xlu1 %v483_v13, %s5887_s23  ;;  %923 = vrot.lane.b32.xlu0 %v449_v12, %s5873_s24  ;;  %s5895_s24 = smov 46   ;;  %s5917_s23 = smov 1   ;;  %v1603_v50 = vld [vmem:[%s5860_s4] sm:$0xf]  ;;  %vm6021_vm10 = vcmask 908288   ;;  %vm5991_vm11 = vcmask 1022976  }
  0x21   : > { %v1825_v51 = vld [vmem:[%s5860_s4] sm:$0xf]  ;;  %vm6030_vm12 = vcmask 1039360   ;;  %vm6032_vm13 = vcmask 121856   ;;  %vm5997_vm14 = vcmask 105472   ;;  %vm6034_vm15 = vcmask 252928  }
  0x22   : > { %v1634_v54 = vld [vmem:[%s5860_s4] sm:$0xf]  ;;  %v1658_v17 = vld [vmem:[#allocation2 + $0xc] sm:$0xf] }
  0x23   : > { %v792_v55 = vld [vmem:[%s5860_s4] sm:$0xf] }
  0x24   : > { %1190 = vrot.lane.b32.xlu1 %v483_v13, %s5889_s25  ;;  %1157 = vrot.lane.b32.xlu0 %v449_v12, %s5875_s26  ;;  %s5885_s26 = smov 45   ;;  %s5911_s25 = smov 82   ;;  %v766_v61 = vld [vmem:[%s5860_s4] sm:$0xf]  ;;  %v448_v8 = vld [vmem:[#allocation2 + $0x8] sm:$0xf] }
  0x25   : > { %v1470_v62 = vld [vmem:[%s5860_s4] sm:$0xf] }
  0x26   : > { %v3820_v2 = vld [vmem:[#allocation2] sm:$0xff] }
  0x27   : > { %v1000_v10 = vld [vmem:[%s5860_s4] sm:$0xf] }
  0x28   : > { %1404 = vrot.lane.b32.xlu1 %v483_v13, %s5891_s30  ;;  %1373 = vrot.lane.b32.xlu0 %v449_v12, %s5877_s11  ;;  %s5923_s11 = smov 33   ;;  %s5927_s30 = smov 98   ;;  %v1445_v24 = vld [vmem:[%s5860_s4] sm:$0xf] }
  0x2c   : > { %1626 = vrot.lane.b32.xlu1 %v483_v13, %s5893_s17  ;;  %1595 = vrot.lane.b32.xlu0 %v449_v12, %s5879_s18  ;;  %s5931_s18 = smov 114   ;;  %s3536_s17 = smov 3  }
  0x30   : > { %757 = vrot.lane.b32.xlu1 %v519_v19, %s5897_s27  ;;  %520 = vrot.lane.b32.xlu0 %v519_v19, %s5881_s28  ;;  %s5915_s28 = smov 113   ;;  %s3530_s27 = smov 18  }
  0x34   : > { %1225 = vrot.lane.b32.xlu1 %v519_v19, %s5901_s29  ;;  %991 = vrot.lane.b32.xlu0 %v519_v19, %s5899_s12  ;;  %s3531_s12 = smov 2   ;;  %s5925_s29 = smov 49  }
  0x38   : > { %1659 = vrot.lane.b32.xlu1 %v519_v19, %s5905_s22  ;;  %1437 = vrot.lane.b32.xlu0 %v519_v19, %s5903_s19  ;;  %s3533_s19 = smov 34   ;;  %s5929_s22 = smov 99  }
  0x3c   : > { %1848 = vrot.lane.b32.xlu1 %v483_v13, %s5895_s24  ;;  %1817 = vrot.lane.b32.xlu0 %v449_v12, %s5885_s26  ;;  %s5921_s26 = smov 17   ;;  %s5919_s24 = smov 83   ;;  %v3556_v13 = vmov 16  }
  0x40   : > { %582 = vrot.lane.b32.xlu1 %v581_v23, %s5909_s20  ;;  %1881 = vrot.lane.b32.xlu0 %v519_v19, %s5907_s15  ;;  %s3537_s15 = smov 115   ;;  %s3538_s20 = smov 35  }
  0x44   : > { %1052 = vrot.lane.b32.xlu1 %v581_v23, %s5915_s28  ;;  %818 = vrot.lane.b32.xlu0 %v581_v23, %s5913_s21  ;;  %s3540_s21 = smov 51   ;;  %s3541_s28 = smov 50  }
  0x48   : > { %1496 = vrot.lane.b32.xlu1 %v581_v23, %s5921_s26  ;;  %1274 = vrot.lane.b32.xlu0 %v581_v23, %s5917_s23  ;;  %s6089_s23 = smov 17   ;;  %s6130_s26 = smov 81  }
  0x4c   : > { %618 = vrot.lane.b32.xlu1 %v617_v27, %s5911_s25  ;;  %1718 = vrot.lane.b32.xlu0 %v581_v23, %s5923_s11  ;;  %s3539_s25 = smov 19   ;;  %s6081_s11 = smov 99  }
  0x50   : > { %1087 = vrot.lane.b32.xlu1 %v617_v27, %s5931_s18  ;;  %853 = vrot.lane.b32.xlu0 %v617_v27, %s5927_s30  ;;  %s6015_s30 = smov 16   ;;  %s6024_s18 = smov 80  }
  0x54   : > { %1529 = vrot.lane.b32.xlu1 %v617_v27, %s3530_s27  ;;  %1307 = vrot.lane.b32.xlu0 %v617_v27, %s3531_s12 }
  0x58   : > { %1940 = vrot.lane.b32.xlu1 %v581_v23, %s5925_s29  ;;  %1751 = vrot.lane.b32.xlu0 %v617_v27, %s3533_s19  ;;  %s6083_s29 = smov 49  }
  0x5c   : > { %888 = vrot.lane.b32.xlu1 %v653_v31, %s5929_s22  ;;  %654 = vrot.lane.b32.xlu0 %v653_v31, %s5919_s24  ;;  %s6114_s24 = smov 82   ;;  %s3574_s22 = smov 48  }
  0x60   : > { %1340 = vrot.lane.b32.xlu1 %v653_v31, %s3536_s17  ;;  %1122 = vrot.lane.b32.xlu0 %v653_v31, %s3537_s15 }
  0x64   : > { %1784 = vrot.lane.b32.xlu1 %v653_v31, %s3538_s20  ;;  %1562 = vrot.lane.b32.xlu0 %v653_v31, %s3539_s25 }
  0x68   : > { %2006 = vrot.lane.b32.xlu1 %v653_v31, %s3540_s21  ;;  %1973 = vrot.lane.b32.xlu0 %v617_v27, %s3541_s28  ;;  %v3558_v27 = vmov 30   ;;  %v1667_v31 = vld [vmem:[%s5860_s4] sm:$0xf] }
  0x6c   : > { %701 = vperm.xlu1 %3388, %v698_v32   ;;  %734 = vperm.xlu0 %3389, %v731_v33   ;;  %v591_v32 = vld [vmem:[%s5860_s4] sm:$0xf] }
  0x70   : > { %3390 = vset.pattern.permute.xlu1 %v3542_v36  ;;  %3392 = vset.pattern.permute.xlu0 %v3543_v37  ;;  %v688_v37 = vld [vmem:[#allocation2 + $0x8] sm:$0xf] }
  0x71   : > { %935 = vperm.xlu1 %3390, %v932_v34   ;;  %1169 = vperm.xlu0 %3392, %v1166_v35   ;;  %v3559_v34 = vmov 37  }
  0x75   : > { %3391 = vset.pattern.permute.xlu1 %v3544_v40  ;;  %3395 = vset.pattern.permute.xlu0 %v3545_v41 }
  0x76   : > { %968 = vperm.xlu1 %3391, %v965_v38   ;;  %1415 = vperm.xlu0 %3395, %v1412_v39   ;;  %v1856_v39 = vld [vmem:[%s5860_s4] sm:$0xf] }
  0x7a   : > { %3393 = vset.pattern.permute.xlu1 %v3546_v44  ;;  %3398 = vset.pattern.permute.xlu0 %v5935_v45 }
  0x7b   : > { %1202 = vperm.xlu1 %3393, %v1199_v42   ;;  %532 = vperm.xlu0 %3398, %v529_v43   ;;  %v3560_v42 = vmov 43  }
  0x7f   : > { %3394 = vset.pattern.permute.xlu1 %v3548_v48  ;;  %3401 = vset.pattern.permute.xlu0 %v3549_v49  ;;  %v555_v48 = vld [vmem:[%s5860_s4] sm:$0xf] }
  0x80   : > { %1384 = vperm.xlu1 %3394, %v1381_v46   ;;  %1237 = vperm.xlu0 %3401, %v1234_v47   ;;  %v3561_v46 = vmov 11  }
  0x84   : > { %3396 = vset.pattern.permute.xlu1 %v3550_v52  ;;  %3404 = vset.pattern.permute.xlu0 %v3551_v53  ;;  %v5937_v53 = vmov 3  }
  0x85   : > { %1606 = vperm.xlu1 %3396, %v1603_v50   ;;  %1828 = vperm.xlu0 %3404, %v1825_v51  }
  0x89   : > { %3397 = vset.pattern.permute.xlu1 %v3552_v56  ;;  %3407 = vset.pattern.permute.xlu0 %v3553_v57 }
  0x8a   : > { %1637 = vperm.xlu1 %3397, %v1634_v54   ;;  %v3809_v58 = vpop.permute.xlu1 %689  ;;  %795 = vperm.xlu0 %3407, %v792_v55   ;;  %v451_v59 = vpop.permute.xlu0 %450  ;;  %v827_v54 = vld [vmem:[%s5860_s4] sm:$0xf]  ;;  %v922_v55 = vld [vmem:[#allocation2 + $0x8] sm:$0xf] }
  0x8b   : > { %v452_v60 = vrot.slane %v451_v59, 4  ;;  %v691_v33 = vrot.slane %v3809_v58, 4 }
  0x8d   : > { %v454_v63 = vsel %vm5952_vm0, %v452_v60, %v451_v59  ;;  %v458_v19 = vmul.f32 %v452_v60, %v448_v8  ;;  %v697_v41 = vmul.f32 %v691_v33, %v688_v37  ;;  %v1026_v59 = vld [vmem:[%s5860_s4] sm:$0xf]  ;;  %vm6022_vm0 = vcmask 367616  }
  0x8e   : > { %3399 = vset.pattern.permute.xlu1 %v3554_v0  ;;  %v3818_v1 = vpop.permute.xlu1 %722  ;;  %3410 = vset.pattern.permute.xlu0 %v3555_v3  ;;  %v3822_v4 = vpop.permute.xlu0 %484  ;;  %v3826_v7 = vmul.f32 %v3820_v2, %v454_v63  ;;  %v1259_v8 = vld [vmem:[%s5860_s4] sm:$0xf] }
  0x8f   : > { %769 = vperm.xlu1 %3399, %v766_v61   ;;  %1473 = vperm.xlu0 %3410, %v1470_v62   ;;  %v486_v5 = vrot.slane %v3822_v4, 4  ;;  %v724_v28 = vrot.slane %v3818_v1, 4  ;;  %v3563_v62 = vmov 17  }
  0x91   : > { %v488_v9 = vsel %vm5953_vm1, %v486_v5, %v3822_v4  ;;  %v726_v35 = vsel %vm5972_vm2, %v724_v28, %v3818_v1  ;;  %vm6012_vm1 = vcmask 236544   ;;  %vm6026_vm2 = vcmask 384000  }
  0x92   : > { %v3835_v11 = vpop.permute.xlu1 %956  ;;  %v3837_v12 = vpop.permute.xlu0 %923  ;;  %v3840_v15 = vmul.f32 %v3820_v2, %v488_v9  ;;  %v3879_v40 = vmul.f32 %v726_v35, %v3820_v2  ;;  %v3564_v9 = vmov 18   ;;  %v3566_v35 = vmov 38  }
  0x93   : > { %3400 = vset.pattern.permute.xlu1 %v3556_v13  ;;  %468 = vrot.lane.b32.xlu0 %v3826_v7, %s3540_s21  ;;  %v958_v49 = vrot.slane %v3835_v11, 4  ;;  %v925_v52 = vrot.slane %v3837_v12, 4 }
  0x94   : > { %1003 = vperm.xlu1 %3400, %v1000_v10   ;;  %3413 = vset.pattern.permute.xlu0 %v3557_v20  ;;  %v501_v26 = vcombine.high %v3840_v15, %v3840_v15  ;;  %v739_v47 = vcombine.high %v3879_v40, %v3879_v40  ;;  %v3565_v10 = vmov 24  }
  0x95   : > { %v960_v56 = vsel %vm5981_vm3, %v958_v49, %v3835_v11  ;;  %v931_v61 = vmul.f32 %v925_v52, %v922_v55  ;;  %v3568_v55 = vmov 25   ;;  %vm6038_vm3 = vcmask 662528  }
  0x96   : > { %v3844_v23 = vpop.permute.xlu1 %1190  ;;  %v3849_v25 = vpop.permute.xlu0 %1157  ;;  %v3918_v63 = vmul.f32 %v960_v56, %v3820_v2 }
  0x97   : > { %472 = vrot.lane.b32.xlu0 %v458_v19, %s3540_s21  ;;  %v1192_v19 = vrot.slane %v3844_v23, 4 }
  0x98   : > { %3402 = vset.pattern.permute.xlu1 %v3558_v27  ;;  %v973_v13 = vcombine.high %v3918_v63, %v3918_v63  ;;  %v1692_v27 = vld [vmem:[%s5860_s4] sm:$0xf] }
  0x99   : > { %1448 = vperm.xlu1 %3402, %v1445_v24  }
  0x9a   : > { %v3855_v29 = vpop.permute.xlu1 %1404  ;;  %v3857_v30 = vpop.permute.xlu0 %1373 }
  0x9b   : > { %504 = vrot.lane.b32.xlu0 %v501_v26, %s3541_s28  ;;  %v1159_v26 = vrot.slane %v3849_v25, 4 }
  0x9d   : > { %3403 = vset.pattern.permute.xlu1 %v3559_v34  ;;  %v1194_v34 = vsel %vm5984_vm4, %v1192_v19, %v3844_v23  ;;  %vm6046_vm4 = vcmask 793600  }
  0x9e   : > { %1670 = vperm.xlu1 %3403, %v1667_v31   ;;  %v3871_v36 = vpop.permute.xlu1 %1626  ;;  %v3873_v38 = vpop.permute.xlu0 %1595  ;;  %v1061_v31 = vld [vmem:[%s5860_s4] sm:$0xf] }
  0x9f   : > { %594 = vperm.xlu0 %3413, %v591_v32   ;;  %v1156_v32 = vld [vmem:[#allocation2 + $0x8] sm:$0xf]  ;;  %v5940_v4 = vrot.slane %v3871_v36, 4 }
  0xa2   : > { %3405 = vset.pattern.permute.xlu1 %v3560_v42  ;;  %v3883_v43 = vpop.permute.xlu1 %757  ;;  %v3885_v44 = vpop.permute.xlu0 %520  ;;  %v3954_v42 = vmul.f32 %v1194_v34, %v3820_v2 }
  0xa3   : > { %1859 = vperm.xlu1 %3405, %v1856_v39   ;;  %711 = vrot.lane.b32.xlu0 %v697_v41, %s3538_s20  ;;  %v1165_v41 = vmul.f32 %v1159_v26, %v1156_v32 }
  0xa4   : > { %3414 = vset.pattern.permute.xlu0 %v3561_v46  ;;  %v1889_v46 = vld [vmem:[%s5860_s4] sm:$0xf]  ;;  %v1207_v56 = vcombine.high %v3954_v42, %v3954_v42 }
  0xa6   : > { %v3894_v50 = vpop.permute.xlu1 %1225  ;;  %v3896_v51 = vpop.permute.xlu0 %991 }
  0xa7   : > { %3406 = vset.pattern.permute.xlu1 %v5937_v53  ;;  %742 = vrot.lane.b32.xlu0 %v739_v47, %s3533_s19  ;;  %v4105_v11 = vrot.slane %v3894_v50, 4 }
  0xa8   : > { %558 = vperm.xlu1 %3406, %v555_v48  }
  0xa9   : > { %6087 = vst [vmem:[#allocation12_spill] sm:$0xff] %v4105_v11 }
  0xaa   : > { %v3908_v57 = vpop.permute.xlu1 %1659  ;;  %v3913_v60 = vpop.permute.xlu0 %1437 }
  0xab   : > { %830 = vperm.xlu0 %3414, %v827_v54   ;;  %v3567_v54 = vmov 44  }
  0xac   : > { %3408 = vset.pattern.permute.xlu1 %v3563_v62  ;;  %v467_v62 = vcombine.high %v3826_v7, %v3826_v7 }
  0xad   : > { %1029 = vperm.xlu1 %3408, %v1026_v59   ;;  %v5942_v59 = vrot.slane %v3855_v29, 4 }
  0xae   : > { %v3920_v0 = vpop.permute.xlu1 %1848  ;;  %v3922_v3 = vpop.permute.xlu0 %1817 }
  0xaf   : > { %945 = vrot.lane.b32.xlu0 %v931_v61, %s3539_s25  ;;  %v1407_v7 = vsel %vm6008_vm5, %v5942_v59, %v3855_v29  ;;  %v1819_v16 = vrot.slane %v3922_v3, 4  ;;  %vm6045_vm5 = vcmask 670720  }
  0xb0   : > { %3415 = vset.pattern.permute.xlu0 %v3564_v9  ;;  %v1375_v9 = vrot.slane %v3857_v30, 4 }
  0xb1   : > { %3409 = vset.pattern.permute.xlu1 %v3565_v10  ;;  %v1282_v10 = vld [vmem:[%s5860_s4] sm:$0xf] }
  0xb2   : > { %1262 = vperm.xlu1 %3409, %v1259_v8   ;;  %v3931_v20 = vpop.permute.xlu1 %582  ;;  %v3933_v24 = vpop.permute.xlu0 %1881  ;;  %v1376_v22 = vsel %vm5997_vm14, %v1375_v9, %v3857_v30  ;;  %vm781_vm14 = vcmask 269312  }
  0xb3   : > { %976 = vrot.lane.b32.xlu0 %v973_v13, %s3530_s27  ;;  %v1372_v13 = vld [vmem:[#allocation2 + $0xc] sm:$0xf] }
  0xb4   : > { %v1380_v34 = vmul.f32 %v1375_v9, %v1372_v13 }
  0xb6   : > { %3411 = vset.pattern.permute.xlu1 %v3566_v35  ;;  %v3947_v37 = vpop.permute.xlu1 %1052  ;;  %v3949_v39 = vpop.permute.xlu0 %818  ;;  %v482_v35 = vld [vmem:[#allocation2 + $0x8] sm:$0xf] }
  0xb7   : > { %1695 = vperm.xlu1 %3411, %v1692_v27   ;;  %1064 = vperm.xlu0 %3415, %v1061_v31   ;;  %v3569_v27 = vmov 45  }
  0xba   : > { %v3959_v47 = vpop.permute.xlu1 %1496  ;;  %v3961_v48 = vpop.permute.xlu0 %1274 }
  0xbb   : > { %3412 = vset.pattern.permute.xlu1 %v3567_v54  ;;  %1179 = vrot.lane.b32.xlu0 %v1165_v41, %s3536_s17  ;;  %v3992_v41 = vmul.f32 %v1407_v7, %v3708_v18  ;;  %v693_v54 = vsel %vm5955_vm6, %v691_v33, %v3809_v58  ;;  %v5941_v58 = vrot.slane %v3873_v38, 4  ;;  %v1504_v33 = vld [vmem:[%s5860_s4] sm:$0xf]  ;;  %vm5996_vm6 = vcmask 375808  }
  0xbc   : > { %1892 = vperm.xlu1 %3412, %v1889_v46   ;;  %3416 = vset.pattern.permute.xlu0 %v3568_v55  ;;  %v492_v46 = vmul.f32 %v486_v5, %v482_v35  ;;  %v696_v5 = vmul.f32 %v3820_v2, %v693_v54 }
  0xbe   : > { %v3967_v61 = vpop.permute.xlu1 %618  ;;  %v3971_v8 = vpop.permute.xlu0 %1718  ;;  %v706_v7 = vcombine.high %v696_v5, %v696_v5 }
  0xbf   : > { %1210 = vrot.lane.b32.xlu0 %v1207_v56, %s3531_s12  ;;  %v3570_v56 = vmov 32  }
  0xc0   : > { %470 = vrot.lane.b32.xlu1 %v467_v62, %s3540_s21  ;;  %v1420_v62 = vcombine.high %v3992_v41, %v3992_v41  ;;  %s6080_s21 = smov 114  }
  0xc1   : > { %3419 = vset.pattern.permute.xlu1 %v3569_v27  ;;  %v1629_v27 = vsel %vm6009_vm7, %v5940_v4, %v3871_v36  ;;  %v1224_v4 = vld [vmem:[#allocation2 + $0x8] sm:$0xf]  ;;  %vm856_vm7 = vcmask 801792  }
  0xc2   : > { %v3983_v31 = vpop.permute.xlu0 %853  ;;  %v3985_v32 = vpop.permute.xlu1 %1087  ;;  %v4029_v54 = vmul.f32 %v1629_v27, %v3708_v18 }
  0xc3   : > { %1285 = vperm.xlu0 %3416, %v1282_v10   ;;  %v1594_v10 = vld [vmem:[#allocation2 + $0xc] sm:$0xf] }
  0xc4   : > { %502 = vrot.lane.b32.xlu1 %v3840_v15, %s3541_s28  ;;  %v1602_v35 = vmul.f32 %v5941_v58, %v1594_v10  ;;  %v1642_v27 = vcombine.high %v4029_v54, %v4029_v54 }
  0xc6   : > { %v4001_v55 = vpop.permute.xlu0 %1307  ;;  %v4004_v15 = vpop.permute.xlu1 %1529 }
  0xc7   : > { %1394 = vrot.lane.b32.xlu0 %v1380_v34, %s3537_s15 }
  0xc8   : > { %506 = vrot.lane.b32.xlu1 %v492_v46, %s3541_s28  ;;  %3417 = vset.pattern.permute.xlu0 %v3570_v56  ;;  %v5938_v46 = vrot.slane %v3885_v44, 4  ;;  %v721_v56 = vld [vmem:[#allocation2 + $0x8] sm:$0xf]  ;;  %s6143_s28 = smov 15  }
  0xca   : > { %v4016_v13 = vpop.permute.xlu0 %1751  ;;  %v4022_v34 = vpop.permute.xlu1 %1940 }
  0xcb   : > { %1423 = vrot.lane.b32.xlu0 %v1420_v62, %s6080_s21 }
  0xcc   : > { %707 = vrot.lane.b32.xlu1 %v696_v5, %s3538_s20  ;;  %v524_v5 = vsel %vm5960_vm8, %v5938_v46, %v3885_v44  ;;  %vm6014_vm8 = vcmask 777216  }
  0xcd   : > { %v4051_v14 = vmul.f32 %v3820_v2, %v524_v5  ;;  %v4070_v5 = vrot.slane %v3896_v51, 4 }
  0xce   : > { %v4032_v62 = vpop.permute.xlu0 %654  ;;  %v4040_v10 = vpop.permute.xlu1 %888 }
  0xcf   : > { %1507 = vperm.xlu0 %3417, %v1504_v33   ;;  %v3571_v33 = vmov 39   ;;  %6084 = vst [vmem:[#allocation10_spill] sm:$0xff] %v4070_v5  ;;  %v4082_v45 = vsel %vm6021_vm10, %v4070_v5, %v3896_v51  ;;  %vm980_vm10 = vcmask 146432  }
  0xd0   : > { %709 = vrot.lane.b32.xlu1 %v706_v7, %s3538_s20  ;;  %v730_v7 = vmul.f32 %v724_v28, %v721_v56  ;;  %s6082_s20 = smov 98   ;;  %6085 = vst [vmem:[#allocation11_spill] sm:$0xff] %v4082_v45  ;;  %v4098_v51 = vmul.f32 %v4082_v45, %v3820_v2 }
  0xd2   : > { %v4061_v28 = vpop.permute.xlu1 %1340 }
  0xd3   : > { %1616 = vrot.lane.b32.xlu0 %v1602_v35, %s6081_s11  ;;  %v927_v35 = vsel %vm5989_vm9, %v925_v52, %v3837_v12  ;;  %v537_v12 = vcombine.high %v4051_v14, %v4051_v14  ;;  %vm6050_vm9 = vcmask 924672  }
  0xd4   : > { %740 = vrot.lane.b32.xlu1 %v3879_v40, %s3533_s19  ;;  %3418 = vset.pattern.permute.xlu0 %v3571_v33  ;;  %v1726_v40 = vld [vmem:[%s5860_s4] sm:$0xf]  ;;  %v4058_v33 = vpop.permute.xlu0 %1122  ;;  %v930_v1 = vmul.f32 %v927_v35, %v3820_v2  ;;  %v5939_v35 = vrot.slane %v3883_v43, 4 }
  0xd6   : > { %v940_v52 = vcombine.high %v930_v1, %v930_v1 }
  0xd7   : > { %1645 = vrot.lane.b32.xlu0 %v1642_v27, %s6082_s20  ;;  %v3572_v27 = vmov 5  }
  0xd8   : > { %744 = vrot.lane.b32.xlu1 %v730_v7, %s3533_s19  ;;  %v4067_v56 = vpop.permute.xlu0 %1562  ;;  %v627_v7 = vld [vmem:[%s5860_s4] sm:$0xf]  ;;  %s3582_s19 = smov 96  }
  0xdb   : > { %1729 = vperm.xlu0 %3418, %v1726_v40   ;;  %v4077_v40 = vpop.permute.xlu1 %1784 }
  0xdc   : > { %941 = vrot.lane.b32.xlu1 %v930_v1, %s3539_s25  ;;  %v756_v1 = vld [vmem:[#allocation2 + $0x8] sm:$0xf] }
  0xdf   : > { %540 = vrot.lane.b32.xlu0 %v537_v12, %s6083_s29  ;;  %v955_v12 = vld [vmem:[#allocation2 + $0x8] sm:$0xf]  ;;  %v4100_v46 = vpop.permute.xlu1 %2006 }
  0xe0   : > { %943 = vrot.lane.b32.xlu1 %v940_v52, %s3539_s25  ;;  %3420 = vset.pattern.permute.xlu0 %v3572_v27  ;;  %v765_v52 = vmul.f32 %v5939_v35, %v756_v1  ;;  %v4088_v27 = vpop.permute.xlu0 %1973  ;;  %v964_v53 = vmul.f32 %v958_v49, %v955_v12  ;;  %s6086_s25 = smov 33   ;;  %v3573_v1 = vmov 46  }
  0xe3   : > { %630 = vperm.xlu0 %3420, %v627_v7   ;;  %v1161_v7 = vsel %vm5991_vm11, %v1159_v26, %v3849_v25  ;;  %vm1249_vm11 = vcmask 7168  }
  0xe4   : > { %974 = vrot.lane.b32.xlu1 %v3918_v63, %s3530_s27  ;;  %v990_v63 = vld [vmem:[#allocation2 + $0x8] sm:$0xf]  ;;  %v1164_v49 = vmul.f32 %v1161_v7, %v3820_v2  ;;  %v4123_v7 = vrot.slane %v3913_v60, 4 }
  0xe5   : > { %v999_v26 = vmul.f32 %v4070_v5, %v990_v63 }
  0xe6   : > { %6091 = vst [vmem:[#allocation15_spill] sm:$0xff] %v4123_v7 }
  0xe7   : > { %779 = vrot.lane.b32.xlu0 %v765_v52, %s6086_s25  ;;  %v1174_v52 = vcombine.high %v1164_v49, %v1164_v49 }
  0xe8   : > { %978 = vrot.lane.b32.xlu1 %v964_v53, %s3530_s27  ;;  %3426 = vset.pattern.permute.xlu0 %v3573_v1  ;;  %v4119_v53 = vsel %vm6030_vm12, %v4105_v11, %v3894_v50  ;;  %v1189_v50 = vld [vmem:[#allocation2 + $0x8] sm:$0xf]  ;;  %s6094_s27 = smov 1   ;;  %vm6040_vm12 = vcmask 678912  }
  0xe9   : > { %6090 = vst [vmem:[#allocation14_spill] sm:$0xff] %v4119_v53  ;;  %v4132_v35 = vmul.f32 %v4119_v53, %v3820_v2  ;;  %v1198_v59 = vmul.f32 %v1192_v19, %v1189_v50  ;;  %v1436_v19 = vld [vmem:[#allocation2 + $0xc] sm:$0xf]  ;;  %v1820_v53 = vsel %vm6022_vm0, %v1819_v16, %v3922_v3  ;;  %vm746_vm0 = vcmask 277504  }
  0xea   : > { %v1444_v30 = vmul.f32 %v4123_v7, %v1436_v19 }
  0xeb   : > { %v4108_v25 = vpop.permute.xlu1 %701  ;;  %1009 = vrot.lane.b32.xlu0 %v4098_v51, %s6089_s23  ;;  %v4113_v12 = vpop.permute.xlu0 %734 }
  0xec   : > { %6088 = vst [vmem:[#allocation13_spill] sm:$0xff] %v4108_v25  ;;  %1175 = vrot.lane.b32.xlu1 %v1164_v49, %s3536_s17  ;;  %v4139_v49 = vsel %vm6032_vm13, %v4123_v7, %v3913_v60  ;;  %vm891_vm13 = vcmask 809984  }
  0xed   : > { %6095 = vst [vmem:[#allocation18_spill] sm:$0xff] %v4139_v49  ;;  %v4156_v60 = vmul.f32 %v4139_v49, %v3708_v18  ;;  %v6107_v49 = vrot.slane %v3873_v38, 4 }
  0xef   : > { %1013 = vrot.lane.b32.xlu0 %v999_v26, %s6089_s23  ;;  %v1598_v5 = vsel %vm6012_vm1, %v6107_v49, %v3873_v38  ;;  %vm1090_vm1 = vcmask 932864  }
  0xf0   : > { %v4125_v1 = vpop.permute.xlu1 %935  ;;  %1177 = vrot.lane.b32.xlu1 %v1174_v52, %s3536_s17  ;;  %v4128_v63 = vpop.permute.xlu0 %1169  ;;  %v1233_v52 = vmul.f32 %v4105_v11, %v1224_v4  ;;  %v1379_v4 = vmul.f32 %v1376_v22, %v3708_v18  ;;  %s6100_s17 = smov 113   ;;  %v1403_v11 = vld [vmem:[#allocation2 + $0xc] sm:$0xf] }
  0xf1   : > { %6092 = vst [vmem:[#allocation16_spill] sm:$0xff] %v4125_v1  ;;  %6093 = vst [vmem:[#allocation17_spill] sm:$0xff] %v4128_v63 }
  0xf2   : > { %v1389_v9 = vcombine.high %v1379_v4, %v1379_v4 }
  0xf3   : > { %1243 = vrot.lane.b32.xlu0 %v4132_v35, %s6094_s27 }
  0xf4   : > { %1208 = vrot.lane.b32.xlu1 %v3954_v42, %s3531_s12  ;;  %v1661_v42 = vrot.slane %v3908_v57, 4 }
  0xf5   : > { %v4143_v26 = vpop.permute.xlu1 %968  ;;  %v4146_v58 = vpop.permute.xlu0 %1415 }
  0xf6   : > { %6096 = vst [vmem:[#allocation19_spill] sm:$0xff] %v4143_v26  ;;  %6097 = vst [vmem:[#allocation20_spill] sm:$0xff] %v4146_v58  ;;  %v1666_v19 = vmul.f32 %v1661_v42, %v1658_v17  ;;  %v4202_v17 = vmul.f32 %v1820_v53, %v3708_v18 }
  0xf7   : > { %1247 = vrot.lane.b32.xlu0 %v1233_v52, %s6094_s27 }
  0xf8   : > { %1212 = vrot.lane.b32.xlu1 %v1198_v59, %s3531_s12  ;;  %v1662_v59 = vsel %vm6034_vm15, %v1661_v42, %v3908_v57  ;;  %s6103_s12 = smov 97   ;;  %v1816_v42 = vld [vmem:[#allocation2 + $0xc] sm:$0xf]  ;;  %vm1125_vm15 = vcmask 941056  }
  0xf9   : > { %v4179_v52 = vmul.f32 %v1662_v59, %v3708_v18  ;;  %v1824_v53 = vmul.f32 %v1819_v16, %v1816_v42  ;;  %v1948_v16 = vld [vmem:[%s5860_s4] sm:$0xf] }
  0xfa   : > { %v4162_v21 = vpop.permute.xlu1 %1202  ;;  %v4164_v23 = vpop.permute.xlu0 %532 }
  0xfb   : > { %6098 = vst [vmem:[#allocation21_spill] sm:$0xff] %v4162_v21  ;;  %6099 = vst [vmem:[#allocation22_spill] sm:$0xff] %v4164_v23  ;;  %1454 = vrot.lane.b32.xlu0 %v4156_v60, %s6100_s17  ;;  %v584_v23 = vrot.slane %v3931_v20, 4 }
  0xfc   : > { %1390 = vrot.lane.b32.xlu1 %v1379_v4, %s3537_s15 }
  0xff   : > { %v4172_v50 = vpop.permute.xlu1 %1384  ;;  %1458 = vrot.lane.b32.xlu0 %v1444_v30, %s6100_s17  ;;  %v4175_v22 = vpop.permute.xlu0 %1237  ;;  %v6106_v30 = vrot.slane %v3855_v29, 4 }
 0x100   : > { %6101 = vst [vmem:[#allocation23_spill] sm:$0xff] %v4172_v50  ;;  %6102 = vst [vmem:[#allocation24_spill] sm:$0xff] %v4175_v22  ;;  %1392 = vrot.lane.b32.xlu1 %v1389_v9, %s3537_s15  ;;  %v5958_v9 = vrot.slane %v3920_v0, 4  ;;  %s6110_s15 = smov 83  }
 0x101   : > { %v1411_v59 = vmul.f32 %v6106_v30, %v1403_v11  ;;  %v1601_v11 = vmul.f32 %v1598_v5, %v3708_v18 }
 0x102   : > { %v1851_v3 = vsel %vm5996_vm6, %v5958_v9, %v3920_v0  ;;  %v1625_v9 = vld [vmem:[#allocation2 + $0xc] sm:$0xf]  ;;  %vm1015_vm6 = vcmask 138240  }
 0x103   : > { %1676 = vrot.lane.b32.xlu0 %v4179_v52, %s6103_s12  ;;  %v4217_v38 = vmul.f32 %v1851_v3, %v3708_v18  ;;  %v1611_v49 = vcombine.high %v1601_v11, %v1601_v11  ;;  %v6115_v18 = vrot.slane %v3871_v36, 4  ;;  %v4250_v36 = vld [vmem:[#allocation2] sm:$0xff] }
 0x104   : > { %v4184_v57 = vpop.permute.xlu1 %1606  ;;  %1421 = vrot.lane.b32.xlu1 %v3992_v41, %s6080_s21  ;;  %v4188_v4 = vpop.permute.xlu0 %1828 }
 0x105   : > { %6104 = vst [vmem:[#allocation25_spill] sm:$0xff] %v4184_v57  ;;  %6105 = vst [vmem:[#allocation26_spill] sm:$0xff] %v4188_v4  ;;  %v1864_v5 = vcombine.high %v4217_v38, %v4217_v38  ;;  %v1633_v3 = vmul.f32 %v6115_v18, %v1625_v9  ;;  %v3575_v9 = vmov 27   ;;  %v518_v18 = vld [vmem:[#allocation2 + $0x8] sm:$0xf] }
 0x107   : > { %1680 = vrot.lane.b32.xlu0 %v1666_v19, %s6103_s12 }
 0x108   : > { %1425 = vrot.lane.b32.xlu1 %v1411_v59, %s6080_s21 }
 0x109   : > { %v4204_v29 = vpop.permute.xlu1 %1637  ;;  %v4206_v41 = vpop.permute.xlu0 %795 }
 0x10a   : > { %6108 = vst [vmem:[#allocation27_spill] sm:$0xff] %v4204_v29  ;;  %6109 = vst [vmem:[#allocation28_spill] sm:$0xff] %v4206_v41 }
 0x10b   : > { %1834 = vrot.lane.b32.xlu0 %v4202_v17, %s6110_s15 }
 0x10c   : > { %1612 = vrot.lane.b32.xlu1 %v1601_v11, %s6081_s11 }
 0x10e   : > { %v4219_v19 = vpop.permute.xlu1 %769  ;;  %v4221_v30 = vpop.permute.xlu0 %1473 }
 0x10f   : > { %6111 = vst [vmem:[#allocation29_spill] sm:$0xff] %v4219_v19  ;;  %6112 = vst [vmem:[#allocation30_spill] sm:$0xff] %v4221_v30  ;;  %1838 = vrot.lane.b32.xlu0 %v1824_v53, %s6110_s15  ;;  %v554_v53 = vld [vmem:[#allocation2 + $0x8] sm:$0xf] }
 0x110   : > { %1614 = vrot.lane.b32.xlu1 %v1611_v49, %s6081_s11  ;;  %v1914_v49 = vld [vmem:[%s5860_s4] sm:$0xf]  ;;  %s6134_s11 = smov 47  }
 0x112   : > { %v4227_v59 = vpop.permute.xlu0 %468 }
 0x113   : > { %v4229_v45 = vpop.permute.xlu1 %1003  ;;  %1867 = vrot.lane.b32.xlu0 %v1864_v5, %s6114_s24 }
 0x114   : > { %6113 = vst [vmem:[#allocation31_spill] sm:$0xff] %v4229_v45  ;;  %1643 = vrot.lane.b32.xlu1 %v4029_v54, %s6082_s20  ;;  %v1880_v45 = vld [vmem:[#allocation2 + $0xc] sm:$0xf] }
 0x116   : > { %v4239_v11 = vpop.permute.xlu0 %472 }
 0x117   : > { %1951 = vperm.xlu0 %3426, %v1948_v16  }
 0x118   : > { %v4241_v42 = vpop.permute.xlu1 %1448  ;;  %1647 = vrot.lane.b32.xlu1 %v1633_v3, %s6082_s20  ;;  %s3576_s20 = smov 32   ;;  %v791_v3 = vld [vmem:[#allocation2 + $0x8] sm:$0xf] }
 0x119   : > { %6116 = vst [vmem:[#allocation32_spill] sm:$0xff] %v4241_v42 }
 0x11a   : > { %v4247_v54 = vpop.permute.xlu0 %504 }
 0x11b   : > { %568 = vrot.lane.b32.xlu0 %v554_v53, %s3574_s22  ;;  %v3577_v53 = vmov 12  }
 0x11c   : > { %1917 = vperm.xlu1 %3419, %v1914_v49   ;;  %3430 = vset.pattern.permute.xlu0 %v3575_v9  ;;  %v6119_v49 = vrot.slane %v3885_v44, 4  ;;  %v1025_v44 = vld [vmem:[#allocation2 + $0x8] sm:$0xf] }
 0x11d   : > { %v4252_v5 = vpop.permute.xlu1 %1670 }
 0x11e   : > { %6117 = vst [vmem:[#allocation33_spill] sm:$0xff] %v4252_v5  ;;  %v4254_v16 = vpop.permute.xlu0 %594  ;;  %v528_v7 = vmul.f32 %v6119_v49, %v518_v18  ;;  %v4337_v5 = vld [vmem:[#allocation2 + $0x4] sm:$0xff] }
 0x11f   : > { %6118 = vst [vmem:[#allocation34_spill] sm:$0xff] %v4254_v16  ;;  %801 = vrot.lane.b32.xlu0 %v4250_v36, %s3576_s20  ;;  %v6121_v16 = vrot.slane %v3883_v43, 4 }
 0x120   : > { %538 = vrot.lane.b32.xlu1 %v4051_v14, %s6083_s29 }
 0x121   : > { %3421 = vset.pattern.permute.xlu1 %v3577_v53  ;;  %v761_v41 = vsel %vm6014_vm8, %v6121_v16, %v3883_v43  ;;  %vm1214_vm8 = vcmask 15360  }
 0x122   : > { %v4262_v9 = vpop.permute.xlu1 %1859  ;;  %v4264_v30 = vpop.permute.xlu0 %711  ;;  %v764_v14 = vmul.f32 %v761_v41, %v3820_v2  ;;  %v862_v41 = vld [vmem:[%s5860_s4] sm:$0xf] }
 0x123   : > { %6120 = vst [vmem:[#allocation35_spill] sm:$0xff] %v4262_v9  ;;  %805 = vrot.lane.b32.xlu0 %v791_v3, %s3576_s20 }
 0x124   : > { %542 = vrot.lane.b32.xlu1 %v528_v7, %s6083_s29  ;;  %v774_v18 = vcombine.high %v764_v14, %v764_v14  ;;  %v1348_v7 = vld [vmem:[%s5860_s4] sm:$0xf]  ;;  %s6018_s29 = smov 112  }
 0x126   : > { %v4273_v4 = vpop.permute.xlu0 %742 }
 0x127   : > { %v4275_v53 = vpop.permute.xlu1 %558  ;;  %1035 = vrot.lane.b32.xlu0 %v4250_v36, %s6015_s30 }
 0x128   : > { %6122 = vst [vmem:[#allocation36_spill] sm:$0xff] %v4275_v53  ;;  %775 = vrot.lane.b32.xlu1 %v764_v14, %s6086_s25  ;;  %v459_v14 = vld [vmem:[%s5860_s4] sm:$0xf]  ;;  %v3580_v53 = vmov 19  }
 0x12a   : > { %v4280_v49 = vpop.permute.xlu0 %830 }
 0x12b   : > { %6123 = vst [vmem:[#allocation37_spill] sm:$0xff] %v4280_v49  ;;  %1039 = vrot.lane.b32.xlu0 %v1025_v44, %s6015_s30  ;;  %v1008_v44 = vcombine.high %v4098_v51, %v4098_v51  ;;  %v5970_v49 = vmov 0   ;;  %v1242_v51 = vcombine.high %v4132_v35, %v4132_v35  ;;  %v1315_v35 = vld [vmem:[%s5860_s4] sm:$0xf] }
 0x12c   : > { %v4283_v43 = vpop.permute.xlu1 %1029  ;;  %777 = vrot.lane.b32.xlu1 %v774_v18, %s6086_s25  ;;  %s6161_s25 = smov 46  }
 0x12d   : > { %6124 = vst [vmem:[#allocation38_spill] sm:$0xff] %v4283_v43 }
 0x12e   : > { %v4292_v16 = vpop.permute.xlu0 %945 }
 0x12f   : > { %1351 = vperm.xlu0 %3430, %v1348_v7   ;;  %v1469_v7 = vld [vmem:[#allocation2 + $0xc] sm:$0xf] }
 0x130   : > { %865 = vperm.xlu1 %3421, %v862_v41   ;;  %v1096_v41 = vld [vmem:[%s5860_s4] sm:$0xf] }
 0x131   : > { %v4294_v3 = vpop.permute.xlu1 %1262 }
 0x132   : > { %v4301_v18 = vpop.permute.xlu0 %976 }
 0x133   : > { %3431 = vset.pattern.permute.xlu0 %v5970_v49 }
 0x134   : > { %462 = vperm.xlu0 %3431, %v459_v14   ;;  %1011 = vrot.lane.b32.xlu1 %v1008_v44, %s6089_s23  ;;  %v4318_v44 = vld [vmem:[#allocation2 + $0x4] sm:$0xff] }
 0x135   : > { %3422 = vset.pattern.permute.xlu1 %v3580_v53  ;;  %v1883_v53 = vrot.slane %v3933_v24, 4 }
 0x136   : > { %v4308_v43 = vpop.permute.xlu1 %1695  ;;  %v4310_v9 = vpop.permute.xlu0 %1064 }
 0x137   : > { %6125 = vst [vmem:[#allocation39_spill] sm:$0xff] %v4308_v43  ;;  %6126 = vst [vmem:[#allocation40_spill] sm:$0xff] %v4310_v9  ;;  %v1884_v43 = vsel %vm6026_vm2, %v1883_v53, %v3933_v24  ;;  %v3584_v24 = vmov 33   ;;  %vm6051_vm2 = vcmask 400384  }
 0x138   : > { %1483 = vrot.lane.b32.xlu0 %v1469_v7, %s6018_s29  ;;  %1099 = vperm.xlu1 %3422, %v1096_v41   ;;  %v3583_v7 = vmov 26   ;;  %v1691_v41 = vld [vmem:[#allocation2 + $0xc] sm:$0xf] }
 0x13a   : > { %v4315_v14 = vpop.permute.xlu0 %1179 }
 0x13b   : > { %6127 = vst [vmem:[#allocation41_spill] sm:$0xff] %v4315_v14  ;;  %v4320_v49 = vpop.permute.xlu1 %1892 }
 0x13c   : > { %6128 = vst [vmem:[#allocation42_spill] sm:$0xff] %v4320_v49  ;;  %1701 = vrot.lane.b32.xlu0 %v4318_v44, %s3582_s19  ;;  %1245 = vrot.lane.b32.xlu1 %v1242_v51, %s6094_s27  ;;  %v1453_v51 = vcombine.high %v4156_v60, %v4156_v60  ;;  %v1537_v60 = vld [vmem:[%s5860_s4] sm:$0xf] }
 0x13d   : > { %3423 = vset.pattern.permute.xlu1 %v3583_v7  ;;  %v4340_v7 = vmul.f32 %v4337_v5, %v1884_v43  ;;  %v1888_v43 = vmul.f32 %v1883_v53, %v1880_v45  ;;  %v580_v53 = vld [vmem:[#allocation2 + $0x8] sm:$0xf] }
 0x13e   : > { %v4328_v9 = vpop.permute.xlu0 %1210 }
 0x13f   : > { %v4332_v49 = vpop.permute.xlu1 %470 }
 0x140   : > { %1705 = vrot.lane.b32.xlu0 %v1691_v41, %s3582_s19  ;;  %1318 = vperm.xlu1 %3423, %v1315_v35   ;;  %v586_v35 = vsel %vm6038_vm3, %v584_v23, %v3931_v20  ;;  %vm1181_vm3 = vcmask 23552  }
 0x142   : > { %v4342_v42 = vpop.permute.xlu0 %1285 }
 0x143   : > { %6129 = vst [vmem:[#allocation43_spill] sm:$0xff] %v4342_v42  ;;  %v4345_v19 = vpop.permute.xlu1 %502  ;;  %v5987_v42 = vrot.slane %v3949_v39, 4 }
 0x144   : > { %1898 = vrot.lane.b32.xlu0 %v4340_v7, %s6130_s26  ;;  %1456 = vrot.lane.b32.xlu1 %v1453_v51, %s6100_s17  ;;  %v1675_v51 = vcombine.high %v4179_v52, %v4179_v52  ;;  %v1759_v52 = vld [vmem:[%s5860_s4] sm:$0xf] }
 0x145   : > { %3424 = vset.pattern.permute.xlu1 %v3584_v24  ;;  %v4364_v24 = vmul.f32 %v3820_v2, %v586_v35  ;;  %v822_v20 = vsel %vm6046_vm4, %v5987_v42, %v3949_v39  ;;  %v4386_v42 = vrot.slane %v3947_v37, 4  ;;  %vm508_vm4 = vcmask 408576  }
 0x146   : > { %v4353_v41 = vpop.permute.xlu0 %1394  ;;  %v4381_v35 = vmul.f32 %v822_v20, %v3820_v2 }
 0x147   : > { %6131 = vst [vmem:[#allocation44_spill] sm:$0xff] %v4353_v41  ;;  %v4358_v22 = vpop.permute.xlu1 %506  ;;  %6136 = vst [vmem:[#allocation48_spill] sm:$0xff] %v4386_v42  ;;  %v4400_v20 = vsel %vm6050_vm9, %v4386_v42, %v3947_v37  ;;  %v1847_v37 = vld [vmem:[#allocation2 + $0xc] sm:$0xf]  ;;  %v1051_v41 = vld [vmem:[#allocation2 + $0x8] sm:$0xf] }
 0x148   : > { %6132 = vst [vmem:[#allocation45_spill] sm:$0xff] %v4358_v22  ;;  %1902 = vrot.lane.b32.xlu0 %v1888_v43, %s6130_s26  ;;  %1540 = vperm.xlu1 %3424, %v1537_v60   ;;  %v3585_v60 = vmov 40   ;;  %v590_v43 = vmul.f32 %v584_v23, %v580_v53  ;;  %v835_v23 = vcombine.high %v4381_v35, %v4381_v35  ;;  %6138 = vst [vmem:[#allocation50_spill] sm:$0xff] %v4400_v20  ;;  %vm474_vm9 = vcmask 416768  }
 0x14a   : > { %v4366_v45 = vpop.permute.xlu0 %1423 }
 0x14b   : > { %6133 = vst [vmem:[#allocation46_spill] sm:$0xff] %v4366_v45  ;;  %v4372_v57 = vpop.permute.xlu1 %707 }
 0x14c   : > { %600 = vrot.lane.b32.xlu0 %v4364_v24, %s6134_s11  ;;  %1678 = vrot.lane.b32.xlu1 %v1675_v51, %s6103_s12  ;;  %v1833_v51 = vcombine.high %v4202_v17, %v4202_v17  ;;  %s6140_s12 = smov 31   ;;  %v3586_v17 = vmov 6  }
 0x14d   : > { %3425 = vset.pattern.permute.xlu1 %v3585_v60  ;;  %v4403_v60 = vrot.slane %v3961_v48, 4 }
 0x14e   : > { %v4383_v29 = vpop.permute.xlu0 %1507 }
 0x14f   : > { %6135 = vst [vmem:[#allocation47_spill] sm:$0xff] %v4383_v29  ;;  %v4388_v50 = vpop.permute.xlu1 %709  ;;  %6139 = vst [vmem:[#allocation51_spill] sm:$0xff] %v4403_v60 }
 0x150   : > { %604 = vrot.lane.b32.xlu0 %v590_v43, %s6134_s11  ;;  %1762 = vperm.xlu1 %3425, %v1759_v52   ;;  %v4411_v52 = vmul.f32 %v4400_v20, %v3820_v2 }
 0x152   : > { %v4395_v53 = vpop.permute.xlu0 %1616 }
 0x153   : > { %6137 = vst [vmem:[#allocation49_spill] sm:$0xff] %v4395_v53  ;;  %v4405_v29 = vpop.permute.xlu1 %740  ;;  %v4418_v53 = vsel %vm1249_vm11, %v4403_v60, %v3961_v48  ;;  %v1060_v48 = vmul.f32 %v4386_v42, %v1051_v41  ;;  %v6003_v41 = vrot.slane %v3971_v8, 4 }
 0x154   : > { %838 = vrot.lane.b32.xlu0 %v835_v23, %s6140_s12  ;;  %1836 = vrot.lane.b32.xlu1 %v1833_v51, %s6110_s15  ;;  %6142 = vst [vmem:[#allocation53_spill] sm:$0xff] %v4418_v53  ;;  %v6144_v51 = vrot.slane %v3920_v0, 4  ;;  %s6149_s15 = smov 127  }
 0x155   : > { %3427 = vset.pattern.permute.xlu1 %v3586_v17  ;;  %v4430_v17 = vmul.f32 %v4337_v5, %v4418_v53 }
 0x156   : > { %v4413_v43 = vpop.permute.xlu0 %1645  ;;  %v1855_v23 = vmul.f32 %v6144_v51, %v1847_v37 }
 0x157   : > { %6141 = vst [vmem:[#allocation52_spill] sm:$0xff] %v4413_v43  ;;  %v4420_v58 = vpop.permute.xlu1 %744  ;;  %v4436_v43 = vrot.slane %v3959_v47, 4  ;;  %v1290_v0 = vcombine.high %v4430_v17, %v4430_v17 }
 0x158   : > { %1070 = vrot.lane.b32.xlu0 %v4411_v52, %s6143_s28  ;;  %1865 = vrot.lane.b32.xlu1 %v4217_v38, %s6114_s24 }
 0x159   : > { %6146 = vst [vmem:[#allocation55_spill] sm:$0xff] %v4436_v43  ;;  %v4449_v37 = vsel %vm1015_vm6, %v4436_v43, %v3959_v47  ;;  %v1721_v47 = vsel %vm781_vm14, %v6003_v41, %v3971_v8 }
 0x15a   : > { %v4432_v20 = vpop.permute.xlu0 %1729  ;;  %6148 = vst [vmem:[#allocation57_spill] sm:$0xff] %v4449_v37 }
 0x15b   : > { %6145 = vst [vmem:[#allocation54_spill] sm:$0xff] %v4432_v20  ;;  %v4438_v63 = vpop.permute.xlu1 %941  ;;  %v1495_v20 = vld [vmem:[#allocation2 + $0xc] sm:$0xf] }
 0x15c   : > { %1074 = vrot.lane.b32.xlu0 %v1060_v48, %s6143_s28  ;;  %1869 = vrot.lane.b32.xlu1 %v1855_v23, %s6114_s24  ;;  %v800_v48 = vcombine.high %v4250_v36, %v4250_v36  ;;  %v4461_v23 = vmul.f32 %v4337_v5, %v4449_v37  ;;  %s6151_s24 = smov 111  }
 0x15e   : > { %v4444_v38 = vpop.permute.xlu0 %540 }
 0x15f   : > { %6147 = vst [vmem:[#allocation56_spill] sm:$0xff] %v4444_v38  ;;  %v4452_v51 = vpop.permute.xlu1 %943 }
 0x160   : > { %1293 = vrot.lane.b32.xlu0 %v1290_v0, %s6149_s15  ;;  %564 = vrot.lane.b32.xlu1 %v4250_v36, %s3574_s22  ;;  %v663_v36 = vld [vmem:[%s5860_s4] sm:$0xf]  ;;  %v4478_v0 = vmul.f32 %v4337_v5, %v1721_v47  ;;  %v3587_v47 = vmov 13  }
 0x162   : > { %v4463_v42 = vpop.permute.xlu0 %630  ;;  %v1734_v38 = vcombine.high %v4478_v0, %v4478_v0 }
 0x163   : > { %6150 = vst [vmem:[#allocation58_spill] sm:$0xff] %v4463_v42  ;;  %v4469_v53 = vpop.permute.xlu1 %974  ;;  %v1503_v42 = vmul.f32 %v4436_v43, %v1495_v20  ;;  %v897_v20 = vld [vmem:[%s5860_s4] sm:$0xf] }
 0x164   : > { %1513 = vrot.lane.b32.xlu0 %v4461_v23, %s6151_s24  ;;  %566 = vrot.lane.b32.xlu1 %v800_v48, %s3574_s22  ;;  %s6155_s22 = smov 95  }
 0x166   : > { %v4480_v37 = vpop.permute.xlu0 %779 }
 0x167   : > { %6152 = vst [vmem:[#allocation59_spill] sm:$0xff] %v4480_v37  ;;  %v4483_v41 = vpop.permute.xlu1 %978  ;;  %v6013_v37 = vrot.slane %v3983_v31, 4 }
 0x168   : > { %1517 = vrot.lane.b32.xlu0 %v1503_v42, %s6151_s24  ;;  %666 = vperm.xlu1 %3427, %v663_v36   ;;  %v620_v42 = vrot.slane %v3967_v61, 4 }
 0x16a   : > { %v4488_v45 = vpop.permute.xlu0 %1009 }
 0x16b   : > { %6153 = vst [vmem:[#allocation60_spill] sm:$0xff] %v4488_v45  ;;  %v4490_v21 = vpop.permute.xlu1 %1175 }
 0x16c   : > { %6154 = vst [vmem:[#allocation61_spill] sm:$0xff] %v4490_v21  ;;  %1737 = vrot.lane.b32.xlu0 %v1734_v38, %s6155_s22  ;;  %803 = vrot.lane.b32.xlu1 %v800_v48, %s3576_s20  ;;  %v1913_v38 = vld [vmem:[#allocation2 + $0xc] sm:$0xf]  ;;  %v857_v21 = vsel %vm856_vm7, %v6013_v37, %v3983_v31  ;;  %v3590_v37 = vmov 34   ;;  %s6166_s20 = smov 30  }
 0x16d   : > { %3428 = vset.pattern.permute.xlu1 %v3587_v47  ;;  %v622_v47 = vsel %vm6045_vm5, %v620_v42, %v3967_v61  ;;  %v616_v61 = vld [vmem:[#allocation2 + $0x8] sm:$0xf]  ;;  %vm713_vm5 = vcmask 285696  }
 0x16e   : > { %v4497_v43 = vpop.permute.xlu0 %1013 }
 0x16f   : > { %6156 = vst [vmem:[#allocation62_spill] sm:$0xff] %v4497_v43  ;;  %v4500_v36 = vpop.permute.xlu1 %1177  ;;  %v3589_v43 = vmov 20  }
 0x170   : > { %6157 = vst [vmem:[#allocation63_spill] sm:$0xff] %v4500_v36  ;;  %1923 = vrot.lane.b32.xlu0 %v4318_v44, %s6024_s18  ;;  %900 = vperm.xlu1 %3428, %v897_v20   ;;  %v1131_v20 = vld [vmem:[%s5860_s4] sm:$0xf] }
 0x172   : > { %v4504_v45 = vpop.permute.xlu0 %1243 }
 0x173   : > { %6158 = vst [vmem:[#allocation64_spill] sm:$0xff] %v4504_v45  ;;  %v4509_v14 = vpop.permute.xlu1 %1208  ;;  %v4517_v45 = vmul.f32 %v3820_v2, %v622_v47 }
 0x174   : > { %1927 = vrot.lane.b32.xlu0 %v1913_v38, %s6024_s18  ;;  %1037 = vrot.lane.b32.xlu1 %v800_v48, %s6015_s30  ;;  %v4530_v48 = vmul.f32 %v857_v21, %v3820_v2  ;;  %v4544_v21 = vcombine.high %v4318_v44, %v4318_v44  ;;  %s6178_s30 = smov 110   ;;  %s6185_s18 = smov 79  }
 0x175   : > { %3429 = vset.pattern.permute.xlu1 %v3589_v43  ;;  %v626_v43 = vmul.f32 %v620_v42, %v616_v61  ;;  %v1086_v61 = vld [vmem:[#allocation2 + $0x8] sm:$0xf] }
 0x176   : > { %v4519_v1 = vpop.permute.xlu0 %1247  ;;  %v870_v42 = vcombine.high %v4530_v48, %v4530_v48 }
 0x177   : > { %6159 = vst [vmem:[#allocation65_spill] sm:$0xff] %v4519_v1  ;;  %v4525_v38 = vpop.permute.xlu1 %1212  ;;  %v1089_v1 = vrot.slane %v3985_v32, 4 }
 0x178   : > { %6160 = vst [vmem:[#allocation66_spill] sm:$0xff] %v4525_v38  ;;  %636 = vrot.lane.b32.xlu0 %v4517_v45, %s6161_s25  ;;  %1134 = vperm.xlu1 %3429, %v1131_v20  }
 0x179   : > { %v1091_v20 = vsel %vm1090_vm1, %v1089_v1, %v3985_v32  ;;  %v1095_v25 = vmul.f32 %v1089_v1, %v1086_v61  ;;  %v1792_v1 = vld [vmem:[%s5860_s4] sm:$0xf] }
 0x17a   : > { %v4532_v47 = vpop.permute.xlu0 %1454 }
 0x17b   : > { %6162 = vst [vmem:[#allocation67_spill] sm:$0xff] %v4532_v47  ;;  %v4535_v36 = vpop.permute.xlu1 %1390  ;;  %v4559_v47 = vld [vmem:[#allocation2] sm:$0xff] }
 0x17c   : > { %6163 = vst [vmem:[#allocation68_spill] sm:$0xff] %v4535_v36  ;;  %640 = vrot.lane.b32.xlu0 %v626_v43, %s6161_s25  ;;  %1479 = vrot.lane.b32.xlu1 %v4318_v44, %s6018_s29  ;;  %v6168_v36 = vrot.slane %v4001_v55, 4 }
 0x17d   : > { %3432 = vset.pattern.permute.xlu1 %v3590_v37  ;;  %v1570_v37 = vld [vmem:[%s5860_s4] sm:$0xf] }
 0x17e   : > { %v4546_v2 = vpop.permute.xlu0 %1458 }
 0x17f   : > { %6164 = vst [vmem:[#allocation69_spill] sm:$0xff] %v4546_v2  ;;  %v4551_v43 = vpop.permute.xlu1 %1392  ;;  %v4562_v2 = vmul.f32 %v4559_v47, %v1091_v20 }
 0x180   : > { %6165 = vst [vmem:[#allocation70_spill] sm:$0xff] %v4551_v43  ;;  %873 = vrot.lane.b32.xlu0 %v870_v42, %s6166_s20  ;;  %1481 = vrot.lane.b32.xlu1 %v4544_v21, %s6018_s29  ;;  %v1310_v42 = vsel %vm1214_vm8, %v6168_v36, %v4001_v55  ;;  %s6170_s29 = smov 14   ;;  %v3591_v36 = vmov 41  }
 0x181   : > { %v4575_v22 = vmul.f32 %v4337_v5, %v1310_v42 }
 0x182   : > { %v4564_v32 = vpop.permute.xlu0 %1676 }
 0x183   : > { %6167 = vst [vmem:[#allocation71_spill] sm:$0xff] %v4564_v32  ;;  %v4570_v43 = vpop.permute.xlu1 %1421  ;;  %v1531_v32 = vrot.slane %v4004_v15, 4  ;;  %v1323_v61 = vcombine.high %v4575_v22, %v4575_v22 }
 0x184   : > { %6169 = vst [vmem:[#allocation72_spill] sm:$0xff] %v4570_v43  ;;  %1105 = vrot.lane.b32.xlu0 %v4562_v2, %s6170_s29  ;;  %1573 = vperm.xlu1 %3432, %v1570_v37  }
 0x185   : > { %v1532_v42 = vsel %vm980_vm10, %v1531_v32, %v4004_v15 }
 0x186   : > { %v4577_v20 = vpop.permute.xlu0 %1680 }
 0x187   : > { %6171 = vst [vmem:[#allocation73_spill] sm:$0xff] %v4577_v20  ;;  %v4580_v38 = vpop.permute.xlu1 %1425  ;;  %v6025_v20 = vrot.slane %v4016_v13, 4 }
 0x188   : > { %6172 = vst [vmem:[#allocation74_spill] sm:$0xff] %v4580_v38  ;;  %1109 = vrot.lane.b32.xlu0 %v1095_v25, %s6170_s29  ;;  %1703 = vrot.lane.b32.xlu1 %v4544_v21, %s3582_s19  ;;  %s6175_s19 = smov 126   ;;  %v1897_v38 = vcombine.high %v4340_v7, %v4340_v7  ;;  %v1981_v7 = vld [vmem:[%s5860_s4] sm:$0xf] }
 0x189   : > { %3433 = vset.pattern.permute.xlu1 %v3591_v36  ;;  %v4599_v36 = vmul.f32 %v4337_v5, %v1532_v42  ;;  %v1754_v15 = vsel %vm746_vm0, %v6025_v20, %v4016_v13  ;;  %v1942_v20 = vrot.slane %v4022_v34, 4 }
 0x18a   : > { %v4590_v37 = vpop.permute.xlu0 %1834  ;;  %v4618_v42 = vmul.f32 %v4337_v5, %v1754_v15 }
 0x18b   : > { %6173 = vst [vmem:[#allocation75_spill] sm:$0xff] %v4590_v37  ;;  %v4595_v25 = vpop.permute.xlu1 %1612  ;;  %v1528_v37 = vld [vmem:[#allocation2 + $0xc] sm:$0xf] }
 0x18c   : > { %6174 = vst [vmem:[#allocation76_spill] sm:$0xff] %v4595_v25  ;;  %1326 = vrot.lane.b32.xlu0 %v1323_v61, %s6175_s19  ;;  %1795 = vperm.xlu1 %3433, %v1792_v1   ;;  %v3592_v1 = vmov 47   ;;  %v1536_v61 = vmul.f32 %v1531_v32, %v1528_v37  ;;  %v1943_v37 = vsel %vm6051_vm2, %v1942_v20, %v4022_v34 }
 0x18e   : > { %v4603_v43 = vpop.permute.xlu0 %1838 }
 0x18f   : > { %6176 = vst [vmem:[#allocation77_spill] sm:$0xff] %v4603_v43  ;;  %v4609_v26 = vpop.permute.xlu1 %1614 }
 0x190   : > { %6177 = vst [vmem:[#allocation78_spill] sm:$0xff] %v4609_v26  ;;  %1546 = vrot.lane.b32.xlu0 %v4599_v36, %s6178_s30  ;;  %1900 = vrot.lane.b32.xlu1 %v1897_v38, %s6130_s26  ;;  %v599_v38 = vcombine.high %v4364_v24, %v4364_v24  ;;  %s6182_s26 = smov 94   ;;  %v817_v26 = vld [vmem:[#allocation2 + $0x8] sm:$0xf] }
 0x191   : > { %3434 = vset.pattern.permute.xlu1 %v3592_v1  ;;  %v1767_v1 = vcombine.high %v4618_v42, %v4618_v42 }
 0x192   : > { %v4620_v43 = vpop.permute.xlu0 %1867 }
 0x193   : > { %6179 = vst [vmem:[#allocation79_spill] sm:$0xff] %v4620_v43  ;;  %v4623_v25 = vpop.permute.xlu1 %1643  ;;  %v3593_v43 = vmov 48  }
 0x194   : > { %6180 = vst [vmem:[#allocation80_spill] sm:$0xff] %v4623_v25  ;;  %1550 = vrot.lane.b32.xlu0 %v1536_v61, %s6178_s30  ;;  %1984 = vperm.xlu1 %3434, %v1981_v7   ;;  %v4639_v7 = vmul.f32 %v4337_v5, %v1943_v37  ;;  %v1939_v61 = vld [vmem:[#allocation2 + $0xc] sm:$0xf] }
 0x195   : > { %v1947_v34 = vmul.f32 %v1942_v20, %v1939_v61  ;;  %v890_v61 = vrot.slane %v4040_v10, 4 }
 0x196   : > { %v4630_v32 = vpop.permute.xlu0 %1951 }
 0x197   : > { %6181 = vst [vmem:[#allocation81_spill] sm:$0xff] %v4630_v32  ;;  %v4634_v15 = vpop.permute.xlu1 %1647  ;;  %v656_v32 = vrot.slane %v4032_v62, 4 }
 0x198   : > { %1770 = vrot.lane.b32.xlu0 %v1767_v1, %s6182_s26  ;;  %602 = vrot.lane.b32.xlu1 %v599_v38, %s6134_s11  ;;  %s6191_s11 = smov 45  }
 0x199   : > { %3435 = vset.pattern.permute.xlu1 %v3593_v43  ;;  %v6186_v43 = vrot.slane %v3949_v39, 4  ;;  %v658_v37 = vsel %vm6040_vm12, %v656_v32, %v4032_v62  ;;  %vm947_vm12 = vcmask 154624  }
 0x19a   : > { %v4641_v24 = vpop.permute.xlu0 %568 }
 0x19b   : > { %6183 = vst [vmem:[#allocation82_spill] sm:$0xff] %v4641_v24  ;;  %v4644_v25 = vpop.permute.xlu1 %1917  ;;  %v826_v38 = vmul.f32 %v6186_v43, %v817_v26 }
 0x19c   : > { %6184 = vst [vmem:[#allocation83_spill] sm:$0xff] %v4644_v25  ;;  %1957 = vrot.lane.b32.xlu0 %v4639_v7, %s6185_s18  ;;  %836 = vrot.lane.b32.xlu1 %v4381_v35, %s6140_s12  ;;  %v1069_v25 = vcombine.high %v4411_v52, %v4411_v52  ;;  %v661_v35 = vmul.f32 %v4559_v47, %v658_v37 }
 0x19e   : > { %v4652_v1 = vpop.permute.xlu0 %801  ;;  %v671_v62 = vcombine.high %v661_v35, %v661_v35 }
 0x19f   : > { %6187 = vst [vmem:[#allocation84_spill] sm:$0xff] %v4652_v1  ;;  %v4656_v24 = vpop.permute.xlu1 %538 }
 0x1a0   : > { %6188 = vst [vmem:[#allocation85_spill] sm:$0xff] %v4656_v24  ;;  %1961 = vrot.lane.b32.xlu0 %v1947_v34, %s6185_s18  ;;  %840 = vrot.lane.b32.xlu1 %v826_v38, %s6140_s12  ;;  %v652_v34 = vld [vmem:[#allocation2 + $0x8] sm:$0xf]  ;;  %v1273_v38 = vld [vmem:[#allocation2 + $0xc] sm:$0xf]  ;;  %v1342_v24 = vrot.slane %v4061_v28, 4 }
 0x1a1   : > { %v662_v52 = vmul.f32 %v656_v32, %v652_v34  ;;  %v1281_v37 = vmul.f32 %v4403_v60, %v1273_v38  ;;  %v1124_v60 = vrot.slane %v4058_v33, 4  ;;  %s6201_s12 = smov 80  }
 0x1a2   : > { %v4663_v20 = vpop.permute.xlu0 %805 }
 0x1a3   : > { %6189 = vst [vmem:[#allocation86_spill] sm:$0xff] %v4663_v20  ;;  %v4665_v39 = vpop.permute.xlu1 %542  ;;  %v1126_v1 = vsel %vm1125_vm15, %v1124_v60, %v4058_v33 }
 0x1a4   : > { %6190 = vst [vmem:[#allocation87_spill] sm:$0xff] %v4665_v39  ;;  %672 = vrot.lane.b32.xlu0 %v661_v35, %s6191_s11  ;;  %1072 = vrot.lane.b32.xlu1 %v1069_v25, %s6143_s28  ;;  %v4684_v35 = vld [vmem:[%s363_s1] sm:$0x1]  ;;  %s6196_s1 = smov 29  }
 0x1a6   : > { %v4669_v26 = vpop.permute.xlu0 %1035 }
 0x1a7   : > { %6192 = vst [vmem:[#allocation88_spill] sm:$0xff] %v4669_v26  ;;  %v4672_v43 = vpop.permute.xlu1 %775  ;;  %v892_v26 = vsel %vm891_vm13, %v890_v61, %v4040_v10 }
 0x1a8   : > { %674 = vrot.lane.b32.xlu0 %v671_v62, %s6191_s11  ;;  %1291 = vrot.lane.b32.xlu1 %v4430_v17, %s6149_s15  ;;  %v4693_v62 = vmul.f32 0.70710677, %v4684_v35  ;;  %v1512_v17 = vcombine.high %v4461_v23, %v4461_v23  ;;  %v895_v32 = vmul.f32 %v4559_v47, %v892_v26  ;;  %v1717_v26 = vld [vmem:[#allocation2 + $0xc] sm:$0xf] }
 0x1aa   : > { %v4681_v25 = vpop.permute.xlu0 %1039  ;;  %v4705_v10 = vand.u32 2147483647, %v4693_v62  ;;  %vm2052_vm2 = vcmp.lt.f32.partialorder %v4693_v62, 0.0 }
 0x1ab   : > { %6193 = vst [vmem:[#allocation89_spill] sm:$0xff] %v4681_v25  ;;  %v4688_v20 = vpop.permute.xlu1 %777 }
 0x1ac   : > { %676 = vrot.lane.b32.xlu0 %v662_v52, %s6191_s11  ;;  %1295 = vrot.lane.b32.xlu1 %v1281_v37, %s6149_s15  ;;  %v905_v52 = vcombine.high %v895_v32, %v895_v32  ;;  %v887_v37 = vld [vmem:[#allocation2 + $0x8] sm:$0xf]  ;;  %s6200_s11 = smov 13  }
 0x1ae   : > { %v4698_v34 = vpop.permute.xlu0 %1351 }
 0x1af   : > { %6194 = vst [vmem:[#allocation90_spill] sm:$0xff] %v4698_v34  ;;  %v4700_v38 = vpop.permute.xlu1 %865  ;;  %v896_v34 = vmul.f32 %v890_v61, %v887_v37 }
 0x1b0   : > { %6195 = vst [vmem:[#allocation91_spill] sm:$0xff] %v4700_v38  ;;  %906 = vrot.lane.b32.xlu0 %v895_v32, %s6196_s1  ;;  %1515 = vrot.lane.b32.xlu1 %v1512_v17, %s6151_s24  ;;  %v2055_v17 = vmul.f32 0.3275911, %v4705_v10  ;;  %v6198_v38 = vrot.slane %v3971_v8, 4 }
 0x1b2   : > { %v1725_v32 = vmul.f32 %v6198_v38, %v1717_v26 }
 0x1b3   : > { %v4708_v25 = vpop.permute.xlu0 %462  ;;  %v4710_v23 = vpop.permute.xlu1 %1011 }
 0x1b4   : > { %6197 = vst [vmem:[#allocation92_spill] sm:$0xff] %v4708_v25  ;;  %908 = vrot.lane.b32.xlu0 %v905_v52, %s6196_s1  ;;  %1735 = vrot.lane.b32.xlu1 %v4478_v0, %s6155_s22  ;;  %v2056_v52 = vadd.f32 1.0, %v2055_v17  ;;  %v1129_v0 = vmul.f32 %v4559_v47, %v1126_v1  ;;  %v1343_v47 = vsel %vm1181_vm3, %v1342_v24, %v4061_v28  ;;  %v1121_v1 = vld [vmem:[#allocation2 + $0x8] sm:$0xf] }
 0x1b5   : > { %v4746_v26 = vmul.f32 %v4337_v5, %v1343_v47  ;;  %v1130_v17 = vmul.f32 %v1124_v60, %v1121_v1  ;;  %v1339_v60 = vld [vmem:[#allocation2 + $0xc] sm:$0xf]  ;;  %v6047_v47 = vrot.slane %v4067_v56, 4 }
 0x1b6   : > { %3461 = vrcp.f32 %v2056_v52  ;;  %v1139_v33 = vcombine.high %v1129_v0, %v1129_v0 }
 0x1b7   : > { %v4720_v39 = vpop.permute.xlu0 %1483  ;;  %v4722_v25 = vpop.permute.xlu1 %1099  ;;  %v1356_v28 = vcombine.high %v4746_v26, %v4746_v26 }
 0x1b8   : > { %6199 = vst [vmem:[#allocation93_spill] sm:$0xff] %v4722_v25  ;;  %910 = vrot.lane.b32.xlu0 %v896_v34, %s6196_s1  ;;  %1739 = vrot.lane.b32.xlu1 %v1725_v32, %s6155_s22  ;;  %v2014_v34 = vld [vmem:[%s5860_s4] sm:$0xf]  ;;  %v635_v32 = vcombine.high %v4517_v45, %v4517_v45  ;;  %s6206_s22 = smov 125  }
 0x1bb   : > { %v4728_v61 = vpop.permute.xlu0 %1701  ;;  %v4730_v8 = vpop.permute.xlu1 %1245 }
 0x1bc   : > { %1140 = vrot.lane.b32.xlu0 %v1129_v0, %s6200_s11  ;;  %1925 = vrot.lane.b32.xlu1 %v4544_v21, %s6201_s12 }
 0x1bf   : > { %v4740_v38 = vpop.permute.xlu0 %1705  ;;  %v4742_v37 = vpop.permute.xlu1 %1318 }
 0x1c0   : > { %6202 = vst [vmem:[#allocation94_spill] sm:$0xff] %v4742_v37  ;;  %1142 = vrot.lane.b32.xlu0 %v1139_v33, %s6200_s11  ;;  %2017 = vperm.xlu1 %3435, %v2014_v34   ;;  %v6041_v33 = vmov 1   ;;  %v4759_v34 = vpop.eup %3461  ;;  %v852_v37 = vld [vmem:[#allocation2 + $0x8] sm:$0xf] }
 0x1c3   : > { %v4750_v52 = vpop.permute.xlu0 %1898  ;;  %v4752_v0 = vpop.permute.xlu1 %1456 }
 0x1c4   : > { %6203 = vst [vmem:[#allocation95_spill] sm:$0xff] %v4750_v52  ;;  %1144 = vrot.lane.b32.xlu0 %v1130_v17, %s6200_s11  ;;  %638 = vrot.lane.b32.xlu1 %v635_v32, %s6161_s25  ;;  %v1347_v17 = vmul.f32 %v1342_v24, %v1339_v60  ;;  %v2059_v32 = vmul.f32 1.0614054, %v4759_v34  ;;  %s6210_s25 = smov 109   ;;  %s6452_s11 = smov 16  }
 0x1c5   : > { %3436 = vset.pattern.permute.xlu1 %v6041_v33  ;;  %v6207_v33 = vrot.slane %v3983_v31, 4  ;;  %v1104_v31 = vcombine.high %v4562_v2, %v4562_v2 }
 0x1c6   : > { %v2060_v24 = vadd.f32 -1.4531521, %v2059_v32  ;;  %v1306_v32 = vld [vmem:[#allocation2 + $0xc] sm:$0xf] }
 0x1c7   : > { %v4762_v45 = vpop.permute.xlu0 %1902  ;;  %v4764_v1 = vpop.permute.xlu1 %1540  ;;  %v861_v25 = vmul.f32 %v6207_v33, %v852_v37  ;;  %v1786_v37 = vrot.slane %v4077_v40, 4 }
 0x1c8   : > { %6204 = vst [vmem:[#allocation96_spill] sm:$0xff] %v4762_v45  ;;  %6205 = vst [vmem:[#allocation97_spill] sm:$0xff] %v4764_v1  ;;  %1359 = vrot.lane.b32.xlu0 %v1356_v28, %s6206_s22  ;;  %871 = vrot.lane.b32.xlu1 %v4530_v48, %s6166_s20  ;;  %v1565_v45 = vsel %vm947_vm12, %v6047_v47, %v4067_v56  ;;  %v1783_v47 = vld [vmem:[#allocation2 + $0xc] sm:$0xf] }
 0x1c9   : > { %v1568_v48 = vmul.f32 %v4337_v5, %v1565_v45  ;;  %v1787_v45 = vsel %vm713_vm5, %v1786_v37, %v4077_v40  ;;  %v6212_v40 = vrot.slane %v4001_v55, 4 }
 0x1cb   : > { %v4776_v52 = vpop.permute.xlu1 %1678  ;;  %v4778_v1 = vpop.permute.xlu0 %600  ;;  %v1578_v33 = vcombine.high %v1568_v48, %v1568_v48 }
 0x1cc   : > { %6208 = vst [vmem:[#allocation98_spill] sm:$0xff] %v4778_v1  ;;  %1361 = vrot.lane.b32.xlu0 %v1347_v17, %s6206_s22  ;;  %875 = vrot.lane.b32.xlu1 %v861_v25, %s6166_s20  ;;  %v2061_v25 = vmul.f32 %v4759_v34, %v2060_v24  ;;  %v6049_v17 = vrot.slane %v4088_v27, 4  ;;  %s6215_s20 = smov 78  }
 0x1ce   : > { %v2062_v24 = vadd.f32 1.4214138, %v2061_v25  ;;  %v1791_v25 = vmul.f32 %v1786_v37, %v1783_v47 }
 0x1cf   : > { %v4786_v28 = vpop.permute.xlu1 %1762  ;;  %v4790_v60 = vpop.permute.xlu0 %604 }
 0x1d0   : > { %6209 = vst [vmem:[#allocation99_spill] sm:$0xff] %v4786_v28  ;;  %1579 = vrot.lane.b32.xlu0 %v1568_v48, %s6210_s25  ;;  %1107 = vrot.lane.b32.xlu1 %v1104_v31, %s6170_s29  ;;  %6211 = vst [vmem:[#allocation100_spill] sm:$0xff] %v4790_v60  ;;  %v2068_v48 = vsub.f32 0.0, %v4705_v10  ;;  %v4803_v31 = vmul.f32 %v4337_v5, %v1787_v45  ;;  %v1314_v28 = vmul.f32 %v6212_v40, %v1306_v32  ;;  %s6213_s29 = smov 93  }
 0x1d1   : > { %v1976_v60 = vsel %vm508_vm4, %v6049_v17, %v4088_v27  ;;  %v2063_v45 = vmul.f32 %v4759_v34, %v2062_v24  ;;  %v1545_v32 = vcombine.high %v4599_v36, %v4599_v36  ;;  %v2008_v40 = vrot.slane %v4100_v46, 4 }
 0x1d2   : > { %v4820_v55 = vmul.f32 %v4337_v5, %v1976_v60 }
 0x1d3   : > { %v4796_v2 = vpop.permute.xlu1 %1836  ;;  %v2064_v37 = vadd.f32 -0.28449672, %v2063_v45  ;;  %v2009_v60 = vsel %vm474_vm9, %v2008_v40, %v4100_v46  ;;  %v6216_v45 = vrot.slane %v4016_v13, 4  ;;  %v4863_v13 = vld [vmem:[%s5859_s3] sm:$0xf] }
 0x1d4   : > { %1581 = vrot.lane.b32.xlu0 %v1578_v33, %s6210_s25  ;;  %1324 = vrot.lane.b32.xlu1 %v4575_v22, %s6175_s19  ;;  %v4813_v33 = vpop.permute.xlu0 %838  ;;  %v2069_v22 = vmul.f32 %v2068_v48, %v4705_v10  ;;  %v1989_v10 = vcombine.high %v4820_v55, %v4820_v55  ;;  %v1750_v48 = vld [vmem:[#allocation2 + $0xc] sm:$0xf]  ;;  %v4842_v24 = vmul.f32 %v4337_v5, %v2009_v60 }
 0x1d5   : > { %v1956_v5 = vcombine.high %v4639_v7, %v4639_v7  ;;  %6220 = vst [vmem:[#allocation104_spill] sm:$0xff] %v4863_v13 }
 0x1d7   : > { %v4811_v1 = vpop.permute.xlu1 %1865 }
 0x1d8   : > { %1801 = vrot.lane.b32.xlu0 %v4803_v31, %s6213_s29  ;;  %1328 = vrot.lane.b32.xlu1 %v1314_v28, %s6175_s19  ;;  %v2070_v28 = vmul.f32 1.442695, %v2069_v22  ;;  %v4832_v47 = vpop.permute.xlu0 %1070  ;;  %v2065_v22 = vmul.f32 %v4759_v34, %v2064_v37  ;;  %s6218_s19 = smov 77  }
 0x1d9   : > { %6214 = vst [vmem:[#allocation101_spill] sm:$0xff] %v4832_v47 }
 0x1da   : > { %3463 = vpow2.f32 %v2070_v28  ;;  %v2066_v28 = vadd.f32 0.2548296, %v2065_v22 }
 0x1db   : > { %v4826_v17 = vpop.permute.xlu1 %1869 }
 0x1dc   : > { %1805 = vrot.lane.b32.xlu0 %v1791_v25, %s6213_s29  ;;  %1548 = vrot.lane.b32.xlu1 %v1545_v32, %s6178_s30  ;;  %v2005_v25 = vld [vmem:[#allocation2 + $0xc] sm:$0xf]  ;;  %v1758_v32 = vmul.f32 %v6216_v45, %v1750_v48  ;;  %v4849_v46 = vpop.permute.xlu0 %1074  ;;  %v2067_v60 = vmul.f32 %v4759_v34, %v2066_v28  ;;  %v6224_v45 = vmov 3  }
 0x1dd   : > { %6217 = vst [vmem:[#allocation102_spill] sm:$0xff] %v4849_v46 }
 0x1df   : > { %v4836_v36 = vpop.permute.xlu1 %564 }
 0x1e0   : > { %1992 = vrot.lane.b32.xlu0 %v1989_v10, %s6215_s20  ;;  %1768 = vrot.lane.b32.xlu1 %v4618_v42, %s6182_s26  ;;  %v2013_v42 = vmul.f32 %v2008_v40, %v2005_v25  ;;  %v4865_v37 = vpop.permute.xlu0 %1293 }
 0x1e1   : > { %6221 = vst [vmem:[#allocation105_spill] sm:$0xff] %v4865_v37 }
 0x1e3   : > { %v4847_v47 = vpop.permute.xlu1 %566 }
 0x1e4   : > { %2023 = vrot.lane.b32.xlu0 %v4842_v24, %s6218_s19  ;;  %1772 = vrot.lane.b32.xlu1 %v1758_v32, %s6182_s26  ;;  %v3464_v40 = vpop.eup %3463  ;;  %v4873_v25 = vpop.permute.xlu0 %1513 }
 0x1e5   : > { %v2072_v7 = vmul.f32 %v3464_v40, %v2067_v60  ;;  %6223 = vst [vmem:[#allocation107_spill] sm:$0xff] %v4873_v25  ;;  %v2050_v60 = vmul.f32 0.5, %v4684_v35 }
 0x1e7   : > { %v4856_v10 = vpop.permute.xlu1 %666  ;;  %v2073_v32 = vsub.f32 1.0, %v2072_v7 }
 0x1e8   : > { %6219 = vst [vmem:[#allocation103_spill] sm:$0xff] %v4856_v10  ;;  %2027 = vrot.lane.b32.xlu0 %v2013_v42, %s6218_s19  ;;  %1959 = vrot.lane.b32.xlu1 %v1956_v5, %s6185_s18  ;;  %v6055_v5 = vmov 1.0   ;;  %v4880_v28 = vpop.permute.xlu0 %1517 }
 0x1e9   : > { %v2053_v34 = vsel %vm2052_vm2, -1.0, %v6055_v5  ;;  %6225 = vst [vmem:[#allocation108_spill] sm:$0xff] %v4880_v28  ;;  %vm2085_vm2 = vcmask 125952  }
 0x1ea   : > { %v2074_v10 = vmul.f32 %v2073_v32, %v2053_v34  ;;  %v2077_v32 = vld [vmem:[%s5858_s2] sm:$0xf] }
 0x1eb   : > { %v4868_v48 = vpop.permute.xlu1 %803 }
 0x1ec   : > { %2100 = vperm.xlu0 %3431, %v4863_v13   ;;  %v2075_v40 = vadd.f32 1.0, %v2074_v10  ;;  %v4887_v25 = vpop.permute.xlu0 %1737 }
 0x1ed   : > { %6227 = vst [vmem:[#allocation110_spill] sm:$0xff] %v4887_v25 }
 0x1ee   : > { %v2076_v62 = vmul.f32 %v2075_v40, %v2050_v60 }
 0x1ef   : > { %v4871_v22 = vpop.permute.xlu1 %900 }
 0x1f0   : > { %6222 = vst [vmem:[#allocation106_spill] sm:$0xff] %v4871_v22  ;;  %3438 = vset.pattern.permute.xlu0 %v6224_v45  ;;  %v4891_v7 = vpop.permute.xlu0 %1923  ;;  %v2082_v46 = vrot.slane %v2076_v62, %v3665_v6 }
 0x1f1   : > { %6228 = vst [vmem:[#allocation111_spill] sm:$0xff] %v4891_v7 }
 0x1f2   : > { %v2084_v34 = vmul.f32 %v2082_v46, %v2077_v32  ;;  %v493_v46 = vld [vmem:[%s5860_s4] sm:$0xf] }
 0x1f3   : > { %v4877_v42 = vpop.permute.xlu1 %1037 }
 0x1f4   : > { %v4901_v10 = vpop.permute.xlu0 %1927 }
 0x1f5   : > { %6230 = vst [vmem:[#allocation113_spill] sm:$0xff] %v4901_v10 }
 0x1f7   : > { %v4882_v37 = vpop.permute.xlu1 %1134 }
 0x1f8   : > { %6226 = vst [vmem:[#allocation109_spill] sm:$0xff] %v4882_v37  ;;  %v2086_v37 = vsel %vm2085_vm2, %v2084_v34, 0.0  ;;  %v4905_v40 = vpop.permute.xlu0 %636  ;;  %vm6322_vm2 = vcmask 678912  }
 0x1f9   : > { %6232 = vst [vmem:[#allocation115_spill] sm:$0xff] %v4905_v40 }
 0x1fb   : > { %v4885_v22 = vpop.permute.xlu1 %1479 }
 0x1fc   : > { %v4909_v6 = vpop.permute.xlu0 %640 }
 0x1fd   : > { %6233 = vst [vmem:[#allocation116_spill] sm:$0xff] %v4909_v6 }
 0x1ff   : > { %v4889_v45 = vpop.permute.xlu1 %1481 }
 0x203   : > { %v4894_v5 = vpop.permute.xlu1 %1573 }
 0x204   : > { %6229 = vst [vmem:[#allocation112_spill] sm:$0xff] %v4894_v5  ;;  %v4913_v5 = vpop.permute.xlu0 %873 }
 0x205   : > { %6235 = vst [vmem:[#allocation118_spill] sm:$0xff] %v4913_v5  ;;  %v1800_v5 = vcombine.high %v4803_v31, %v4803_v31  ;;  %v2022_v31 = vcombine.high %v4842_v24, %v4842_v24 }
 0x207   : > { %v4899_v35 = vpop.permute.xlu1 %1703 }
 0x208   : > { %v4920_v34 = vpop.permute.xlu0 %1105 }
 0x209   : > { %6236 = vst [vmem:[#allocation119_spill] sm:$0xff] %v4920_v34  ;;  %v1972_v34 = vld [vmem:[#allocation2 + $0xc] sm:$0xf] }
 0x20b   : > { %v4903_v60 = vpop.permute.xlu1 %1795 }
 0x20c   : > { %6231 = vst [vmem:[#allocation114_spill] sm:$0xff] %v4903_v60  ;;  %2087 = vadd.xlane.f32.xlu1 %v2086_v37  ;;  %v1561_v37 = vld [vmem:[#allocation2 + $0xc] sm:$0xf]  ;;  %v6237_v60 = vrot.slane %v4067_v56, 4  ;;  %v6240_v56 = vrot.slane %v4088_v27, 4 }
 0x20e   : > { %v1569_v6 = vmul.f32 %v6237_v60, %v1561_v37 }
 0x20f   : > { %v4907_v7 = vpop.permute.xlu1 %1900 }
 0x213   : > { %v4911_v62 = vpop.permute.xlu1 %1984 }
 0x214   : > { %6234 = vst [vmem:[#allocation117_spill] sm:$0xff] %v4911_v62  ;;  %v4928_v62 = vpop.permute.xlu0 %1109 }
 0x215   : > { %6238 = vst [vmem:[#allocation120_spill] sm:$0xff] %v4928_v62 }
 0x217   : > { %v4918_v32 = vpop.permute.xlu1 %602 }
 0x21b   : > { %v4926_v40 = vpop.permute.xlu1 %836 }
 0x21d   : > { %496 = vperm.xlu1 %3436, %v493_v46   ;;  %v4936_v46 = vpop.permute.xlu0 %1326 }
 0x21e   : > { %6239 = vst [vmem:[#allocation121_spill] sm:$0xff] %v4936_v46 }
 0x21f   : > { %v4933_v10 = vpop.permute.xlu1 %840 }
 0x221   : > { %1357 = vrot.lane.b32.xlu1 %v4746_v26, %s6206_s22  ;;  %v1980_v26 = vmul.f32 %v6240_v56, %v1972_v34  ;;  %v4944_v37 = vpop.permute.xlu0 %1546  ;;  %v6244_v34 = vmov 2  }
 0x222   : > { %6241 = vst [vmem:[#allocation122_spill] sm:$0xff] %v4944_v37 }
 0x223   : > { %v4942_v60 = vpop.permute.xlu1 %1072 }
 0x225   : > { %1583 = vrot.lane.b32.xlu1 %v1569_v6, %s6210_s25  ;;  %s6451_s25 = smov 112  }
 0x227   : > { %v4949_v6 = vpop.permute.xlu1 %1291 }
 0x229   : > { %1803 = vrot.lane.b32.xlu1 %v1800_v5, %s6213_s29  ;;  %v4952_v5 = vpop.permute.xlu0 %1550 }
 0x22a   : > { %6242 = vst [vmem:[#allocation123_spill] sm:$0xff] %v4952_v5 }
 0x22d   : > { %1990 = vrot.lane.b32.xlu1 %v4820_v55, %s6215_s20  ;;  %v4955_v55 = vpop.permute.xlu1 %1295  ;;  %v4957_v27 = vpop.permute.xlu0 %1770 }
 0x22e   : > { %6243 = vst [vmem:[#allocation124_spill] sm:$0xff] %v4957_v27 }
 0x231   : > { %1994 = vrot.lane.b32.xlu1 %v1980_v26, %s6215_s20  ;;  %v4960_v56 = vpop.permute.xlu1 %1515  ;;  %v4962_v26 = vpop.permute.xlu0 %1957 }
 0x232   : > { %6245 = vst [vmem:[#allocation125_spill] sm:$0xff] %v4960_v56  ;;  %6246 = vst [vmem:[#allocation126_spill] sm:$0xff] %v4962_v26  ;;  %v6278_v56 = vld [vmem:[#allocation70_spill] sm:$0xff] }
 0x235   : > { %2025 = vrot.lane.b32.xlu1 %v2022_v31, %s6218_s19  ;;  %v4964_v37 = vpop.permute.xlu1 %1735  ;;  %v4966_v24 = vpop.permute.xlu0 %1961 }
 0x236   : > { %6247 = vst [vmem:[#allocation127_spill] sm:$0xff] %v4964_v37  ;;  %6248 = vst [vmem:[#allocation128_spill] sm:$0xff] %v4966_v24 }
 0x239   : > { %2092 = vperm.xlu1 %3436, %v4863_v13   ;;  %v4968_v46 = vpop.permute.xlu1 %1739  ;;  %v4970_v31 = vpop.permute.xlu0 %672 }
 0x23a   : > { %6249 = vst [vmem:[#allocation129_spill] sm:$0xff] %v4968_v46  ;;  %6250 = vst [vmem:[#allocation130_spill] sm:$0xff] %v4970_v31 }
 0x23d   : > { %3437 = vset.pattern.permute.xlu1 %v6244_v34  ;;  %v4972_v5 = vpop.permute.xlu1 %1925  ;;  %v4974_v13 = vpop.permute.xlu0 %674 }
 0x23e   : > { %6251 = vst [vmem:[#allocation131_spill] sm:$0xff] %v4972_v5  ;;  %v4996_v5 = vmul.f32 %v4294_v3, %v4318_v44  ;;  %v981_v44 = vsel %vm980_vm10, %v4469_v53, %v4301_v18  ;;  %v6263_v53 = vld [vmem:[#allocation19_spill] sm:$0xff] }
 0x241   : > { %v4976_v62 = vpop.permute.xlu1 %2017  ;;  %v4978_v27 = vpop.permute.xlu0 %676 }
 0x242   : > { %6252 = vst [vmem:[#allocation132_spill] sm:$0xff] %v4976_v62  ;;  %6253 = vst [vmem:[#allocation133_spill] sm:$0xff] %v4978_v27  ;;  %v747_v62 = vsel %vm746_vm0, %v4405_v29, %v4273_v4  ;;  %v5021_v29 = vsel %vm474_vm9, %v4332_v49, %v4239_v11 }
 0x243   : > { %v751_v11 = vmul.f32 %v747_v62, %v4113_v12  ;;  %v6267_v62 = vld [vmem:[#allocation13_spill] sm:$0xff] }
 0x245   : > { %v4980_v34 = vpop.permute.xlu1 %638  ;;  %v4982_v25 = vpop.permute.xlu0 %906 }
 0x246   : > { %6254 = vst [vmem:[#allocation134_spill] sm:$0xff] %v4980_v34  ;;  %6255 = vst [vmem:[#allocation135_spill] sm:$0xff] %v4982_v25  ;;  %v5003_v34 = vmul.f32 %v4544_v21, %v4294_v3  ;;  %v715_v3 = vsel %vm713_vm5, %v4388_v50, %v4264_v30  ;;  %v6264_v21 = vld [vmem:[#allocation66_spill] sm:$0xff]  ;;  %v6265_v30 = vld [vmem:[#allocation45_spill] sm:$0xff] }
 0x247   : > { %v6275_v25 = vld [vmem:[#allocation72_spill] sm:$0xff] }
 0x249   : > { %v4984_v26 = vpop.permute.xlu1 %871  ;;  %v4986_v37 = vpop.permute.xlu0 %908 }
 0x24a   : > { %6256 = vst [vmem:[#allocation136_spill] sm:$0xff] %v4984_v26  ;;  %6257 = vst [vmem:[#allocation137_spill] sm:$0xff] %v4986_v37 }
 0x24d   : > { %v4988_v24 = vpop.permute.xlu1 %875  ;;  %v4990_v46 = vpop.permute.xlu0 %910 }
 0x24e   : > { %6258 = vst [vmem:[#allocation138_spill] sm:$0xff] %v4988_v24  ;;  %6259 = vst [vmem:[#allocation139_spill] sm:$0xff] %v4990_v46  ;;  %v5008_v24 = vsel %vm474_vm9, %v4227_v59, %v4332_v49  ;;  %v5026_v59 = vsel %vm508_vm4, %v4345_v19, %v4247_v54  ;;  %v948_v49 = vsel %vm947_vm12, %v4438_v63, %v4452_v51 }
 0x24f   : > { %6262 = vst [vmem:[#allocation142_spill] sm:$0xff] %v5026_v59  ;;  %v1215_v19 = vsel %vm1214_vm8, %v4509_v14, %v4328_v9  ;;  %v5055_v63 = vsel %vm508_vm4, %v4247_v54, %v6265_v30  ;;  %v6273_v54 = vld [vmem:[#allocation21_spill] sm:$0xff]  ;;  %vm570_vm4 = vcmask 392192  }
 0x250   : > { %6266 = vst [vmem:[#allocation19_spill] sm:$0xff] %v5055_v63  ;;  %v1219_v30 = vmul.f32 %v1215_v19, %v6273_v54 }
 0x251   : > { %v4992_v28 = vpop.permute.xlu1 %1107  ;;  %v5016_v26 = vpop.permute.xlu0 %1140 }
 0x252   : > { %6260 = vst [vmem:[#allocation140_spill] sm:$0xff] %v4992_v28  ;;  %v748_v28 = vsel %vm746_vm0, %v4273_v4, %v4420_v58  ;;  %6261 = vst [vmem:[#allocation141_spill] sm:$0xff] %v5016_v26  ;;  %v714_v58 = vsel %vm713_vm5, %v4372_v57, %v4388_v50  ;;  %v982_v4 = vsel %vm980_vm10, %v4301_v18, %v4483_v41  ;;  %vm807_vm0 = vcmask 261120  }
 0x253   : > { %v752_v57 = vmul.f32 %v748_v28, %v4113_v12  ;;  %v949_v18 = vsel %vm947_vm12, %v4452_v51, %v4292_v16  ;;  %v985_v41 = vmul.f32 %v981_v44, %v6263_v53  ;;  %v1216_v50 = vsel %vm1214_vm8, %v4328_v9, %v6264_v21  ;;  %v6268_v12 = vld [vmem:[#allocation63_spill] sm:$0xff]  ;;  %v6269_v28 = vld [vmem:[#allocation61_spill] sm:$0xff]  ;;  %v6271_v44 = vld [vmem:[#allocation16_spill] sm:$0xff] }
 0x254   : > { %v718_v26 = vmul.f32 %v714_v58, %v6267_v62  ;;  %v986_v14 = vmul.f32 %v982_v4, %v6263_v53  ;;  %v1182_v59 = vsel %vm1181_vm3, %v6269_v28, %v6268_v12  ;;  %v719_v51 = vmul.f32 %v715_v3, %v6267_v62  ;;  %v6272_v9 = vld [vmem:[#allocation41_spill] sm:$0xff]  ;;  %v6274_v53 = vld [vmem:[#allocation46_spill] sm:$0xff] }
 0x255   : > { %v5062_v16 = vpop.permute.xlu1 %1324  ;;  %v952_v46 = vmul.f32 %v948_v49, %v6271_v44  ;;  %v1183_v21 = vsel %vm1181_vm3, %v6268_v12, %v6272_v9  ;;  %v953_v58 = vmul.f32 %v949_v18, %v6271_v44  ;;  %v1220_v4 = vmul.f32 %v1216_v50, %v6273_v54  ;;  %v6277_v49 = vld [vmem:[#allocation17_spill] sm:$0xff]  ;;  %v6279_v12 = vld [vmem:[#allocation68_spill] sm:$0xff]  ;;  %v6281_v44 = vld [vmem:[#allocation74_spill] sm:$0xff] }
 0x256   : > { %6270 = vst [vmem:[#allocation66_spill] sm:$0xff] %v5062_v16  ;;  %v753_v63 = vadd.f32 %v751_v11, %v718_v26  ;;  %v1427_v28 = vsel %vm1090_vm1, %v6275_v25, %v6274_v53  ;;  %v5075_v16 = vpop.permute.xlu0 %1142  ;;  %v754_v3 = vadd.f32 %v752_v57, %v719_v51  ;;  %v1186_v37 = vmul.f32 %v1182_v59, %v6277_v49  ;;  %v6280_v18 = vld [vmem:[#allocation44_spill] sm:$0xff]  ;;  %v6285_v54 = vld [vmem:[#allocation23_spill] sm:$0xff] }
 0x257   : > { %6276 = vst [vmem:[#allocation45_spill] sm:$0xff] %v5075_v16  ;;  %v5077_v62 = vadd.f32 %v985_v41, %v952_v46  ;;  %v1396_v19 = vsel %vm1125_vm15, %v6279_v12, %v6278_v56  ;;  %v988_v26 = vadd.f32 %v986_v14, %v953_v58  ;;  %v1187_v11 = vmul.f32 %v1183_v21, %v6277_v49  ;;  %v6282_v46 = vld [vmem:[#allocation20_spill] sm:$0xff]  ;;  %v6286_v49 = vld [vmem:[#allocation78_spill] sm:$0xff] }
 0x258   : > { %v1397_v50 = vsel %vm1125_vm15, %v6278_v56, %v6280_v18  ;;  %v1428_v25 = vsel %vm1090_vm1, %v6274_v53, %v6281_v44  ;;  %v1221_v57 = vadd.f32 %v1219_v30, %v1186_v37  ;;  %v1431_v41 = vmul.f32 %v1427_v28, %v6282_v46  ;;  %v6283_v51 = vld [vmem:[#allocation52_spill] sm:$0xff]  ;;  %v6290_v44 = vld [vmem:[#allocation49_spill] sm:$0xff] }
 0x259   : > { %v6284_v59 = vld [vmem:[#allocation80_spill] sm:$0xff]  ;;  %v1650_v14 = vsel %vm856_vm7, %v6283_v51, %v4634_v15  ;;  %v1222_v21 = vadd.f32 %v1220_v4, %v1187_v11  ;;  %v1400_v58 = vmul.f32 %v1396_v19, %v6285_v54  ;;  %v5104_v30 = vpop.permute.xlu1 %1328  ;;  %v1401_v28 = vmul.f32 %v1397_v50, %v6285_v54  ;;  %v6291_v4 = vld [vmem:[#allocation65_spill] sm:$0xff]  ;;  %v6292_v11 = vld [vmem:[#allocation27_spill] sm:$0xff] }
 0x25a   : > { %v1649_v9 = vsel %vm856_vm7, %v6284_v59, %v6283_v51  ;;  %v6287_v56 = vld [vmem:[#allocation76_spill] sm:$0xff]  ;;  %6289 = vst [vmem:[#allocation13_spill] sm:$0xff] %v5104_v30  ;;  %v1432_v18 = vmul.f32 %v1428_v25, %v6282_v46  ;;  %v1619_v15 = vsel %vm891_vm13, %v6286_v49, %v6290_v44  ;;  %v1251_v19 = vsel %vm1249_vm11, %v4730_v8, %v6291_v4  ;;  %v5122_v25 = vpop.permute.xlu0 %1144  ;;  %v6295_v54 = vld [vmem:[#allocation25_spill] sm:$0xff] }
 0x25b   : > { %v1618_v12 = vsel %vm891_vm13, %v6287_v56, %v6286_v49  ;;  %v6288_v53 = vld [vmem:[#allocation64_spill] sm:$0xff]  ;;  %v1653_v51 = vmul.f32 %v1649_v9, %v6292_v11  ;;  %v1654_v59 = vmul.f32 %v1650_v14, %v6292_v11  ;;  %v782_v56 = vsel %vm781_vm14, %v4672_v43, %v4688_v20  ;;  %6294 = vst [vmem:[#allocation63_spill] sm:$0xff] %v5122_v25  ;;  %v6299_v11 = vld [vmem:[#allocation85_spill] sm:$0xff] }
 0x25c   : > { %v1250_v37 = vsel %vm1249_vm11, %v6288_v53, %v4730_v8  ;;  %v6293_v53 = vld [vmem:[#allocation59_spill] sm:$0xff]  ;;  %v1433_v46 = vadd.f32 %v1431_v41, %v1400_v58  ;;  %v1622_v49 = vmul.f32 %v1618_v12, %v6295_v54  ;;  %v6296_v8 = vld [vmem:[#allocation60_spill] sm:$0xff]  ;;  %vm1041_vm1 = vcmask 130048  }
 0x25d   : > { %v783_v50 = vsel %vm781_vm14, %v4688_v20, %v6293_v53  ;;  %v1016_v9 = vsel %vm1015_vm6, %v6296_v8, %v4710_v23  ;;  %v6297_v44 = vld [vmem:[#allocation24_spill] sm:$0xff]  ;;  %v1623_v4 = vmul.f32 %v1619_v15, %v6295_v54  ;;  %vm6300_vm3 = vcmask 400384   ;;  %v6301_v20 = vld [vmem:[#allocation62_spill] sm:$0xff]  ;;  %v6302_v58 = vld [vmem:[#allocation87_spill] sm:$0xff] }
 0x25e   : > { %v1254_v14 = vmul.f32 %v1250_v37, %v6297_v44  ;;  %v6298_v43 = vld [vmem:[#allocation56_spill] sm:$0xff]  ;;  %v1017_v53 = vsel %vm1015_vm6, %v4710_v23, %v6301_v20  ;;  %v1255_v41 = vmul.f32 %v1251_v19, %v6297_v44  ;;  %vm6303_vm5 = vmmov %vm6300_vm3  ;;  %v6304_v8 = vld [vmem:[#allocation29_spill] sm:$0xff]  ;;  %vm6306_vm7 = vcmask 924672   ;;  %v5146_v19 = vpop.permute.xlu1 %1548 }
 0x25f   : > { %v545_v30 = vsel %vm6300_vm3, %v6299_v11, %v6298_v43  ;;  %v546_v12 = vsel %vm6303_vm5, %v6298_v43, %v6302_v58  ;;  %v786_v37 = vmul.f32 %v782_v56, %v6304_v8  ;;  %v787_v25 = vmul.f32 %v783_v50, %v6304_v8  ;;  %v6305_v15 = vld [vmem:[#allocation67_spill] sm:$0xff]  ;;  %v6308_v43 = vld [vmem:[#allocation69_spill] sm:$0xff]  ;;  %vm6309_vm9 = vmmov %vm6306_vm7 }
 0x260   : > { %v1460_v54 = vsel %vm6306_vm7, %v6305_v15, %v4752_v0  ;;  %vm1485_vm8 = vcmask 916480   ;;  %v1434_v11 = vadd.f32 %v1432_v18, %v1401_v28  ;;  %v1655_v16 = vadd.f32 %v1653_v51, %v1622_v49  ;;  %v6307_v23 = vld [vmem:[#allocation31_spill] sm:$0xff]  ;;  %v6312_v8 = vld [vmem:[#allocation22_spill] sm:$0xff]  ;;  %v6315_v15 = vld [vmem:[#allocation73_spill] sm:$0xff] }
 0x261   : > { %v1656_v27 = vadd.f32 %v1654_v59, %v1623_v4  ;;  %v1020_v20 = vmul.f32 %v1016_v9, %v6307_v23  ;;  %v1021_v44 = vmul.f32 %v1017_v53, %v6307_v23  ;;  %v1256_v31 = vadd.f32 %v1254_v14, %v1221_v57  ;;  %v6310_v50 = vld [vmem:[#allocation71_spill] sm:$0xff]  ;;  %v6313_v59 = vld [vmem:[#allocation32_spill] sm:$0xff]  ;;  %v5162_v9 = vpop.permute.xlu0 %1359  ;;  %vm6324_vm3 = vmmov %vm6322_vm2 }
 0x262   : > { %v1461_v56 = vsel %vm6309_vm9, %v4752_v0, %v6308_v43  ;;  %vm6311_vm10 = vcmask 793600   ;;  %vm1707_vm12 = vcmask 785408   ;;  %v5156_v28 = vmul.f32 %v545_v30, %v6312_v8  ;;  %v6314_v4 = vld [vmem:[#allocation92_spill] sm:$0xff]  ;;  %v6321_v23 = vld [vmem:[#allocation75_spill] sm:$0xff]  ;;  %v6323_v43 = vld [vmem:[#allocation77_spill] sm:$0xff] }
 0x263   : > { %v1682_v58 = vsel %vm6311_vm10, %v6310_v50, %v4776_v52  ;;  %v5159_v18 = vmul.f32 %v546_v12, %v6312_v8  ;;  %v1257_v51 = vadd.f32 %v1255_v41, %v1222_v21  ;;  %v1464_v49 = vmul.f32 %v1460_v54, %v6313_v59  ;;  %vm6316_vm13 = vmmov %vm6311_vm10  ;;  %v6317_v41 = vld [vmem:[#allocation33_spill] sm:$0xff]  ;;  %v6318_v54 = vld [vmem:[#allocation79_spill] sm:$0xff] }
 0x264   : > { %v788_v57 = vadd.f32 %v786_v37, %v753_v63  ;;  %v789_v14 = vadd.f32 %v787_v25, %v754_v3  ;;  %v5166_v0 = vmul.f32 %v5008_v24, %v6314_v4  ;;  %v5170_v53 = vmul.f32 %v5021_v29, %v6314_v4 }
 0x265   : > { %v1465_v30 = vmul.f32 %v1461_v56, %v6313_v59  ;;  %v1683_v21 = vsel %vm6316_vm13, %v4776_v52, %v6315_v15  ;;  %v1686_v12 = vmul.f32 %v1682_v58, %v6317_v41  ;;  %vm6319_vm14 = vcmask 670720   ;;  %v6329_v59 = vld [vmem:[#allocation26_spill] sm:$0xff] }
 0x266   : > { %v1871_v63 = vsel %vm6319_vm14, %v4811_v1, %v6318_v54  ;;  %v1022_v3 = vadd.f32 %v1020_v20, %v5077_v62  ;;  %v1023_v24 = vadd.f32 %v1021_v44, %v988_v26  ;;  %vm6320_vm15 = vmmov %vm6319_vm14  ;;  %v5185_v25 = vadd.f32 %v4996_v5, %v1256_v31  ;;  %v5196_v62 = vpop.permute.xlu1 %1768  ;;  %v6326_v5 = vld [vmem:[#allocation84_spill] sm:$0xff] }
 0x267   : > { %v1872_v29 = vsel %vm6320_vm15, %v6318_v54, %v4826_v17  ;;  %v1466_v37 = vadd.f32 %v1464_v49, %v1433_v46  ;;  %v1840_v52 = vsel %vm6322_vm2, %v6321_v23, %v4796_v2  ;;  %v1841_v56 = vsel %vm6324_vm3, %v4796_v2, %v6323_v43  ;;  %v6325_v17 = vld [vmem:[#allocation35_spill] sm:$0xff]  ;;  %v6327_v46 = vld [vmem:[#allocation86_spill] sm:$0xff]  ;;  %v6334_v43 = vld [vmem:[#allocation36_spill] sm:$0xff] }
 0x268   : > { %v5194_v1 = vadd.f32 %v5003_v34, %v1257_v51  ;;  %v1687_v26 = vmul.f32 %v1683_v21, %v6317_v41  ;;  %v1875_v20 = vmul.f32 %v1871_v63, %v6325_v17  ;;  %v808_v31 = vsel %vm807_vm0, %v6326_v5, %v4868_v48  ;;  %v6328_v34 = vld [vmem:[#allocation88_spill] sm:$0xff]  ;;  %v5210_v51 = vpop.permute.xlu0 %1361  ;;  %v6330_v21 = vld [vmem:[#allocation89_spill] sm:$0xff]  ;;  %v6333_v23 = vld [vmem:[#allocation38_spill] sm:$0xff] }
 0x269   : > { %v809_v44 = vsel %vm807_vm0, %v4868_v48, %v6327_v46  ;;  %v1467_v50 = vadd.f32 %v1465_v30, %v1434_v11  ;;  %v1688_v58 = vadd.f32 %v1686_v12, %v1655_v16  ;;  %v1876_v2 = vmul.f32 %v1872_v29, %v6325_v17  ;;  %v6331_v16 = vld [vmem:[#allocation82_spill] sm:$0xff]  ;;  %v6332_v30 = vld [vmem:[#allocation28_spill] sm:$0xff] }
 0x26a   : > { %v1042_v8 = vsel %vm1041_vm1, %v6328_v34, %v4877_v42  ;;  %v1844_v49 = vmul.f32 %v1840_v52, %v6329_v59  ;;  %v1845_v4 = vmul.f32 %v1841_v56, %v6329_v59  ;;  %v571_v15 = vsel %vm570_vm4, %v4836_v36, %v4847_v47  ;;  %v5239_v5 = vpop.permute.xlu1 %1772  ;;  %v6340_v59 = vld [vmem:[#allocation39_spill] sm:$0xff] }
 0x26b   : > { %v1043_v48 = vsel %vm1041_vm1, %v4877_v42, %v6330_v21  ;;  %v572_v11 = vsel %vm570_vm4, %v4847_v47, %v6331_v16  ;;  %v812_v41 = vmul.f32 %v808_v31, %v6332_v30  ;;  %v813_v12 = vmul.f32 %v809_v44, %v6332_v30  ;;  %v6346_v16 = vld [vmem:[#allocation102_spill] sm:$0xff] }
 0x26c   : > { %v1486_v54 = vsel %vm1485_vm8, %v4885_v22, %v4889_v45  ;;  %v1689_v63 = vadd.f32 %v1687_v26, %v1656_v27  ;;  %v1877_v29 = vadd.f32 %v1875_v20, %v1844_v49  ;;  %v1046_v36 = vmul.f32 %v1042_v8, %v6333_v23  ;;  %v6335_v27 = vld [vmem:[#allocation30_spill] sm:$0xff]  ;;  %v5255_v34 = vpop.permute.xlu0 %1579 }
 0x26d   : > { %v1487_v42 = vsel %vm1485_vm8, %v4889_v45, %v4720_v39  ;;  %v1878_v52 = vadd.f32 %v1876_v2, %v1845_v4  ;;  %v5233_v56 = vmul.f32 %v571_v15, %v6334_v43  ;;  %v1047_v47 = vmul.f32 %v1043_v48, %v6333_v23  ;;  %v6336_v45 = vld [vmem:[#allocation95_spill] sm:$0xff]  ;;  %v6343_v4 = vld [vmem:[#allocation42_spill] sm:$0xff] }
 0x26e   : > { %v1708_v17 = vsel %vm1707_vm12, %v4728_v61, %v4899_v35  ;;  %v5242_v22 = vmul.f32 %v572_v11, %v6334_v43  ;;  %v1490_v26 = vmul.f32 %v1486_v54, %v6335_v27  ;;  %v1709_v39 = vsel %vm1707_vm12, %v4899_v35, %v4740_v38  ;;  %v6338_v61 = vld [vmem:[#allocation96_spill] sm:$0xff]  ;;  %v6348_v11 = vld [vmem:[#allocation105_spill] sm:$0xff]  ;;  %v6352_v23 = vld [vmem:[#allocation98_spill] sm:$0xff] }
 0x26f   : > { %vm6337_vm0 = vcmask 662528   ;;  %v814_v31 = vadd.f32 %v812_v41, %v788_v57  ;;  %v815_v46 = vadd.f32 %v813_v12, %v789_v14  ;;  %v1491_v44 = vmul.f32 %v1487_v42, %v6335_v27  ;;  %v6357_v27 = vld [vmem:[#allocation43_spill] sm:$0xff] }
 0x270   : > { %v1904_v20 = vsel %vm6337_vm0, %v6336_v45, %v4907_v7  ;;  %vm6339_vm4 = vmmov %vm6337_vm0  ;;  %vm1929_vm5 = vcmask 654336   ;;  %v1048_v8 = vadd.f32 %v1046_v36, %v1022_v3  ;;  %v1712_v49 = vmul.f32 %v1708_v17, %v6340_v59  ;;  %v6354_v36 = vld [vmem:[#allocation100_spill] sm:$0xff] }
 0x271   : > { %v1905_v2 = vsel %vm6339_vm4, %v4907_v7, %v6338_v61  ;;  %vm6341_vm7 = vcmask 252928   ;;  %v1049_v57 = vadd.f32 %v1047_v47, %v1023_v24  ;;  %v1713_v14 = vmul.f32 %v1709_v39, %v6340_v59  ;;  %v6344_v7 = vld [vmem:[#allocation101_spill] sm:$0xff]  ;;  %v6362_v61 = vld [vmem:[#allocation34_spill] sm:$0xff] }
 0x272   : > { %v843_v38 = vsel %vm6341_vm7, %v4926_v40, %v4813_v33  ;;  %vm6342_vm9 = vmmov %vm6341_vm7  ;;  %v1908_v15 = vmul.f32 %v1904_v20, %v6343_v4  ;;  %vm6345_vm10 = vcmask 121856   ;;  %v1492_v3 = vadd.f32 %v1490_v26, %v1466_v37  ;;  %v6350_v24 = vld [vmem:[#allocation37_spill] sm:$0xff]  ;;  %v5281_v37 = vpop.permute.xlu1 %1959 }
 0x273   : > { %v844_v35 = vsel %vm6342_vm9, %v4813_v33, %v4933_v10  ;;  %v1077_v21 = vsel %vm6345_vm10, %v6344_v7, %v4942_v60  ;;  %v1909_v48 = vmul.f32 %v1905_v2, %v6343_v4  ;;  %vm6347_vm12 = vmmov %vm6345_vm10  ;;  %vm6349_vm13 = vcmask 1039360   ;;  %v6360_v20 = vld [vmem:[#allocation133_spill] sm:$0xff]  ;;  %v6366_v4 = vld [vmem:[#allocation108_spill] sm:$0xff] }
 0x274   : > { %v1078_v40 = vsel %vm6347_vm12, %v4942_v60, %v6346_v16  ;;  %v1297_v33 = vsel %vm6349_vm13, %v4949_v6, %v6348_v11  ;;  %v1493_v10 = vadd.f32 %v1491_v44, %v1467_v50  ;;  %v847_v30 = vmul.f32 %v843_v38, %v6350_v24  ;;  %vm6351_vm14 = vmmov %vm6349_vm13  ;;  %v6356_v50 = vld [vmem:[#allocation40_spill] sm:$0xff]  ;;  %v6363_v38 = vld [vmem:[#allocation125_spill] sm:$0xff] }
 0x275   : > { %v848_v41 = vmul.f32 %v844_v35, %v6350_v24  ;;  %v1298_v12 = vsel %vm6351_vm14, %v6348_v11, %v4955_v55  ;;  %v1714_v54 = vadd.f32 %v1712_v49, %v1688_v58  ;;  %vm6353_vm15 = vcmask 384000   ;;  %v5292_v55 = vpop.permute.xlu0 %1581  ;;  %v6358_v58 = vld [vmem:[#allocation130_spill] sm:$0xff]  ;;  %v6364_v35 = vld [vmem:[#allocation107_spill] sm:$0xff]  ;;  %v6372_v11 = vld [vmem:[#allocation129_spill] sm:$0xff] }
 0x276   : > { %v607_v60 = vsel %vm6353_vm15, %v6352_v23, %v4918_v32  ;;  %vm6355_vm2 = vmmov %vm6353_vm15  ;;  %v1081_v42 = vmul.f32 %v1077_v21, %v6356_v50  ;;  %v1715_v43 = vadd.f32 %v1713_v14, %v1689_v63  ;;  %v1910_v47 = vadd.f32 %v1908_v15, %v1877_v29  ;;  %v6368_v15 = vld [vmem:[#allocation110_spill] sm:$0xff]  ;;  %v6369_v7 = vld [vmem:[#allocation127_spill] sm:$0xff] }
 0x277   : > { %v608_v6 = vsel %vm6355_vm2, %v4918_v32, %v6354_v36  ;;  %v1082_v17 = vmul.f32 %v1078_v40, %v6356_v50  ;;  %v1301_v26 = vmul.f32 %v1297_v33, %v6357_v27  ;;  %v1911_v39 = vadd.f32 %v1909_v48, %v1878_v52  ;;  %v6371_v16 = vld [vmem:[#allocation103_spill] sm:$0xff]  ;;  %v6378_v36 = vld [vmem:[#allocation137_spill] sm:$0xff]  ;;  %v6381_v50 = vld [vmem:[#allocation54_spill] sm:$0xff] }
 0x278   : > { %vm6359_vm3 = vcmask 367616   ;;  %v1302_v32 = vmul.f32 %v1298_v12, %v6357_v27  ;;  %v5302_v63 = vmul.f32 %v607_v60, %v6362_v61  ;;  %v5305_v29 = vmul.f32 %v608_v6, %v6362_v61  ;;  %v6374_v24 = vld [vmem:[#allocation131_spill] sm:$0xff] }
 0x279   : > { %v679_v45 = vsel %vm6359_vm3, %v6358_v58, %v4974_v13  ;;  %vm6361_vm0 = vmmov %vm6359_vm3  ;;  %v849_v2 = vadd.f32 %v847_v30, %v814_v31  ;;  %v850_v59 = vadd.f32 %v848_v41, %v815_v46  ;;  %v1083_v52 = vadd.f32 %v1081_v42, %v1048_v8  ;;  %v6375_v30 = vld [vmem:[#allocation111_spill] sm:$0xff]  ;;  %v6376_v41 = vld [vmem:[#allocation113_spill] sm:$0xff] }
 0x27a   : > { %v680_v44 = vsel %vm6361_vm0, %v4974_v13, %v6360_v20  ;;  %vm6365_vm4 = vcmask 908288   ;;  %vm6370_vm9 = vcmask 777216   ;;  %v1084_v48 = vadd.f32 %v1082_v17, %v1049_v57  ;;  %v6379_v6 = vld [vmem:[#allocation135_spill] sm:$0xff]  ;;  %v5345_v17 = vpop.permute.xlu0 %1801  ;;  %v6385_v20 = vld [vmem:[#allocation136_spill] sm:$0xff] }
 0x27b   : > { %v1519_v14 = vsel %vm6365_vm4, %v6364_v35, %v6363_v38  ;;  %vm6367_vm7 = vmmov %vm6365_vm4  ;;  %v1741_v21 = vsel %vm6370_vm9, %v6369_v7, %v6368_v15  ;;  %v5319_v40 = vmul.f32 %v679_v45, %v6371_v16  ;;  %v5322_v31 = vadd.f32 %v1301_v26, %v5185_v25  ;;  %v6377_v25 = vld [vmem:[#allocation47_spill] sm:$0xff]  ;;  %v6384_v45 = vld [vmem:[#allocation118_spill] sm:$0xff] }
 0x27c   : > { %v1520_v13 = vsel %vm6367_vm7, %v6363_v38, %v6366_v4  ;;  %v5325_v46 = vmul.f32 %v680_v44, %v6371_v16  ;;  %v5328_v8 = vadd.f32 %v1302_v32, %v5194_v1  ;;  %vm6373_vm10 = vmmov %vm6370_vm9  ;;  %v1930_v57 = vsel %vm1929_vm5, %v6375_v30, %v6374_v24  ;;  %v6382_v26 = vld [vmem:[#allocation139_spill] sm:$0xff]  ;;  %v6387_v32 = vld [vmem:[#allocation142_spill] sm:$0xff] }
 0x27d   : > { %v1742_v33 = vsel %vm6373_vm10, %v6368_v15, %v6372_v11  ;;  %v1931_v12 = vsel %vm1929_vm5, %v6374_v24, %v6376_v41  ;;  %v1523_v23 = vmul.f32 %v1519_v14, %v6377_v25  ;;  %v1524_v60 = vmul.f32 %v1520_v13, %v6377_v25  ;;  %v6388_v38 = vld [vmem:[#allocation19_spill] sm:$0xff]  ;;  %v6390_v7 = vld [vmem:[#allocation138_spill] sm:$0xff]  ;;  %v6392_v16 = vld [vmem:[#allocation140_spill] sm:$0xff] }
 0x27e   : > { %vm6380_vm12 = vcmask 236544   ;;  %v1745_v42 = vmul.f32 %v1741_v21, %v6381_v50  ;;  %vm6386_vm5 = vcmask 244736   ;;  %v1746_v14 = vmul.f32 %v1742_v33, %v6381_v50  ;;  %v6389_v4 = vld [vmem:[#allocation83_spill] sm:$0xff]  ;;  %v6395_v30 = vld [vmem:[#allocation120_spill] sm:$0xff] }
 0x27f   : > { %v913_v1 = vsel %vm6380_vm12, %v6379_v6, %v6378_v36  ;;  %vm6383_vm13 = vmmov %vm6380_vm12  ;;  %v878_v44 = vsel %vm6386_vm5, %v6385_v20, %v6384_v45  ;;  %v1934_v13 = vmul.f32 %v1930_v57, %v6389_v4  ;;  %v1935_v15 = vmul.f32 %v1931_v12, %v6389_v4  ;;  %v6393_v11 = vld [vmem:[#allocation119_spill] sm:$0xff]  ;;  %v6397_v12 = vld [vmem:[#allocation106_spill] sm:$0xff] }
 0x280   : > { %v914_v58 = vsel %vm6383_vm13, %v6378_v36, %v6382_v26  ;;  %vm6391_vm14 = vmmov %vm6386_vm5  ;;  %vm6394_vm15 = vcmask 113664   ;;  %v5369_v36 = vadd.f32 %v1523_v23, %v1492_v3  ;;  %v5371_v57 = vadd.f32 %v1524_v60, %v1493_v10  ;;  %v6398_v50 = vld [vmem:[#allocation91_spill] sm:$0xff]  ;;  %v6400_v20 = vld [vmem:[#allocation141_spill] sm:$0xff] }
 0x281   : > { %v879_v21 = vsel %vm6391_vm14, %v6384_v45, %v6390_v7  ;;  %v1112_v24 = vsel %vm6394_vm15, %v6393_v11, %v6392_v16  ;;  %vm6396_vm2 = vmmov %vm6394_vm15  ;;  %v917_v6 = vmul.f32 %v913_v1, %v6397_v12  ;;  %v6399_v45 = vld [vmem:[#allocation45_spill] sm:$0xff]  ;;  %vm6401_vm3 = vcmask 105472   ;;  %v1806_v1 = vpop.permute.xlu0 %1805  ;;  %v6403_v7 = vld [vmem:[#allocation63_spill] sm:$0xff] }
 0x282   : > { %v1113_v41 = vsel %vm6396_vm2, %v6392_v16, %v6395_v30  ;;  %v918_v3 = vmul.f32 %v914_v58, %v6397_v12  ;;  %v6402_v10 = vld [vmem:[#allocation93_spill] sm:$0xff]  ;;  %vm6404_vm0 = vmmov %vm6401_vm3  ;;  %vm6408_vm4 = vcmask 375808   ;;  %v6409_v16 = vld [vmem:[#allocation116_spill] sm:$0xff]  ;;  %vm6411_vm9 = vcmask 1022976  }
 0x283   : > { %v1116_v23 = vmul.f32 %v1112_v24, %v6402_v10  ;;  %v1117_v60 = vmul.f32 %v1113_v41, %v6402_v10  ;;  %vm6410_vm7 = vmmov %vm6408_vm4  ;;  %vm6412_vm10 = vcmask 891904   ;;  %vm6416_vm12 = vcmask 1031168   ;;  %v6424_v10 = vld [vmem:[#allocation112_spill] sm:$0xff] }
 0x284   : > { %vm6418_vm13 = vmmov %vm6416_vm12  ;;  %vm6421_vm5 = vcmask 900096   ;;  %vm6428_vm15 = vcmask 769024  }
 0x285   : > { %v1118_v30 = vadd.f32 %v1116_v23, %v1083_v52  ;;  %v1119_v41 = vadd.f32 %v1117_v60, %v1084_v48  ;;  %v6420_v48 = vld [vmem:[#allocation122_spill] sm:$0xff]  ;;  %vm6423_vm14 = vmmov %vm6421_vm5 }
 0x286   : > { %vm6429_vm2 = vmmov %vm6428_vm15 }
 0x299   : > { %v5307_v49 = vpop.xlane.xlu1 %2087 }
 0x29d   : > { %v497_v27 = vpop.permute.xlu1 %496 }
 0x29e   : > { %v513_v61 = vmul.f32 %v6387_v32, %v497_v27  ;;  %v514_v35 = vmul.f32 %v6388_v38, %v497_v27  ;;  %v882_v27 = vmul.f32 %v878_v44, %v6398_v50  ;;  %v1147_v32 = vsel %vm6401_vm3, %v6400_v20, %v6399_v45 }
 0x29f   : > { %v883_v38 = vmul.f32 %v879_v21, %v6398_v50  ;;  %v5386_v44 = vadd.f32 %v1746_v14, %v1715_v43  ;;  %v6407_v21 = vld [vmem:[#allocation115_spill] sm:$0xff]  ;;  %v6414_v50 = vld [vmem:[#allocation121_spill] sm:$0xff]  ;;  %v1552_v20 = vsel %vm6421_vm5, %v6420_v48, %v5146_v19  ;;  %vm6431_vm3 = vcmask 646144  }
 0x2a0   : > { %v515_v25 = vadd.f32 %v513_v61, %v5166_v0  ;;  %v516_v33 = vadd.f32 %v514_v35, %v5170_v53  ;;  %v5381_v53 = vadd.f32 %v1745_v42, %v1714_v54  ;;  %v5388_v61 = vadd.f32 %v1934_v13, %v1910_v47  ;;  %v6406_v42 = vld [vmem:[#allocation134_spill] sm:$0xff] }
 0x2a1   : > { %v1358_v26 = vpop.permute.xlu1 %1357  ;;  %v5390_v35 = vadd.f32 %v1935_v15, %v1911_v39  ;;  %v643_v58 = vsel %vm6408_vm4, %v6407_v21, %v6406_v42  ;;  %v644_v11 = vsel %vm6410_vm7, %v6406_v42, %v6409_v16  ;;  %v884_v43 = vadd.f32 %v882_v27, %v849_v2  ;;  %v6415_v27 = vld [vmem:[#allocation66_spill] sm:$0xff]  ;;  %vm6434_vm4 = vmmov %vm6411_vm9 }
 0x2a2   : > { %v551_v4 = vadd.f32 %v5156_v28, %v515_v25  ;;  %v552_v0 = vadd.f32 %v5159_v18, %v516_v33  ;;  %v1148_v28 = vsel %vm6404_vm0, %v6399_v45, %v6403_v7  ;;  %v6405_v18 = vld [vmem:[#allocation109_spill] sm:$0xff]  ;;  %v1364_v47 = vsel %vm6411_vm9, %v5162_v9, %v5210_v51  ;;  %v6413_v33 = vld [vmem:[#allocation58_spill] sm:$0xff]  ;;  %vm6433_vm0 = vmmov %vm6431_vm3 }
 0x2a3   : > { %v1151_v54 = vmul.f32 %v1147_v32, %v6405_v18  ;;  %v885_v39 = vadd.f32 %v883_v38, %v850_v59  ;;  %v1152_v24 = vmul.f32 %v1148_v28, %v6405_v18  ;;  %v1585_v25 = vsel %vm6412_vm10, %v5255_v34, %v5292_v55  ;;  %v6417_v59 = vld [vmem:[#allocation13_spill] sm:$0xff]  ;;  %v6419_v45 = vld [vmem:[#allocation90_spill] sm:$0xff]  ;;  %v6422_v34 = vld [vmem:[#allocation123_spill] sm:$0xff]  ;;  %v1993_v38 = vpop.permute.xlu0 %1992 }
 0x2a4   : > { %v577_v13 = vadd.f32 %v5233_v56, %v551_v4  ;;  %v578_v15 = vadd.f32 %v5242_v22, %v552_v0  ;;  %v647_v2 = vmul.f32 %v643_v58, %v6413_v33  ;;  %v648_v12 = vmul.f32 %v644_v11, %v6413_v33  ;;  %v6425_v18 = vld [vmem:[#allocation94_spill] sm:$0xff]  ;;  %v6426_v58 = vld [vmem:[#allocation97_spill] sm:$0xff]  ;;  %vm6435_vm7 = vmmov %vm6412_vm10 }
 0x2a5   : > { %v1584_v14 = vpop.permute.xlu1 %1583  ;;  %v1330_v51 = vsel %vm6416_vm12, %v6415_v27, %v6414_v50  ;;  %v1331_v56 = vsel %vm6418_vm13, %v6414_v50, %v6417_v59  ;;  %v919_v22 = vadd.f32 %v917_v6, %v884_v43  ;;  %v1368_v52 = vmul.f32 %v1364_v47, %v6419_v45  ;;  %v6432_v43 = vld [vmem:[#allocation128_spill] sm:$0xff]  ;;  %v6438_v33 = vld [vmem:[#allocation99_spill] sm:$0xff] }
 0x2a6   : > { %v1553_v32 = vsel %vm6423_vm14, %v5146_v19, %v6422_v34  ;;  %v920_v0 = vadd.f32 %v918_v3, %v885_v39  ;;  %v1589_v23 = vmul.f32 %v1585_v25, %v6424_v10  ;;  %v613_v60 = vadd.f32 %v5302_v63, %v577_v13  ;;  %v6427_v19 = vld [vmem:[#allocation124_spill] sm:$0xff]  ;;  %v6443_v34 = vld [vmem:[#allocation117_spill] sm:$0xff] }
 0x2a7   : > { %v614_v7 = vadd.f32 %v5305_v29, %v578_v15  ;;  %v1153_v6 = vadd.f32 %v1151_v54, %v1118_v30  ;;  %v1154_v28 = vadd.f32 %v1152_v24, %v1119_v41  ;;  %v1334_v42 = vmul.f32 %v1330_v51, %v6425_v18  ;;  %v6430_v29 = vld [vmem:[#allocation126_spill] sm:$0xff]  ;;  %v2024_v50 = vpop.permute.xlu0 %2023 }
 0x2a8   : > { %v1335_v21 = vmul.f32 %v1331_v56, %v6425_v18  ;;  %v1556_v16 = vmul.f32 %v1552_v20, %v6426_v58  ;;  %v1557_v11 = vmul.f32 %v1553_v32, %v6426_v58  ;;  %v1774_v3 = vsel %vm6428_vm15, %v5196_v62, %v6427_v19 }
 0x2a9   : > { %v1804_v4 = vpop.permute.xlu1 %1803  ;;  %v1775_v63 = vsel %vm6429_vm2, %v6427_v19, %v5239_v5  ;;  %v1963_v54 = vsel %vm6431_vm3, %v6430_v29, %v5281_v37  ;;  %v1964_v47 = vsel %vm6433_vm0, %v5281_v37, %v6432_v43  ;;  %v1363_v39 = vsel %vm6434_vm4, %v1358_v26, %v5162_v9 }
 0x2aa   : > { %v1586_v13 = vsel %vm6435_vm7, %v5292_v55, %v1584_v14  ;;  %vm6436_vm9 = vcmask 760832   ;;  %v649_v24 = vadd.f32 %v647_v2, %v613_v60  ;;  %v650_v30 = vadd.f32 %v648_v12, %v614_v7  ;;  %v6439_v55 = vld [vmem:[#allocation81_spill] sm:$0xff] }
 0x2ab   : > { %v1807_v62 = vsel %vm6436_vm9, %v5345_v17, %v1804_v4  ;;  %vm6437_vm10 = vmmov %vm6436_vm9  ;;  %v1336_v41 = vadd.f32 %v1334_v42, %v5322_v31  ;;  %v1337_v25 = vadd.f32 %v1335_v21, %v5328_v8  ;;  %v1778_v37 = vmul.f32 %v1774_v3, %v6438_v33  ;;  %v6441_v31 = vld [vmem:[#allocation114_spill] sm:$0xff] }
 0x2ac   : > { %v1808_v5 = vsel %vm6437_vm10, %v1804_v4, %v1806_v1  ;;  %v1779_v9 = vmul.f32 %v1775_v63, %v6438_v33  ;;  %v1558_v26 = vadd.f32 %v1556_v16, %v5369_v36  ;;  %v1967_v14 = vmul.f32 %v1963_v54, %v6439_v55 }
 0x2ad   : > { %v1991_v15 = vpop.permute.xlu1 %1990  ;;  %v1367_v27 = vmul.f32 %v1363_v39, %v6419_v45  ;;  %vm6440_vm12 = vcmask 637952   ;;  %v1968_v1 = vmul.f32 %v1964_v47, %v6439_v55  ;;  %v1590_v2 = vmul.f32 %v1586_v13, %v6424_v10 }
 0x2ae   : > { %v1996_v17 = vsel %vm6440_vm12, %v1991_v15, %v1993_v38  ;;  %v1811_v12 = vmul.f32 %v1807_v62, %v6441_v31  ;;  %v1812_v8 = vmul.f32 %v1808_v5, %v6441_v31  ;;  %v1559_v59 = vadd.f32 %v1557_v11, %v5371_v57  ;;  %vm6442_vm13 = vmmov %vm6440_vm12  ;;  %v2028_v57 = vpop.permute.xlu0 %2027 }
 0x2af   : > { %v685_v36 = vadd.f32 %v5319_v40, %v649_v24  ;;  %v686_v48 = vadd.f32 %v5325_v46, %v650_v30  ;;  %v1780_v45 = vadd.f32 %v1778_v37, %v5381_v53  ;;  %v1781_v20 = vadd.f32 %v1779_v9, %v5386_v44  ;;  %v2248_v9 = vld [vmem:[#allocation2 + $0xc] sm:$0xf] }
 0x2b0   : > { %v2000_v32 = vmul.f32 %v1996_v17, %v6443_v34  ;;  %v1370_v10 = vadd.f32 %v1368_v52, %v1337_v25  ;;  %v1591_v60 = vadd.f32 %v1589_v23, %v1558_v26  ;;  %v1969_v7 = vadd.f32 %v1967_v14, %v5388_v61  ;;  %v6446_v52 = vld [vmem:[#allocation132_spill] sm:$0xff]  ;;  %v6447_v26 = vld [vmem:[#allocation51_spill] sm:$0xff]  ;;  %v2268_v17 = vld [vmem:[#allocation2 + $0xc] sm:$0xf] }
 0x2b1   : > { %v1995_v51 = vpop.permute.xlu1 %1994  ;;  %v1369_v18 = vadd.f32 %v1367_v27, %v1336_v41  ;;  %v1592_v42 = vadd.f32 %v1590_v2, %v1559_v59  ;;  %v1813_v40 = vadd.f32 %v1811_v12, %v1780_v45  ;;  %v1814_v21 = vadd.f32 %v1812_v8, %v1781_v20  ;;  %v6448_v14 = vld [vmem:[#allocation104_spill] sm:$0xff] }
 0x2b2   : > { %v1997_v56 = vsel %vm6442_vm13, %v1993_v38, %v1995_v51  ;;  %v1970_v38 = vadd.f32 %v1968_v1, %v5390_v35  ;;  %vm6444_vm5 = vcmask 629760   ;;  %v2037_v58 = vadd.f32 %v919_v22, %v685_v36  ;;  %v2101_v25 = vpop.permute.xlu0 %2100  ;;  %v6450_v1 = vld [vmem:[#allocation15_spill] sm:$0xff] }
 0x2b3   : > { %v2001_v4 = vmul.f32 %v1997_v56, %v6443_v34  ;;  %vm6445_vm14 = vmmov %vm6444_vm5  ;;  %v2038_v16 = vadd.f32 %v920_v0, %v686_v48  ;;  %v2002_v11 = vadd.f32 %v2000_v32, %v1969_v7  ;;  %v2040_v3 = vadd.f32 %v1370_v10, %v1154_v28 }
 0x2b4   : > { %v2039_v63 = vadd.f32 %v1369_v18, %v1153_v6  ;;  %v2043_v29 = vadd.f32 %v1813_v40, %v1591_v60  ;;  %v2044_v35 = vadd.f32 %v1814_v21, %v1592_v42  ;;  %vm2105_vm15 = vcmask 1043456   ;;  %v3457_v40 = vld [vmem:[#allocation2 + $0xc] ss:$0 sps:$4 sm:$0xff]  }
 0x2b5   : > { %v2026_v46 = vpop.permute.xlu1 %2025  ;;  %v2003_v19 = vadd.f32 %v2001_v4, %v1970_v38  ;;  %v2042_v39 = vadd.f32 %v2040_v3, %v2038_v16  ;;  %v2250_v55 = vmul.f32 %v2248_v9, %v6447_v26  ;;  %v2270_v2 = vmul.f32 %v2268_v17, %v6450_v1  ;;  %v6460_v1 = vld [vmem:[#allocation55_spill] sm:$0xff] }
 0x2b6   : > { %v2029_v53 = vsel %vm6444_vm5, %v2024_v50, %v2026_v46  ;;  %v2030_v44 = vsel %vm6445_vm14, %v2026_v46, %v2028_v57  ;;  %v2041_v47 = vadd.f32 %v2039_v63, %v2037_v58  ;;  %vm6464_vm2 = vcmask 1039360  }
 0x2b7   : > { %v2033_v23 = vmul.f32 %v2029_v53, %v6446_v52  ;;  %v2034_v61 = vmul.f32 %v2030_v44, %v6446_v52  ;;  %v2254_v27 = vcombine.low %v2250_v55, %v2250_v55  ;;  %vm6465_vm3 = vcmask 924672   ;;  %vm6466_vm0 = vmmov %vm6464_vm2 }
 0x2b8   : > { %vm6467_vm4 = vcmask 121856   ;;  %vm6469_vm9 = vmmov %vm6465_vm3  ;;  %vm6470_vm10 = vcmask 908288   ;;  %vm2347_vm13 = vcmask 293888  }
 0x2b9   : > { %v2035_v54 = vadd.f32 %v2033_v23, %v2002_v11  ;;  %v2036_v43 = vadd.f32 %v2034_v61, %v2003_v19  ;;  %v2093_v22 = vpop.permute.xlu1 %2092  ;;  %vm6468_vm7 = vmmov %vm6467_vm4 }
 0x2ba   : > { %vm6471_vm12 = vmmov %vm6470_vm10 }
 0x2bb   : > { %v2045_v13 = vadd.f32 %v2043_v29, %v2035_v54  ;;  %v2046_v15 = vadd.f32 %v2044_v35, %v2036_v43 }
 0x2bd   : > { %v2047_v62 = vadd.f32 %v2045_v13, %v2041_v47  ;;  %v2048_v5 = vadd.f32 %v2046_v15, %v2042_v39  ;;  %v6453_v47 = vld [vmem:[#allocation11_spill] sm:$0xff]  ;;  %v6454_v13 = vld [vmem:[#allocation10_spill] sm:$0xff] }
 0x2bf   : > { %v2095_v0 = vadd.f32 %v2093_v22, %v2047_v62  ;;  %v2096_v24 = vadd.f32 %v2093_v22, %v2048_v5  ;;  %v6455_v62 = vld [vmem:[#allocation50_spill] sm:$0xff] }
 0x2c1   : > { %v2097_v30 = vadd.f32 %v2095_v0, %v5307_v49  ;;  %v2098_v41 = vadd.f32 %v2096_v24, %v5307_v49  ;;  %v6449_v49 = vmov 0   ;;  %v6456_v24 = vld [vmem:[#allocation53_spill] sm:$0xff] }
 0x2c3   : > { %v2103_v6 = vadd.f32 %v2101_v25, %v2097_v30  ;;  %v2104_v28 = vadd.f32 %v2101_v25, %v2098_v41  ;;  %v6457_v41 = vld [vmem:[#allocation18_spill] sm:$0xff] }
 0x2c5   : > { %v2106_v33 = vsel %vm2105_vm15, %v2103_v6, 0.0  ;;  %v2107_v37 = vsel %vm2105_vm15, %v2104_v28, 0.0 }
 0x2c6   : > { %v2108_v50 = vadd.f32 %v2107_v37, %v2106_v33  ;;  %v6459_v37 = vld [vmem:[#allocation14_spill] sm:$0xff] }
 0x2c8   : > { %2109 = vadd.xlane.f32.xlu1 %v2108_v50 }
 0x2d9   : > { %2149 = vperm.xlu1 %3437, %v6448_v14  }
 0x2dd   : > { %2259 = vrot.lane.b32.xlu1 %v2254_v27, %s6149_s15 }
 0x2de   : > { %3440 = vset.pattern.permute.xlu1 %v6449_v49 }
 0x2e1   : > { %2278 = vrot.lane.b32.xlu1 %v2270_v2, %s6100_s17 }
 0x2e5   : > { %2296 = vrot.lane.b32.xlu1 %v3457_v40, %s6451_s25 }
 0x355   : > { %v2110_v31 = vpop.xlane.xlu1 %2109 }
 0x356   : > { %v2111_v12 = vrot.slane %v2110_v31, 4 }
 0x358   : > { %v2112_v8 = vadd.f32 %v2111_v12, %v2110_v31  ;;  %v6461_v12 = vld [vmem:[#allocation12_spill] sm:$0xff] }
 0x359   : > { %v2150_v19 = vpop.permute.xlu1 %2149 }
 0x35a   : > { %v2113_v51 = vrot.slane %v2112_v8, 2 }
 0x35c   : > { %v2114_v59 = vadd.f32 %v2113_v51, %v2112_v8 }
 0x35e   : > { %v2115_v56 = vrot.slane %v2114_v59, 1 }
 0x360   : > { %v2116_v36 = vadd.f32 %v2115_v56, %v2114_v59  ;;  %v6462_v56 = vld [vmem:[#allocation57_spill] sm:$0xff] }
 0x362   : > { %3269 = vpush %v2116_v36 }
 0x393   : > { %s3270_s1 = spop %3269 }
 0x394   : > { %s2120_s22 = smul.f32 0.0009765625, %s3270_s1 }
 0x396   : > { %v2121_v48 = vstv %s2120_s22 }
 0x397   : > { %v2122_v45 = vsub.f32 %v2103_v6, %v2121_v48  ;;  %v2123_v20 = vsub.f32 %v2104_v28, %v2121_v48  ;;  %v6458_v6 = vld [vmem:[#allocation48_spill] sm:$0xff] }
 0x399   : > { %v2124_v34 = vmul.f32 %v2122_v45, %v2122_v45  ;;  %v2125_v32 = vmul.f32 %v2123_v20, %v2123_v20 }
 0x39b   : > { %v2126_v4 = vsel %vm2105_vm15, %v2124_v34, 0.0  ;;  %v2127_v10 = vsel %vm2105_vm15, %v2125_v32, 0.0  ;;  %v6463_v34 = vmov 1   ;;  %v2260_v32 = vpop.permute.xlu1 %2259 }
 0x39c   : > { %v2128_v60 = vadd.f32 %v2127_v10, %v2126_v4 }
 0x39e   : > { %2129 = vadd.xlane.f32.xlu0 %v2128_v60 }
 0x39f   : > { %v2279_v4 = vpop.permute.xlu1 %2278 }
 0x3a3   : > { %v2297_v10 = vpop.permute.xlu1 %2296 }
 0x3b4   : > { %2155 = vperm.xlu0 %3438, %v6448_v14   ;;  %v2305_v14 = vld [vmem:[#allocation2 + $0xc] sm:$0xf] }
 0x3b5   : > { %v2307_v2 = vmul.f32 %v2305_v14, %v6460_v1 }
 0x3b8   : > { %3439 = vset.pattern.permute.xlu0 %v6449_v49 }
 0x42b   : > { %v2130_v7 = vpop.xlane.xlu0 %2129 }
 0x42c   : > { %v2131_v18 = vrot.slane %v2130_v7, 4 }
 0x42e   : > { %v2132_v57 = vadd.f32 %v2131_v18, %v2130_v7 }
 0x430   : > { %v2133_v38 = vrot.slane %v2132_v57, 2 }
 0x432   : > { %v2134_v42 = vadd.f32 %v2133_v38, %v2132_v57 }
 0x433   : > { %v2156_v52 = vpop.permute.xlu0 %2155 }
 0x434   : > { %v2135_v21 = vrot.slane %v2134_v42, 1 }
 0x436   : > { %v2136_v46 = vadd.f32 %v2135_v21, %v2134_v42 }
 0x438   : > { %3271 = vpush %v2136_v46 }
 0x469   : > { %s3272_s29 = spop %3271 }
 0x46a   : > { %s2140_s20 = smul.f32 0.0009765625, %s3272_s29 }
 0x46c   : > { %s2141_s19 = sadd.f32 1e-05, %s2140_s20 }
 0x46e   : > { %v2142_v53 = vstv %s2141_s19 }
 0x46f   : > { %3465 = vrsqrt.f32 %v2142_v53 }
 0x479   : > { %v3466_v44 = vpop.eup %3465 }
 0x47a   : > { %3273 = vpush %v3466_v44 }
 0x4ab   : > { %s3274_s30 = spop %3273 }
 0x4ac   : > { %v2145_v58 = vstv %s3274_s30 }
 0x4ad   : > { %v2146_v16 = vmul.f32 %v2145_v58, %v2122_v45  ;;  %v2147_v11 = vmul.f32 %v2145_v58, %v2123_v20  ;;  %v5527_v45 = vld [vmem:[%s5863_s7] sm:$0xff]  ;;  %v5532_v20 = vld [vmem:[%s5863_s7 + $0x8] sm:$0xff] }
 0x4af   : > { %v2152_v23 = vmul.f32 %v2150_v19, %v2146_v16  ;;  %v2153_v61 = vmul.f32 %v2150_v19, %v2147_v11 }
 0x4b1   : > { %v2158_v3 = vadd.f32 %v2156_v52, %v2152_v23  ;;  %v2159_v63 = vadd.f32 %v2156_v52, %v2153_v61 }
 0x4b3   : > { %v2162_v29 = vcombine.low %v2158_v3, %v2159_v63  ;;  %v3487_v35 = vcombine.low %v2159_v63, %v2159_v63  ;;  %v3488_v55 = vcombine.low %v2158_v3, %v2158_v3 }
 0x4b5   : > { %2164 = vst [vmem:[#allocation2 + $0x4] sm:$0xff] %v2162_v29  ;;  %2294 = vrot.lane.b32.xlu0 %v2162_v29, %s6451_s25  ;;  %2245 = vst [vmem:[#allocation4 + $0x20] sm:$0xf] %v2162_v29  ;;  %v2249_v30 = vmul.f32 %v2162_v29, %v6456_v24  ;;  %v2269_v25 = vmul.f32 %v2162_v29, %v6457_v41  ;;  %v2306_v36 = vmul.f32 %v2162_v29, %v6462_v56 }
 0x4b6   : > { %2246 = vst [vmem:[#allocation4 + $0x28] sm:$0xf] %v3487_v35 }
 0x4b7   : > { %v2273_v33 = vcombine.high %v2269_v25, %v2269_v25  ;;  %v2253_v9 = vcombine.low %v2249_v30, %v2249_v30  ;;  %v2310_v48 = vcombine.high %v2306_v36, %v2306_v36 }
 0x4bc   : > { %v2184_v54 = vld [vmem:[#allocation2] sm:$0xff]  ;;  %v2166_v43 = vld [vmem:[#allocation2 + $0x8] sm:$0xf] }
 0x4bd   : > { %2192 = vrot.lane.b32.xlu1 %v2184_v54, %s6452_s11  ;;  %v2167_v39 = vmul.f32 %v2184_v54, %v6453_v47  ;;  %v2168_v15 = vmul.f32 %v2166_v43, %v6454_v13  ;;  %v2204_v5 = vmul.f32 %v2184_v54, %v6455_v62  ;;  %v3459_v22 = vld [vmem:[#allocation2 + $0x8] ss:$0 sps:$4 sm:$0xff]   ;;  %v2223_v50 = vmul.f32 %v2184_v54, %v6459_v37 }
 0x4be   : > { %v2203_v0 = vld [vmem:[#allocation2 + $0x8] sm:$0xf]  ;;  %v2188_v26 = vcombine.low %v2184_v54, %v2184_v54 }
 0x4bf   : > { %2172 = vrot.lane.b32.xlu0 %v2167_v39, %s6089_s23  ;;  %v2205_v28 = vmul.f32 %v2203_v0, %v6458_v6  ;;  %v2171_v27 = vcombine.high %v2167_v39, %v2167_v39  ;;  %v2222_v17 = vld [vmem:[#allocation2 + $0x8] sm:$0xf]  ;;  %v2208_v31 = vcombine.high %v2204_v5, %v2204_v5  ;;  %v2227_v59 = vcombine.low %v2223_v50, %v2223_v50 }
 0x4c0   : > { %v2224_v8 = vmul.f32 %v2222_v17, %v6461_v12  ;;  %v2323_v12 = vld [vmem:[%s5862_s6] sm:$0xff] }
 0x4c1   : > { %2176 = vrot.lane.b32.xlu1 %v2168_v15, %s6089_s23 }
 0x4c2   : > { %v2228_v51 = vcombine.low %v2224_v8, %v2224_v8 }
 0x4c3   : > { %2209 = vrot.lane.b32.xlu0 %v2204_v5, %s6143_s28 }
 0x4c5   : > { %2194 = vrot.lane.b32.xlu1 %v3459_v22, %s6452_s11 }
 0x4c7   : > { %2257 = vrot.lane.b32.xlu0 %v2249_v30, %s6149_s15 }
 0x4c9   : > { %2213 = vrot.lane.b32.xlu1 %v2205_v28, %s6143_s28 }
 0x4cb   : > { %2276 = vrot.lane.b32.xlu0 %v2273_v33, %s6100_s17 }
 0x4cd   : > { %2231 = vrot.lane.b32.xlu1 %v2223_v50, %s6094_s27 }
 0x4cf   : > { %2255 = vrot.lane.b32.xlu0 %v2253_v9, %s6149_s15 }
 0x4d1   : > { %2190 = vrot.lane.b32.xlu1 %v2188_v26, %s6452_s11 }
 0x4d3   : > { %2292 = vrot.lane.b32.xlu0 %v3488_v55, %s6451_s25 }
 0x4d5   : > { %2174 = vrot.lane.b32.xlu1 %v2171_v27, %s6089_s23 }
 0x4d7   : > { %2315 = vrot.lane.b32.xlu0 %v2307_v2, %s6151_s24 }
 0x4d9   : > { %2211 = vrot.lane.b32.xlu1 %v2208_v31, %s6143_s28 }
 0x4db   : > { %2339 = vperm.xlu0 %3439, %v5527_v45  }
 0x4dd   : > { %2233 = vrot.lane.b32.xlu1 %v2228_v51, %s6094_s27  ;;  %v6472_v51 = vmov 0.0  }
 0x4df   : > { %3441 = vset.pattern.permute.xlu0 %v6463_v34 }
 0x4e1   : > { %2229 = vrot.lane.b32.xlu1 %v2227_v59, %s6094_s27  ;;  %v2324_v59 = vld [vmem:[%s5862_s6 + $0x8] sm:$0xff] }
 0x4e5   : > { %2274 = vrot.lane.b32.xlu1 %v2269_v25, %s6100_s17 }
 0x4e9   : > { %2313 = vrot.lane.b32.xlu1 %v2310_v48, %s6151_s24 }
 0x4ed   : > { %2311 = vrot.lane.b32.xlu1 %v2306_v36, %s6151_s24 }
 0x4f1   : > { %2344 = vperm.xlu1 %3440, %v5532_v20  }
 0x4f5   : > { %3442 = vset.pattern.permute.xlu1 %v6463_v34 }
 0x527   : > { %v2295_v60 = vpop.permute.xlu0 %2294 }
 0x528   : > { %v2299_v7 = vsel %vm1485_vm8, %v2295_v60, %v2297_v10 }
 0x529   : > { %2303 = vst [vmem:[#allocation4 + $0x38] sm:$0xf0] %v2299_v7 }
 0x52f   : > { %v2193_v18 = vpop.permute.xlu1 %2192 }
 0x531   : > { %v2173_v57 = vpop.permute.xlu0 %2172 }
 0x533   : > { %v2177_v38 = vpop.permute.xlu1 %2176 }
 0x535   : > { %v2210_v42 = vpop.permute.xlu0 %2209 }
 0x537   : > { %v2195_v40 = vpop.permute.xlu1 %2194 }
 0x538   : > { %v2197_v21 = vsel %vm1041_vm1, %v2193_v18, %v2195_v40 }
 0x539   : > { %2201 = vst [vmem:[#allocation4 + $0x8] sm:$0xf0] %v2197_v21  ;;  %v2258_v46 = vpop.permute.xlu0 %2257 }
 0x53a   : > { %v2262_v53 = vsel %vm6464_vm2, %v2258_v46, %v2260_v32 }
 0x53b   : > { %2266 = vst [vmem:[#allocation4 + $0x28] sm:$0xf0] %v2262_v53  ;;  %v2214_v44 = vpop.permute.xlu1 %2213 }
 0x53d   : > { %v2277_v58 = vpop.permute.xlu0 %2276 }
 0x53e   : > { %v2281_v16 = vsel %vm6465_vm3, %v2277_v58, %v2279_v4 }
 0x53f   : > { %2285 = vst [vmem:[#allocation4 + $0x38] sm:$0xf] %v2281_v16  ;;  %v2232_v11 = vpop.permute.xlu1 %2231 }
 0x541   : > { %v2256_v19 = vpop.permute.xlu0 %2255 }
 0x542   : > { %v2261_v52 = vsel %vm6466_vm0, %v2256_v19, %v2258_v46  ;;  %v2330_v26 = vld [vmem:[#allocation4 + $0x28] sm:$0xff]  ;;  %vm6479_vm0 = vmmov %vm6470_vm10 }
 0x543   : > { %2265 = vst [vmem:[#allocation4 + $0x20] sm:$0xf0] %v2261_v52  ;;  %v2191_v23 = vpop.permute.xlu1 %2190 }
 0x544   : > { %v2196_v61 = vsel %vm1041_vm1, %v2191_v23, %v2193_v18 }
 0x545   : > { %2200 = vst [vmem:[#allocation4] sm:$0xf0] %v2196_v61  ;;  %v2293_v3 = vpop.permute.xlu0 %2292 }
 0x546   : > { %v2298_v63 = vsel %vm1485_vm8, %v2293_v3, %v2295_v60  ;;  %v2332_v28 = vld [vmem:[#allocation4 + $0x38] sm:$0xff] }
 0x547   : > { %2302 = vst [vmem:[#allocation4 + $0x30] sm:$0xf0] %v2298_v63  ;;  %v2175_v29 = vpop.permute.xlu1 %2174  ;;  %v3229_v55 = vpack.c.bf16 %v2332_v28, %v2330_v26 }
 0x548   : > { %v2178_v35 = vsel %vm1015_vm6, %v2173_v57, %v2175_v29  ;;  %v2179_v54 = vsel %vm1015_vm6, %v2175_v29, %v2177_v38 }
 0x549   : > { %2182 = vst [vmem:[#allocation4] sm:$0xf] %v2178_v35  ;;  %2183 = vst [vmem:[#allocation4 + $0x8] sm:$0xf] %v2179_v54  ;;  %v2316_v25 = vpop.permute.xlu0 %2315 }
 0x54a   : > { %v2329_v17 = vld [vmem:[#allocation4 + $0x20] sm:$0xff] }
 0x54b   : > { %v2212_v43 = vpop.permute.xlu1 %2211 }
 0x54c   : > { %v2215_v47 = vsel %vm6467_vm4, %v2210_v42, %v2212_v43  ;;  %v2216_v39 = vsel %vm6468_vm7, %v2212_v43, %v2214_v44  ;;  %vm6480_vm4 = vmmov %vm6469_vm9  ;;  %vm6481_vm7 = vcmask 1039360  }
 0x54d   : > { %2219 = vst [vmem:[#allocation4 + $0x10] sm:$0xf] %v2215_v47  ;;  %2220 = vst [vmem:[#allocation4 + $0x18] sm:$0xf] %v2216_v39 }
 0x54f   : > { %v2234_v13 = vpop.permute.xlu1 %2233 }
 0x550   : > { %v2236_v15 = vsel %vm1249_vm11, %v2232_v11, %v2234_v13  ;;  %v2326_v24 = vld [vmem:[#allocation4 + $0x8] sm:$0xff]  ;;  %v2325_v37 = vld [vmem:[#allocation4] sm:$0xff] }
 0x551   : > { %2240 = vst [vmem:[#allocation4 + $0x18] sm:$0xf0] %v2236_v15 }
 0x553   : > { %v2230_v62 = vpop.permute.xlu1 %2229 }
 0x554   : > { %v2235_v5 = vsel %vm1249_vm11, %v2230_v62, %v2232_v11 }
 0x555   : > { %2239 = vst [vmem:[#allocation4 + $0x10] sm:$0xf0] %v2235_v5 }
 0x557   : > { %v2275_v22 = vpop.permute.xlu1 %2274 }
 0x558   : > { %v2280_v0 = vsel %vm6469_vm9, %v2275_v22, %v2277_v58  ;;  %v2328_v30 = vld [vmem:[#allocation4 + $0x18] sm:$0xff]  ;;  %vm6482_vm9 = vcmask 121856  }
 0x559   : > { %2284 = vst [vmem:[#allocation4 + $0x30] sm:$0xf] %v2280_v0  ;;  %v3225_v41 = vpack.c.bf16 %v2328_v30, %v2326_v24 }
 0x55a   : > { %v2340_v56 = vpop.permute.xlu0 %2339 }
 0x55b   : > { %3226 = vmatprep.subr.bf16.mxu0 %v3225_v41  ;;  %v2314_v6 = vpop.permute.xlu1 %2313 }
 0x55c   : > { %v2318_v33 = vsel %vm6470_vm10, %v2314_v6, %v2316_v25  ;;  %v2327_v50 = vld [vmem:[#allocation4 + $0x10] sm:$0xff]  ;;  %vm3053_vm10 = vcmask 162816  }
 0x55d   : > { %2322 = vst [vmem:[#allocation4 + $0x48] sm:$0xf] %v2318_v33  ;;  %v3227_v9 = vpack.c.bf16 %v2327_v50, %v2325_v37 }
 0x55f   : > { %3228 = vmatpush1.bf16.msra.mxu0 %v3227_v9  ;;  %v2312_v14 = vpop.permute.xlu1 %2311 }
 0x560   : > { %v2317_v27 = vsel %vm6471_vm12, %v2312_v14, %v2314_v6  ;;  %3230 = vmatprep.subr.bf16.mxu0 %v3229_v55  ;;  %v2331_v1 = vld [vmem:[#allocation4 + $0x30] sm:$0xff] }
 0x561   : > { %2321 = vst [vmem:[#allocation4 + $0x40] sm:$0xf] %v2317_v27  ;;  %v3231_v2 = vpack.c.bf16 %v2331_v1, %v2329_v17 }
 0x563   : > { %3232 = vmatpush1.bf16.msra.mxu0 %v3231_v2 }
 0x564   : > { %v2334_v31 = vld [vmem:[#allocation4 + $0x48] sm:$0xf] }
 0x565   : > { %3214 = vmatprep.subr.msk.mxu0 %vm2105_vm15, %v2334_v31 }
 0x568   : > { %v2333_v8 = vld [vmem:[#allocation4 + $0x40] sm:$0xf] }
 0x569   : > { %3215 = vmatpush1.msk.msra.mxu0 %vm2105_vm15, %v2333_v8 }
 0x56a   : > { %3216 = vmatmul.mubr.msk.f32.vlgmr.msra.gmra.mrb[0].mxu0 %vm2347_vm13, %v2323_v12 }
 0x56b   : > { %2430 = vmatprep.mubr.f32.mxu0 %v6472_v51 }
 0x56e   : > { %3217 = vmatmul.mubr.msk.f32.gmra.mrb[2].mxu0 %vm2347_vm13, %v2324_v59 }
 0x570   : > { %v2345_v4 = vpop.permute.xlu1 %2344 }
 0x63d   : > { %v2426_v36 = vpop.f32.mrb[0].mxu0 }
 0x63e   : > { %v5563_v48 = vadd.f32 %v2426_v36, %v2340_v56  ;;  %v2428_v34 = vpop.f32.mrb[1].mxu0 }
 0x63f   : > { %v5565_v32 = vadd.f32 %v2428_v34, %v2340_v56 }
 0x640   : > { %v5568_v10 = vmul.f32 0.70710677, %v5563_v48 }
 0x641   : > { %v5571_v60 = vmul.f32 0.70710677, %v5565_v32  ;;  %v2432_v7 = vpop.f32.mrb[2].mxu0 }
 0x642   : > { %v2453_v18 = vand.u32 2147483647, %v5568_v10  ;;  %v5574_v57 = vadd.f32 %v2432_v7, %v2345_v4  ;;  %v2434_v38 = vpop.f32.mrb[3].mxu0  ;;  %vm2445_vm5 = vcmp.lt.f32.partialorder %v5568_v10, 0.0 }
 0x643   : > { %v2454_v42 = vand.u32 2147483647, %v5571_v60  ;;  %v5577_v40 = vadd.f32 %v2434_v38, %v2345_v4  ;;  %vm2446_vm14 = vcmp.lt.f32.partialorder %v5571_v60, 0.0 }
 0x644   : > { %v2457_v21 = vmul.f32 0.3275911, %v2453_v18  ;;  %v5580_v53 = vmul.f32 0.70710677, %v5574_v57  ;;  %v2509_v3 = vsub.f32 0.0, %v2453_v18 }
 0x645   : > { %v2458_v46 = vmul.f32 0.3275911, %v2454_v42  ;;  %v5583_v58 = vmul.f32 0.70710677, %v5577_v40  ;;  %v2510_v29 = vsub.f32 0.0, %v2454_v42 }
 0x646   : > { %v2461_v44 = vadd.f32 1.0, %v2457_v21  ;;  %v2455_v11 = vand.u32 2147483647, %v5580_v53  ;;  %v2513_v54 = vmul.f32 %v2509_v3, %v2453_v18  ;;  %vm2447_vm2 = vcmp.lt.f32.partialorder %v5580_v53, 0.0 }
 0x647   : > { %v2462_v16 = vadd.f32 1.0, %v2458_v46  ;;  %v2456_v52 = vand.u32 2147483647, %v5583_v58  ;;  %v2514_v39 = vmul.f32 %v2510_v29, %v2454_v42  ;;  %vm2448_vm3 = vcmp.lt.f32.partialorder %v5583_v58, 0.0 }
 0x648   : > { %3467 = vrcp.f32 %v2461_v44  ;;  %v2459_v19 = vmul.f32 0.3275911, %v2455_v11  ;;  %v2511_v13 = vsub.f32 0.0, %v2455_v11  ;;  %v2517_v5 = vmul.f32 1.442695, %v2513_v54 }
 0x649   : > { %3469 = vrcp.f32 %v2462_v16  ;;  %v2460_v61 = vmul.f32 0.3275911, %v2456_v52  ;;  %v2512_v0 = vsub.f32 0.0, %v2456_v52  ;;  %v2519_v41 = vmul.f32 1.442695, %v2514_v39 }
 0x64a   : > { %v2463_v23 = vadd.f32 1.0, %v2459_v19  ;;  %v2515_v25 = vmul.f32 %v2511_v13, %v2455_v11  ;;  %v6473_v54 = vmov 1.0   ;;  %v6474_v58 = vmov 2  }
 0x64b   : > { %v2464_v63 = vadd.f32 1.0, %v2460_v61  ;;  %v2516_v26 = vmul.f32 %v2512_v0, %v2456_v52 }
 0x64c   : > { %3471 = vrcp.f32 %v2463_v23  ;;  %v2521_v14 = vmul.f32 1.442695, %v2515_v25 }
 0x64d   : > { %3473 = vrcp.f32 %v2464_v63  ;;  %v2523_v59 = vmul.f32 1.442695, %v2516_v26 }
 0x64e   : > { %3475 = vpow2.f32 %v2517_v5 }
 0x64f   : > { %3477 = vpow2.f32 %v2519_v41  ;;  %v2438_v41 = vmul.f32 0.5, %v5565_v32  ;;  %v2440_v32 = vmul.f32 0.5, %v5577_v40  ;;  %v6477_v40 = vld [vmem:[#allocation8_spill] sm:$0xff] }
 0x650   : > { %3479 = vpow2.f32 %v2521_v14 }
 0x651   : > { %3481 = vpow2.f32 %v2523_v59 }
 0x652   : > { %v3468_v35 = vpop.eup %3467 }
 0x653   : > { %v3470_v43 = vpop.eup %3469  ;;  %v2473_v47 = vmul.f32 1.0614054, %v3468_v35 }
 0x654   : > { %v2474_v15 = vmul.f32 1.0614054, %v3470_v43 }
 0x655   : > { %v2477_v62 = vadd.f32 -1.4531521, %v2473_v47  ;;  %v2449_v47 = vsel %vm2445_vm5, -1.0, %v6473_v54 }
 0x656   : > { %v2478_v22 = vadd.f32 -1.4531521, %v2474_v15  ;;  %v3472_v24 = vpop.eup %3471 }
 0x657   : > { %v2481_v30 = vmul.f32 %v3468_v35, %v2477_v62  ;;  %v2475_v28 = vmul.f32 1.0614054, %v3472_v24  ;;  %v3474_v37 = vpop.eup %3473 }
 0x658   : > { %v2482_v6 = vmul.f32 %v3470_v43, %v2478_v22  ;;  %v2476_v27 = vmul.f32 1.0614054, %v3474_v37  ;;  %v3476_v44 = vpop.eup %3475  ;;  %v2437_v22 = vmul.f32 0.5, %v5563_v48 }
 0x659   : > { %v2485_v33 = vadd.f32 1.4214138, %v2481_v30  ;;  %v2479_v9 = vadd.f32 -1.4531521, %v2475_v28  ;;  %v3478_v19 = vpop.eup %3477 }
 0x65a   : > { %v2486_v50 = vadd.f32 1.4214138, %v2482_v6  ;;  %v2480_v31 = vadd.f32 -1.4531521, %v2476_v27 }
 0x65b   : > { %v2489_v55 = vmul.f32 %v3468_v35, %v2485_v33  ;;  %v2483_v1 = vmul.f32 %v3472_v24, %v2479_v9 }
 0x65c   : > { %v2490_v17 = vmul.f32 %v3470_v43, %v2486_v50  ;;  %v2484_v36 = vmul.f32 %v3474_v37, %v2480_v31 }
 0x65d   : > { %v2493_v2 = vadd.f32 -0.28449672, %v2489_v55  ;;  %v2487_v8 = vadd.f32 1.4214138, %v2483_v1  ;;  %v2439_v55 = vmul.f32 0.5, %v5574_v57  ;;  %v6475_v57 = vld [vmem:[#allocation6_spill] sm:$0xff] }
 0x65e   : > { %v2494_v12 = vadd.f32 -0.28449672, %v2490_v17  ;;  %v2488_v18 = vadd.f32 1.4214138, %v2484_v36 }
 0x65f   : > { %v2497_v56 = vmul.f32 %v3468_v35, %v2493_v2  ;;  %v2491_v4 = vmul.f32 %v3472_v24, %v2487_v8  ;;  %v6478_v8 = vld [vmem:[#allocation9_spill] sm:$0xff] }
 0x660   : > { %v2498_v34 = vmul.f32 %v3470_v43, %v2494_v12  ;;  %v2492_v46 = vmul.f32 %v3474_v37, %v2488_v18  ;;  %v6476_v12 = vld [vmem:[#allocation7_spill] sm:$0xff] }
 0x661   : > { %v2501_v7 = vadd.f32 0.2548296, %v2497_v56  ;;  %v2495_v42 = vadd.f32 -0.28449672, %v2491_v4 }
 0x662   : > { %v2502_v38 = vadd.f32 0.2548296, %v2498_v34  ;;  %v2496_v23 = vadd.f32 -0.28449672, %v2492_v46 }
 0x663   : > { %v2505_v21 = vmul.f32 %v3468_v35, %v2501_v7  ;;  %v2499_v11 = vmul.f32 %v3472_v24, %v2495_v42  ;;  %v3480_v35 = vpop.eup %3479 }
 0x664   : > { %v2506_v16 = vmul.f32 %v3470_v43, %v2502_v38  ;;  %v2500_v29 = vmul.f32 %v3474_v37, %v2496_v23  ;;  %v2450_v43 = vsel %vm2446_vm14, -1.0, %v6473_v54  ;;  %v3482_v30 = vpop.eup %3481  ;;  %vm6490_vm14 = vmmov %vm6481_vm7 }
 0x665   : > { %v2525_v52 = vmul.f32 %v3476_v44, %v2505_v21  ;;  %v2503_v3 = vadd.f32 0.2548296, %v2499_v11 }
 0x666   : > { %v2526_v61 = vmul.f32 %v3478_v19, %v2506_v16  ;;  %v2504_v62 = vadd.f32 0.2548296, %v2500_v29 }
 0x667   : > { %v2529_v63 = vsub.f32 1.0, %v2525_v52  ;;  %v2507_v13 = vmul.f32 %v3472_v24, %v2503_v3  ;;  %v2451_v24 = vsel %vm2447_vm2, -1.0, %v6473_v54  ;;  %vm6491_vm2 = vmmov %vm6479_vm0 }
 0x668   : > { %v2530_v39 = vsub.f32 1.0, %v2526_v61  ;;  %v2508_v0 = vmul.f32 %v3474_v37, %v2504_v62  ;;  %v2452_v37 = vsel %vm2448_vm3, -1.0, %v6473_v54  ;;  %vm6492_vm3 = vmmov %vm6481_vm7 }
 0x669   : > { %v2533_v15 = vmul.f32 %v2529_v63, %v2449_v47  ;;  %v2527_v10 = vmul.f32 %v3480_v35, %v2507_v13 }
 0x66a   : > { %v2534_v5 = vmul.f32 %v2530_v39, %v2450_v43  ;;  %v2528_v33 = vmul.f32 %v3482_v30, %v2508_v0 }
 0x66b   : > { %v2537_v60 = vadd.f32 1.0, %v2533_v15  ;;  %v2531_v6 = vsub.f32 1.0, %v2527_v10 }
 0x66c   : > { %v2538_v25 = vadd.f32 1.0, %v2534_v5  ;;  %v2532_v26 = vsub.f32 1.0, %v2528_v33 }
 0x66d   : > { %v2541_v28 = vmul.f32 %v2537_v60, %v2437_v22  ;;  %v2535_v9 = vmul.f32 %v2531_v6, %v2451_v24 }
 0x66e   : > { %v2542_v50 = vmul.f32 %v2538_v25, %v2438_v41  ;;  %v2536_v14 = vmul.f32 %v2532_v26, %v2452_v37 }
 0x66f   : > { %v2539_v48 = vadd.f32 1.0, %v2535_v9 }
 0x670   : > { %v2545_v53 = vadd.f32 %v2542_v50, %v2541_v28  ;;  %v2540_v17 = vadd.f32 1.0, %v2536_v14 }
 0x671   : > { %v2543_v27 = vmul.f32 %v2539_v48, %v2439_v55 }
 0x672   : > { %v2544_v2 = vmul.f32 %v2540_v17, %v2440_v32 }
 0x673   : > { %v2546_v1 = vadd.f32 %v2545_v53, %v2543_v27 }
 0x675   : > { %v2547_v31 = vadd.f32 %v2546_v1, %v2544_v2 }
 0x677   : > { %2548 = vadd.xlane.f32.xlu1 %v2547_v31 }
 0x688   : > { %2598 = vperm.xlu1 %3442, %v5532_v20  }
 0x68c   : > { %3443 = vset.pattern.permute.xlu1 %v6474_v58 }
 0x68d   : > { %2606 = vperm.xlu1 %3443, %v5527_v45  }
 0x691   : > { %2610 = vperm.xlu1 %3443, %v5532_v20  }
 0x695   : > { %2627 = vrot.lane.b32.xlu1 %v6475_v57, %s6151_s24 }
 0x699   : > { %2629 = vrot.lane.b32.xlu1 %v6476_v12, %s6151_s24 }
 0x69d   : > { %2713 = vrot.lane.b32.xlu1 %v6477_v40, %s6100_s17 }
 0x6a1   : > { %2715 = vrot.lane.b32.xlu1 %v6478_v8, %s6100_s17 }
 0x6a5   : > { %2765 = vrot.lane.b32.xlu1 %v6476_v12, %s6149_s15 }
 0x6a9   : > { %2823 = vrot.lane.b32.xlu1 %v6478_v8, %s6094_s27 }
 0x6ad   : > { %2873 = vrot.lane.b32.xlu1 %v6476_v12, %s6143_s28 }
 0x6b1   : > { %2959 = vrot.lane.b32.xlu1 %v6478_v8, %s6089_s23 }
 0x704   : > { %v2549_v20 = vpop.xlane.xlu1 %2548 }
 0x705   : > { %v2550_v59 = vrot.slane %v2549_v20, 4 }
 0x707   : > { %v2551_v56 = vadd.f32 %v2550_v59, %v2549_v20 }
 0x708   : > { %v2599_v3 = vpop.permute.xlu1 %2598 }
 0x709   : > { %v2552_v36 = vrot.slane %v2551_v56, 2 }
 0x70b   : > { %v2553_v34 = vadd.f32 %v2552_v36, %v2551_v56 }
 0x70c   : > { %v2607_v63 = vpop.permute.xlu1 %2606 }
 0x70d   : > { %v2554_v4 = vrot.slane %v2553_v34, 1 }
 0x70f   : > { %v2555_v7 = vadd.f32 %v2554_v4, %v2553_v34 }
 0x710   : > { %v2611_v29 = vpop.permute.xlu1 %2610 }
 0x711   : > { %3275 = vpush %v2555_v7 }
 0x714   : > { %v2628_v54 = vpop.permute.xlu1 %2627 }
 0x715   : > { %v2635_v47 = vmul.f32 0.0, %v2628_v54 }
 0x717   : > { %2653 = vrot.lane.b32.xlu1 %v2635_v47, %s6089_s23 }
 0x742   : > { %s3276_s19 = spop %3275 }
 0x743   : > { %s2559_s30 = smul.f32 0.00024414063, %s3276_s19 }
 0x745   : > { %v2560_v18 = vstv %s2559_s30 }
 0x746   : > { %v5619_v38 = vsub.f32 %v2541_v28, %v2560_v18  ;;  %v5621_v42 = vsub.f32 %v2542_v50, %v2560_v18  ;;  %v5623_v21 = vsub.f32 %v2543_v27, %v2560_v18  ;;  %v5625_v46 = vsub.f32 %v2544_v2, %v2560_v18 }
 0x748   : > { %v2565_v44 = vmul.f32 %v5619_v38, %v5619_v38  ;;  %v2566_v16 = vmul.f32 %v5621_v42, %v5621_v42  ;;  %v2567_v11 = vmul.f32 %v5623_v21, %v5623_v21  ;;  %v2568_v52 = vmul.f32 %v5625_v46, %v5625_v46 }
 0x74a   : > { %v2569_v19 = vadd.f32 %v2566_v16, %v2565_v44 }
 0x74c   : > { %v2570_v23 = vadd.f32 %v2569_v19, %v2567_v11 }
 0x74e   : > { %v2571_v61 = vadd.f32 %v2570_v23, %v2568_v52 }
 0x750   : > { %2572 = vadd.xlane.f32.xlu0 %v2571_v61 }
 0x766   : > { %2594 = vperm.xlu0 %3441, %v5527_v45   ;;  %v5647_v45 = vpop.permute.xlu1 %2629 }
 0x767   : > { %v2631_v31 = vsel %vm6479_vm0, %v2628_v54, %v5647_v45 }
 0x76a   : > { %2763 = vrot.lane.b32.xlu0 %v6475_v57, %s6149_s15 }
 0x76b   : > { %3454 = vset.pattern.permute.xlu0 %v6449_v49  ;;  %v5651_v49 = vpop.permute.xlu1 %2713 }
 0x76c   : > { %v2721_v39 = vmul.f32 0.0, %v5651_v49 }
 0x76e   : > { %2821 = vrot.lane.b32.xlu0 %v6477_v40, %s6094_s27  ;;  %2733 = vrot.lane.b32.xlu1 %v2721_v39, %s6143_s28 }
 0x76f   : > { %v5656_v35 = vpop.permute.xlu1 %2715 }
 0x770   : > { %v2717_v36 = vsel %vm6480_vm4, %v5651_v49, %v5656_v35 }
 0x772   : > { %2871 = vrot.lane.b32.xlu0 %v6475_v57, %s6143_s28 }
 0x773   : > { %v5658_v5 = vpop.permute.xlu1 %2765 }
 0x776   : > { %2957 = vrot.lane.b32.xlu0 %v6477_v40, %s6089_s23 }
 0x777   : > { %v5662_v41 = vpop.permute.xlu1 %2823 }
 0x778   : > { %v2831_v6 = vmul.f32 0.0, %v5662_v41 }
 0x77a   : > { %2647 = vrot.lane.b32.xlu0 %v2635_v47, %s6089_s23 }
 0x77b   : > { %v5669_v28 = vpop.permute.xlu1 %2873 }
 0x77c   : > { %v2881_v24 = vmul.f32 0.0, %v5669_v28 }
 0x77e   : > { %3445 = vrot.lane.b32.xlu0 %v6472_v51, %s6452_s11 }
 0x77f   : > { %v2960_v19 = vpop.permute.xlu1 %2959 }
 0x780   : > { %v2967_v61 = vmul.f32 0.0, %v2960_v19 }
 0x782   : > { %2739 = vrot.lane.b32.xlu0 %v2721_v39, %s6143_s28 }
 0x7dd   : > { %v2573_v13 = vpop.xlane.xlu0 %2572 }
 0x7de   : > { %v2574_v15 = vrot.slane %v2573_v13, 4 }
 0x7e0   : > { %v2575_v43 = vadd.f32 %v2574_v15, %v2573_v13 }
 0x7e2   : > { %v2576_v62 = vrot.slane %v2575_v43, 2 }
 0x7e4   : > { %v2577_v10 = vadd.f32 %v2576_v62, %v2575_v43  ;;  %v3001_v43 = vld [vmem:[%s3705_s16] sm:$0xff] }
 0x7e5   : > { %v2595_v22 = vpop.permute.xlu0 %2594  ;;  %v3003_v62 = vcombine.high %v3001_v43, %v3001_v43  ;;  %3005 = vst [vmem:[#allocation5 + $0x120] sm:$0xf] %v3001_v43 }
 0x7e6   : > { %v2578_v60 = vrot.slane %v2577_v10, 1 }
 0x7e7   : > { %3006 = vst [vmem:[#allocation5 + $0x128] sm:$0xf] %v3003_v62 }
 0x7e8   : > { %v2579_v0 = vadd.f32 %v2578_v60, %v2577_v10  ;;  %v3047_v60 = vld [vmem:[%s5865_s9] sm:$0xff] }
 0x7e9   : > { %v5660_v30 = vpop.permute.xlu0 %2763 }
 0x7ea   : > { %3277 = vpush %v2579_v0  ;;  %v2771_v25 = vmul.f32 0.0, %v5660_v30 }
 0x7ec   : > { %2789 = vrot.lane.b32.xlu0 %v2771_v25, %s6094_s27  ;;  %2783 = vrot.lane.b32.xlu1 %v2771_v25, %s6094_s27 }
 0x7ed   : > { %v2822_v7 = vpop.permute.xlu0 %2821 }
 0x7f0   : > { %2845 = vrot.lane.b32.xlu0 %v2831_v6, %s6149_s15 }
 0x7f4   : > { %2851 = vrot.lane.b32.xlu0 %v2831_v6, %s6149_s15 }
 0x7f8   : > { %2895 = vrot.lane.b32.xlu0 %v2881_v24, %s6100_s17 }
 0x7fc   : > { %2901 = vrot.lane.b32.xlu0 %v2881_v24, %s6100_s17  ;;  %v2654_v24 = vpop.permute.xlu1 %2653 }
 0x800   : > { %3450 = vrot.lane.b32.xlu0 %v6472_v51, %s6451_s25 }
 0x81b   : > { %s3278_s26 = spop %3277 }
 0x81c   : > { %s2583_s18 = smul.f32 0.00024414063, %s3278_s26 }
 0x81e   : > { %s2584_s12 = sadd.f32 1e-05, %s2583_s18 }
 0x820   : > { %v2585_v33 = vstv %s2584_s12 }
 0x821   : > { %3483 = vrsqrt.f32 %v2585_v33  ;;  %v2734_v33 = vpop.permute.xlu1 %2733 }
 0x82b   : > { %v3484_v50 = vpop.eup %3483 }
 0x82c   : > { %3279 = vpush %v3484_v50 }
 0x85d   : > { %s3280_s21 = spop %3279 }
 0x85e   : > { %v2588_v9 = vstv %s3280_s21 }
 0x85f   : > { %v2589_v26 = vmul.f32 %v2588_v9, %v5619_v38  ;;  %v2590_v53 = vmul.f32 %v2588_v9, %v5621_v42  ;;  %v2591_v55 = vmul.f32 %v2588_v9, %v5623_v21  ;;  %v2592_v48 = vmul.f32 %v2588_v9, %v5625_v46  ;;  %v2872_v46 = vpop.permute.xlu0 %2871  ;;  %v2784_v9 = vpop.permute.xlu1 %2783 }
 0x860   : > { %v2767_v42 = vsel %vm6481_vm7, %v5660_v30, %v5658_v5  ;;  %v2875_v39 = vsel %vm6482_vm9, %v2872_v46, %v5669_v28 }
 0x861   : > { %v2601_v37 = vmul.f32 %v2595_v22, %v2589_v26  ;;  %v2602_v14 = vmul.f32 %v2595_v22, %v2590_v53  ;;  %v2603_v51 = vmul.f32 %v2599_v3, %v2591_v55  ;;  %v2604_v27 = vmul.f32 %v2599_v3, %v2592_v48  ;;  %v3008_v22 = vld [vmem:[%s5864_s8 + $0x8] sm:$0xff] }
 0x862   : > { %v2825_v3 = vsel %vm1249_vm11, %v2822_v7, %v5662_v41  ;;  %3220 = vmatprep.mubr.msk.f32.mxu1 %vm3053_vm10, %v3008_v22  ;;  %vm6497_vm10 = vmmov %vm6491_vm2 }
 0x863   : > { %v5681_v32 = vadd.f32 %v2607_v63, %v2601_v37  ;;  %v5683_v17 = vadd.f32 %v2607_v63, %v2602_v14  ;;  %v5685_v1 = vadd.f32 %v2611_v29, %v2603_v51  ;;  %v5687_v2 = vadd.f32 %v2611_v29, %v2604_v27  ;;  %v2958_v11 = vpop.permute.xlu0 %2957 }
 0x864   : > { %v2961_v23 = vsel %vm1015_vm6, %v2958_v11, %v2960_v19 }
 0x865   : > { %2687 = vrot.lane.b32.xlu1 %v5683_v17, %s6452_s11  ;;  %2685 = vrot.lane.b32.xlu0 %v5681_v32, %s6452_s11  ;;  %v3249_v58 = vpack.c.bf16 %v5687_v2, %v5683_v17  ;;  %v3251_v57 = vpack.c.bf16 %v5685_v1, %v5681_v32  ;;  %v2636_v12 = vmul.f32 %v2631_v31, %v5681_v32 }
 0x866   : > { %v2639_v40 = vmul.f32 %v2631_v31, %v5685_v1  ;;  %v2637_v8 = vmul.f32 %v5647_v45, %v5683_v17  ;;  %v2723_v20 = vmul.f32 %v5656_v35, %v5683_v17  ;;  %v2640_v59 = vmul.f32 %v5647_v45, %v5687_v2 }
 0x867   : > { %v2726_v56 = vmul.f32 %v5656_v35, %v5687_v2  ;;  %v2722_v34 = vmul.f32 %v2717_v36, %v5681_v32  ;;  %v2773_v4 = vmul.f32 %v5658_v5, %v5683_v17  ;;  %v2725_v18 = vmul.f32 %v2717_v36, %v5685_v1  ;;  %v2648_v35 = vpop.permute.xlu0 %2647 }
 0x868   : > { %v2776_v38 = vmul.f32 %v5658_v5, %v5687_v2  ;;  %v2772_v21 = vmul.f32 %v2767_v42, %v5681_v32  ;;  %v2775_v44 = vmul.f32 %v2767_v42, %v5685_v1  ;;  %v2832_v16 = vmul.f32 %v2822_v7, %v5685_v1 }
 0x869   : > { %2693 = vrot.lane.b32.xlu1 %v5687_v2, %s6452_s11  ;;  %2691 = vrot.lane.b32.xlu0 %v5685_v1, %s6452_s11  ;;  %v2882_v52 = vmul.f32 %v2872_v46, %v5685_v1  ;;  %v2966_v63 = vmul.f32 %v2961_v23, %v5683_v17  ;;  %v2830_v29 = vmul.f32 %v2825_v3, %v5683_v17 }
 0x86a   : > { %v2969_v54 = vmul.f32 %v2961_v23, %v5687_v2  ;;  %v2833_v47 = vmul.f32 %v2825_v3, %v5687_v2  ;;  %v2965_v45 = vmul.f32 %v2958_v11, %v5681_v32  ;;  %v2829_v49 = vmul.f32 %v2822_v7, %v5681_v32 }
 0x86b   : > { %v2880_v13 = vmul.f32 %v2875_v39, %v5683_v17  ;;  %v2883_v15 = vmul.f32 %v2875_v39, %v5687_v2  ;;  %v2879_v5 = vmul.f32 %v2872_v46, %v5681_v32  ;;  %v3446_v10 = vpop.permute.xlu0 %3445  ;;  %v2968_v30 = vmul.f32 %v2958_v11, %v5685_v1 }
 0x86c   : > { %v3447_v53 = vunpack.i.l.bf16 %v3446_v10  ;;  %v3448_v51 = vunpack.i.h.bf16 %v3446_v10 }
 0x86d   : > { %2929 = vrot.lane.b32.xlu1 %v5683_v17, %s6451_s25  ;;  %2649 = vrot.lane.b32.xlu0 %v2636_v12, %s6089_s23 }
 0x86f   : > { %v2740_v0 = vpop.permute.xlu0 %2739 }
 0x871   : > { %2935 = vrot.lane.b32.xlu1 %v5687_v2, %s6451_s25  ;;  %2655 = vrot.lane.b32.xlu0 %v2639_v40, %s6089_s23 }
 0x873   : > { %v5785_v41 = vpop.permute.xlu0 %2789 }
 0x875   : > { %2651 = vrot.lane.b32.xlu1 %v2637_v8, %s6089_s23  ;;  %2737 = vrot.lane.b32.xlu0 %v2723_v20, %s6143_s28 }
 0x877   : > { %v5787_v25 = vpop.permute.xlu0 %2845 }
 0x879   : > { %2657 = vrot.lane.b32.xlu1 %v2640_v59, %s6089_s23  ;;  %2743 = vrot.lane.b32.xlu0 %v2726_v56, %s6143_s28 }
 0x87b   : > { %v5789_v6 = vpop.permute.xlu0 %2851 }
 0x87d   : > { %2735 = vrot.lane.b32.xlu1 %v2722_v34, %s6143_s28  ;;  %2787 = vrot.lane.b32.xlu0 %v2773_v4, %s6094_s27 }
 0x87f   : > { %v5791_v28 = vpop.permute.xlu0 %2895 }
 0x881   : > { %2741 = vrot.lane.b32.xlu1 %v2725_v18, %s6143_s28  ;;  %2793 = vrot.lane.b32.xlu0 %v2776_v38, %s6094_s27 }
 0x883   : > { %v5793_v50 = vpop.permute.xlu0 %2901 }
 0x885   : > { %2785 = vrot.lane.b32.xlu1 %v2772_v21, %s6094_s27  ;;  %2927 = vrot.lane.b32.xlu0 %v5681_v32, %s6451_s25 }
 0x887   : > { %v3451_v26 = vpop.permute.xlu0 %3450 }
 0x888   : > { %v3452_v31 = vunpack.i.l.bf16 %v3451_v26  ;;  %v3453_v59 = vunpack.i.h.bf16 %v3451_v26 }
 0x889   : > { %2791 = vrot.lane.b32.xlu1 %v2775_v44, %s6094_s27  ;;  %2847 = vrot.lane.b32.xlu0 %v2832_v16, %s6149_s15 }
 0x88d   : > { %2933 = vrot.lane.b32.xlu1 %v5685_v1, %s6451_s25  ;;  %2897 = vrot.lane.b32.xlu0 %v2882_v52, %s6100_s17 }
 0x891   : > { %2981 = vrot.lane.b32.xlu1 %v2967_v61, %s6151_s24  ;;  %2979 = vrot.lane.b32.xlu0 %v2966_v63, %s6151_s24 }
 0x895   : > { %2843 = vrot.lane.b32.xlu1 %v2830_v29, %s6149_s15  ;;  %2985 = vrot.lane.b32.xlu0 %v2969_v54, %s6151_s24 }
 0x899   : > { %2849 = vrot.lane.b32.xlu1 %v2833_v47, %s6149_s15  ;;  %2977 = vrot.lane.b32.xlu0 %v2965_v45, %s6151_s24 }
 0x89d   : > { %2841 = vrot.lane.b32.xlu1 %v2829_v49, %s6149_s15  ;;  %3050 = vperm.xlu0 %3454, %v3047_v60  }
 0x8a1   : > { %2893 = vrot.lane.b32.xlu1 %v2880_v13, %s6100_s17 }
 0x8a5   : > { %2899 = vrot.lane.b32.xlu1 %v2883_v15, %s6100_s17 }
 0x8a9   : > { %2891 = vrot.lane.b32.xlu1 %v2879_v5, %s6100_s17 }
 0x8ad   : > { %2987 = vrot.lane.b32.xlu1 %v2967_v61, %s6151_s24 }
 0x8b1   : > { %2983 = vrot.lane.b32.xlu1 %v2968_v30, %s6151_s24  ;;  %s3224_s24 = sshll.u32 %s6500_s14, 4 }
 0x8b2   : > { %s373_s1 = scalar_lea.vmem %s5866_s10, %s3224_s24 }
 0x8d7   : > { %v2688_v55 = vpop.permute.xlu1 %2687  ;;  %v2686_v48 = vpop.permute.xlu0 %2685 }
 0x8d8   : > { %v2695_v37 = vsel %vm1041_vm1, %v3447_v53, %v2686_v48  ;;  %v2696_v14 = vsel %vm1041_vm1, %v2686_v48, %v2688_v55 }
 0x8db   : > { %v2694_v27 = vpop.permute.xlu1 %2693  ;;  %v2692_v12 = vpop.permute.xlu0 %2691 }
 0x8dc   : > { %v2697_v40 = vsel %vm1041_vm1, %v3448_v51, %v2692_v12  ;;  %v2698_v8 = vsel %vm1041_vm1, %v2692_v12, %v2694_v27  ;;  %vm6483_vm1 = vmmov %vm6482_vm9 }
 0x8dd   : > { %v3237_v61 = vpack.c.bf16 %v2698_v8, %v2696_v14  ;;  %vm6484_vm12 = vmmov %vm6483_vm1  ;;  %v3239_v54 = vpack.c.bf16 %v2697_v40, %v2695_v37 }
 0x8de   : > { %vm6485_vm13 = vmmov %vm6483_vm1 }
 0x8df   : > { %v2930_v20 = vpop.permute.xlu1 %2929  ;;  %v2650_v56 = vpop.permute.xlu0 %2649  ;;  %vm6486_vm5 = vmmov %vm6483_vm1 }
 0x8e0   : > { %v5800_v36 = vsel %vm1485_vm8, %v2930_v20, %v3452_v31  ;;  %v2659_v34 = vsel %vm1015_vm6, %v2648_v35, %v2650_v56 }
 0x8e3   : > { %v2936_v4 = vpop.permute.xlu1 %2935  ;;  %v2656_v7 = vpop.permute.xlu0 %2655 }
 0x8e4   : > { %v5804_v18 = vsel %vm1485_vm8, %v2936_v4, %v3453_v59  ;;  %v2661_v38 = vsel %vm1015_vm6, %v2654_v24, %v2656_v7 }
 0x8e5   : > { %v3235_v52 = vpack.c.bf16 %v2661_v38, %v2659_v34 }
 0x8e7   : > { %v2652_v42 = vpop.permute.xlu1 %2651  ;;  %v2738_v21 = vpop.permute.xlu0 %2737 }
 0x8e8   : > { %v2660_v46 = vsel %vm1015_vm6, %v2650_v56, %v2652_v42 }
 0x8eb   : > { %v2658_v44 = vpop.permute.xlu1 %2657  ;;  %v2744_v16 = vpop.permute.xlu0 %2743 }
 0x8ec   : > { %v2662_v11 = vsel %vm1015_vm6, %v2656_v7, %v2658_v44  ;;  %vm6487_vm6 = vmmov %vm6479_vm0  ;;  %v3261_v7 = vpack.c.bf16 %v5804_v18, %v5800_v36  ;;  %v3007_v36 = vld [vmem:[%s5864_s8] sm:$0xff] }
 0x8ed   : > { %v3233_v19 = vpack.c.bf16 %v2662_v11, %v2660_v46  ;;  %vm6493_vm0 = vmmov %vm6480_vm4  ;;  %v3045_v11 = vld [vmem:[#allocation5 + $0x120] sm:$0xf] }
 0x8ee   : > { %vm6494_vm4 = vmmov %vm6493_vm0 }
 0x8ef   : > { %v2736_v23 = vpop.permute.xlu1 %2735  ;;  %3234 = vmatprep.subr.bf16.mxu1 %v3233_v19  ;;  %v2788_v3 = vpop.permute.xlu0 %2787  ;;  %vm6496_vm9 = vmmov %vm6493_vm0 }
 0x8f0   : > { %v2745_v63 = vsel %vm6483_vm1, %v2734_v33, %v2736_v23  ;;  %v2746_v29 = vsel %vm6484_vm12, %v2736_v23, %v2738_v21  ;;  %3236 = vmatpush1.bf16.msra.mxu1 %v3235_v52  ;;  %vm6498_vm1 = vmmov %vm6491_vm2 }
 0x8f1   : > { %3238 = vmatprep.subr.bf16.mxu1 %v3237_v61 }
 0x8f3   : > { %v2742_v47 = vpop.permute.xlu1 %2741  ;;  %v2794_v45 = vpop.permute.xlu0 %2793 }
 0x8f4   : > { %v2747_v49 = vsel %vm6485_vm13, %v2740_v0, %v2742_v47  ;;  %v2748_v39 = vsel %vm6486_vm5, %v2742_v47, %v2744_v16  ;;  %3240 = vmatpush1.bf16.msra.mxu1 %v3239_v54  ;;  %v3046_v16 = vld [vmem:[#allocation5 + $0x128] sm:$0xf] }
 0x8f5   : > { %v3241_v13 = vpack.c.bf16 %v2748_v39, %v2746_v29  ;;  %v3243_v35 = vpack.c.bf16 %v2747_v49, %v2745_v63 }
 0x8f7   : > { %v2786_v15 = vpop.permute.xlu1 %2785  ;;  %3242 = vmatprep.subr.bf16.mxu1 %v3241_v13  ;;  %v2928_v43 = vpop.permute.xlu0 %2927 }
 0x8f8   : > { %v2795_v62 = vsel %vm1249_vm11, %v2784_v9, %v2786_v15  ;;  %v2796_v5 = vsel %vm1249_vm11, %v2786_v15, %v2788_v3  ;;  %3244 = vmatpush1.bf16.msra.mxu1 %v3243_v35  ;;  %v2939_v10 = vsel %vm1485_vm8, %v2928_v43, %v2930_v20 }
 0x8fb   : > { %v2792_v22 = vpop.permute.xlu1 %2791  ;;  %v2848_v60 = vpop.permute.xlu0 %2847 }
 0x8fc   : > { %v2797_v0 = vsel %vm1249_vm11, %v5785_v41, %v2792_v22  ;;  %v2798_v30 = vsel %vm1249_vm11, %v2792_v22, %v2794_v45  ;;  %vm6488_vm11 = vmmov %vm6481_vm7 }
 0x8fd   : > { %v3245_v24 = vpack.c.bf16 %v2798_v30, %v2796_v5  ;;  %v3247_v33 = vpack.c.bf16 %v2797_v0, %v2795_v62 }
 0x8ff   : > { %v2934_v26 = vpop.permute.xlu1 %2933  ;;  %3246 = vmatprep.subr.bf16.mxu1 %v3245_v24  ;;  %v2898_v53 = vpop.permute.xlu0 %2897 }
 0x900   : > { %v2941_v55 = vsel %vm1485_vm8, %v2934_v26, %v2936_v4  ;;  %3248 = vmatpush1.bf16.msra.mxu1 %v3247_v33  ;;  %vm6489_vm8 = vmmov %vm6481_vm7 }
 0x901   : > { %3250 = vmatprep.subr.bf16.mxu1 %v3249_v58  ;;  %vm6495_vm7 = vmmov %vm6493_vm0 }
 0x903   : > { %v2982_v9 = vpop.permute.xlu1 %2981  ;;  %v2980_v48 = vpop.permute.xlu0 %2979 }
 0x904   : > { %3252 = vmatpush1.bf16.msra.mxu1 %v3251_v57  ;;  %v2990_v41 = vsel %vm6487_vm6, %v2980_v48, %v2982_v9 }
 0x907   : > { %v2844_v37 = vpop.permute.xlu1 %2843  ;;  %v2986_v14 = vpop.permute.xlu0 %2985 }
 0x908   : > { %v2854_v51 = vsel %vm6488_vm11, %v2844_v37, %v5787_v25 }
 0x90b   : > { %v2850_v27 = vpop.permute.xlu1 %2849  ;;  %v2978_v31 = vpop.permute.xlu0 %2977 }
 0x90c   : > { %v2855_v12 = vsel %vm6489_vm8, %v2848_v60, %v2850_v27  ;;  %v2856_v17 = vsel %vm6490_vm14, %v2850_v27, %v5789_v6  ;;  %v2989_v2 = vsel %vm6491_vm2, %v2978_v31, %v2980_v48 }
 0x90d   : > { %v3253_v58 = vpack.c.bf16 %v2856_v17, %v2854_v51 }
 0x90f   : > { %v2842_v40 = vpop.permute.xlu1 %2841  ;;  %3254 = vmatprep.subr.bf16.mxu1 %v3253_v58 }
 0x910   : > { %v2853_v32 = vsel %vm6492_vm3, %v2842_v40, %v2844_v37 }
 0x911   : > { %v3255_v1 = vpack.c.bf16 %v2855_v12, %v2853_v32 }
 0x913   : > { %v2894_v57 = vpop.permute.xlu1 %2893  ;;  %3256 = vmatpush1.bf16.msra.mxu1 %v3255_v1 }
 0x914   : > { %v2904_v25 = vsel %vm6493_vm0, %v2894_v57, %v5791_v28  ;;  %v3263_v28 = vpack.c.bf16 %v2941_v55, %v2939_v10 }
 0x917   : > { %v2900_v8 = vpop.permute.xlu1 %2899 }
 0x918   : > { %v2905_v20 = vsel %vm6494_vm4, %v2898_v53, %v2900_v8  ;;  %v2906_v59 = vsel %vm6495_vm7, %v2900_v8, %v5793_v50 }
 0x919   : > { %v3257_v6 = vpack.c.bf16 %v2906_v59, %v2904_v25 }
 0x91b   : > { %v2892_v56 = vpop.permute.xlu1 %2891  ;;  %3258 = vmatprep.subr.bf16.mxu1 %v3257_v6 }
 0x91c   : > { %v2903_v34 = vsel %vm6496_vm9, %v2892_v56, %v2894_v57  ;;  %v3051_v18 = vpop.permute.xlu0 %3050 }
 0x91d   : > { %v3259_v4 = vpack.c.bf16 %v2905_v20, %v2903_v34 }
 0x91f   : > { %v2988_v38 = vpop.permute.xlu1 %2987  ;;  %3260 = vmatpush1.bf16.msra.mxu1 %v3259_v4 }
 0x920   : > { %v2992_v42 = vsel %vm6497_vm10, %v2986_v14, %v2988_v38  ;;  %3262 = vmatprep.subr.bf16.mxu1 %v3261_v7 }
 0x921   : > { %v3265_v21 = vpack.c.bf16 %v2992_v42, %v2990_v41 }
 0x923   : > { %v2984_v46 = vpop.permute.xlu1 %2983  ;;  %3264 = vmatpush1.bf16.msra.mxu1 %v3263_v28 }
 0x924   : > { %v2991_v50 = vsel %vm6498_vm1, %v2984_v46, %v2986_v14  ;;  %3266 = vmatprep.subr.bf16.mxu1 %v3265_v21 }
 0x925   : > { %v3267_v44 = vpack.c.bf16 %v2991_v50, %v2989_v2 }
 0x927   : > { %3268 = vmatpush1.bf16.msra.mxu1 %v3267_v44 }
 0x928   : > { %3218 = vmatprep.subr.msk.mxu1 %vm2105_vm15, %v3046_v16 }
 0x92b   : > { %3219 = vmatpush1.msk.msra.mxu1 %vm2105_vm15, %v3045_v11 }
 0x92c   : > { %3128 = vmatmul.mubr.f32.vlgmr.msra.gmra.mrb[0].mxu1 %v3007_v36 }
 0x9ff   : > { %v3129_v19 = vpop.f32.mrb[0].mxu1 }
 0xa00   : > { %v3130_v52 = vadd.f32 %v3129_v19, %v3051_v18  ;;  %v3131_v23 = vpop.f32.mrb[1].mxu1 }
 0xa01   : > { %v3132_v61 = vadd.f32 %v3131_v23, %v3051_v18 }
 0xa02   : > { %3134 = vst [vmem:[%s373_s1] sm:$0xff] %v3130_v52 }
 0xa03   : > { %3135 = vst [vmem:[%s373_s1 + $0x8] sm:$0xff] %v3132_v61 }
 0xa04 PF: > { %s20_s13 = sadd.s32 1, %s3495_s13  }
 0xa05   : > { %p17_p4 = scmp.ge.s32.totalorder %s20_s13, 4  }
 0xa07   :  { %19 = sbr.rel (!%p17_p4) target bundleno = 2 (0x2), region = 98 }

</bundles_post_ra>
